<compile_context>
chip_gen: v7x
topology: tpu7x:2x2x1
jax: 0.10.0
libtpu: 0.0.40
codegen_flags: <defaults>
</compile_context>

<pallas_src>
import functools

import jax
import jax.numpy as jnp
import numpy as np
from jax.experimental import pallas as pl
from jax.experimental.pallas import tpu as pltpu

_LANE = 128


def _spatial_sum(a):
    # (H, W, BL) -> (1, BL): leading-axis adds then a single sublane reduce.
    # Two single-axis reduces keep the lowering simple; result stays 2-D so
    # every value keeps a lane-major layout (lanes = batch).
    return jnp.sum(jnp.sum(a, axis=0), axis=0, keepdims=True)


def _dice_partials_kernel(x_ref, t_ref, o_ref, *, max_shift, n_rows):
    """One (H, W, B_lane) block per grid step -> (1, n_rows, B_lane) partials.

    Row 0: per-lane sum(x); row 1: per-lane sum(t); rows 2..2+n_shifts: per-lane
    intersection sums for every (dy, dx) in the +/-max_shift window.
    """
    x = x_ref[...]          # (H, W, BL); lanes = batch
    t = t_ref[...]
    bl = x.shape[-1]
    # Demo inputs are f32 (no-op cast); for bf16 production inputs the upcast
    # is deferred to the product so rolled copies stay half-width in VMEM.
    up = lambda a: a.astype(jnp.float32)

    rows = [_spatial_sum(up(x)), _spatial_sum(up(t))]

    # sum(x * roll(t, (dy, dx), axes=(H, W)))
    #   == sum(roll(x, -dy, axis=H) * roll(t, dx, axis=W))
    # H is the leading axis (cheap slab copies), W is the sublane axis.
    # jnp.roll everywhere -> one consistent shift convention; the +/-max_shift
    # search window is symmetric, so direction convention cannot change the min.
    t_dx = [t if dx == 0 else jnp.roll(t, dx, axis=1)
            for dx in range(-max_shift, max_shift + 1)]
    for dy in range(-max_shift, max_shift + 1):
        x_dy = x if dy == 0 else jnp.roll(x, -dy, axis=0)
        for tr in t_dx:
            rows.append(_spatial_sum(up(x_dy) * up(tr)))

    pad = n_rows - len(rows)
    if pad > 0:
        rows.append(jnp.zeros((pad, bl), jnp.float32))
    out = jnp.concatenate(rows, axis=0)                # (n_rows, BL)
    o_ref[...] = out.reshape(1, n_rows, bl)            # lane-dense full-block store


def soft_aligned_dice_loss(inputs, targets, max_shift=2, smooth=1.0):
    """inputs, targets: (N, C, H, W). Returns scalar float32 loss."""
    assert inputs.shape == targets.shape
    N, C, H, W = inputs.shape
    nc = N * C

    n_shifts = (2 * max_shift + 1) ** 2
    n_partials = 2 + n_shifts
    n_rows = 8 * pl.cdiv(n_partials, 8)          # sublane-aligned output rows

    # ---- choose lanes-per-block (multiple of 128) ---------------------------
    col_bytes = H * W * 4                        # one lane-column of f32
    # ~14 block-sized f32 live values worst case (2 pipelined inputs x 2
    # buffers + x, t, rolled copies, products); keep the tile under ~24 MiB so
    # it also fits v7x's 64 MiB VMEM with headroom.
    max_cols = max(1, (24 << 20) // (col_bytes * _LANE * 14))
    n_cols128 = pl.cdiv(nc, _LANE)               # 128-lane columns of real data
    cols = 1
    while (cols * 2 <= n_cols128 and cols * 2 <= max_cols
           and col_bytes * _LANE * cols < (512 << 10)):
        cols *= 2
    if n_cols128 >= 2 and n_cols128 // cols < 2:
        cols = max(1, cols // 2)                 # keep >= 2 grid steps (v7x megacore)
    b_lane = cols * _LANE
    n_blocks = pl.cdiv(nc, b_lane)
    nc_pad = n_blocks * b_lane
    # TODO(synk): very large H*W (one (H, W, 128) block overflowing VMEM) would
    # need spatial tiling with +/-max_shift halos; not needed for these shapes.

    # ---- batch-on-lanes layout, zero-padded (zeros contribute 0 to all sums) -
    x = jnp.transpose(inputs.reshape(nc, H, W), (1, 2, 0))    # (H, W, nc)
    t = jnp.transpose(targets.reshape(nc, H, W), (1, 2, 0))
    if nc_pad != nc:
        padcfg = ((0, 0), (0, 0), (0, nc_pad - nc))
        x = jnp.pad(x, padcfg)
        t = jnp.pad(t, padcfg)

    block_bytes = col_bytes * b_lane
    vmem_limit = int(min(64 << 20, max(32 << 20, 2 * 14 * block_bytes)))

    kernel = functools.partial(
        _dice_partials_kernel, max_shift=max_shift, n_rows=n_rows)
    partials = pl.pallas_call(
        kernel,
        out_shape=jax.ShapeDtypeStruct((n_blocks, n_rows, b_lane), jnp.float32),
        grid=(n_blocks,),
        in_specs=[
            pl.BlockSpec((H, W, b_lane), lambda i: (0, 0, i)),
            pl.BlockSpec((H, W, b_lane), lambda i: (0, 0, i)),
        ],
        out_specs=pl.BlockSpec((1, n_rows, b_lane), lambda i: (i, 0, 0)),
        compiler_params=pltpu.CompilerParams(
            dimension_semantics=("parallel",),
            vmem_limit_bytes=vmem_limit,
        ),
    )(x, t)

    # ---- tiny final reduction in plain JAX (n_rows x 1 scalars) -------------
    sums = jnp.sum(partials, axis=(0, 2))               # (n_rows,)
    sum_x = sums[0]
    sum_t = sums[1]
    inters = sums[2:2 + n_shifts]
    # Circular roll is a permutation, so sum(roll(t)) == sum(t): the reference
    # denominator is shift-invariant. Compute all shift losses and take the
    # exact min (no positivity assumption on the denominator is needed).
    denom = sum_x + sum_t + jnp.float32(smooth)
    losses = jnp.float32(1.0) - (jnp.float32(2.0) * inters + jnp.float32(smooth)) / denom
    return jnp.min(losses)


def _reference(inputs, targets, max_shift=2, smooth=1.0):
    """Pure-JAX reference mirroring the PyTorch module exactly."""
    x = inputs.astype(jnp.float32)
    t = targets.astype(jnp.float32)
    best = jnp.float32(jnp.inf)
    for shift_x in range(-max_shift, max_shift + 1):
        for shift_y in range(-max_shift, max_shift + 1):
            st = jnp.roll(t, shift=(shift_y, shift_x), axis=(2, 3))
            inter = jnp.sum(x * st)
            loss = 1.0 - (2.0 * inter + smooth) / (jnp.sum(x) + jnp.sum(st) + smooth)
            best = jnp.minimum(best, loss)
    return best


if __name__ == "__main__":
    key = jax.random.PRNGKey(0)
    k_in, k_tgt = jax.random.split(key)

    N, C, H, W = 2, 4, 16, 16
    # inputs: soft probabilities in [0, 1); targets: binary mask.
    inputs = jax.random.uniform(k_in, (N, C, H, W), dtype=jnp.float32)
    targets = (jax.random.uniform(k_tgt, (N, C, H, W)) > 0.5).astype(jnp.float32)

    loss = soft_aligned_dice_loss(inputs, targets, max_shift=2, smooth=1.0)
    loss = jax.block_until_ready(loss)

    ref = jax.block_until_ready(_reference(inputs, targets, max_shift=2, smooth=1.0))
    np.testing.assert_allclose(np.asarray(loss), np.asarray(ref), rtol=1e-5, atol=1e-5)

    print("KERNEL_OK")
</pallas_src>

<mosaic_0001>
module attributes {stable_mosaic.version = 11 : i64} {
  func.func @_dice_partials_kernel(%arg0: i32, %arg1: memref<16x16x128xf32, #tpu.memory_space<vmem>>, %arg2: memref<16x16x128xf32, #tpu.memory_space<vmem>>, %arg3: memref<1x32x128xf32, #tpu.memory_space<vmem>>) attributes {dimension_semantics = [#tpu.dimension_semantics<parallel>], iteration_bounds = array<i64: 1>, scalar_prefetch = 0 : i64, scratch_operands = 0 : i64, tpu.core_type = #tpu.core_type<tc>, window_params = [{transform_indices = @transform_0, window_bounds = array<i64: 16, 16, 128>}, {transform_indices = @transform_1, window_bounds = array<i64: 16, 16, 128>}, {transform_indices = @transform_2, window_bounds = array<i64: 1, 32, 128>}]} {
    %c0 = arith.constant 0 : index
    %c0_0 = arith.constant 0 : index
    %c0_1 = arith.constant 0 : index
    %0 = vector.load %arg1[%c0, %c0_0, %c0_1] : memref<16x16x128xf32, #tpu.memory_space<vmem>>, vector<16x16x128xf32>
    %c0_2 = arith.constant 0 : index
    %c0_3 = arith.constant 0 : index
    %c0_4 = arith.constant 0 : index
    %1 = vector.load %arg2[%c0_2, %c0_3, %c0_4] : memref<16x16x128xf32, #tpu.memory_space<vmem>>, vector<16x16x128xf32>
    %cst = arith.constant dense<0.000000e+00> : vector<16x128xf32>
    %2 = vector.multi_reduction <add>, %0, %cst [0] : vector<16x16x128xf32> to vector<16x128xf32>
    %cst_5 = arith.constant dense<0.000000e+00> : vector<128xf32>
    %3 = vector.multi_reduction <add>, %2, %cst_5 [0] : vector<16x128xf32> to vector<128xf32>
    %4 = vector.shape_cast %3 : vector<128xf32> to vector<1x128xf32>
    %cst_6 = arith.constant dense<0.000000e+00> : vector<16x128xf32>
    %5 = vector.multi_reduction <add>, %1, %cst_6 [0] : vector<16x16x128xf32> to vector<16x128xf32>
    %cst_7 = arith.constant dense<0.000000e+00> : vector<128xf32>
    %6 = vector.multi_reduction <add>, %5, %cst_7 [0] : vector<16x128xf32> to vector<128xf32>
    %7 = vector.shape_cast %6 : vector<128xf32> to vector<1x128xf32>
    %8 = vector.extract_strided_slice %1 {offsets = [0, 2, 0], sizes = [16, 14, 128], strides = [1, 1, 1]} : vector<16x16x128xf32> to vector<16x14x128xf32>
    %9 = vector.extract_strided_slice %1 {offsets = [0, 0, 0], sizes = [16, 2, 128], strides = [1, 1, 1]} : vector<16x16x128xf32> to vector<16x2x128xf32>
    %10 = tpu.concatenate %8, %9 in 1 : vector<16x14x128xf32>, vector<16x2x128xf32> -> vector<16x16x128xf32>
    %11 = vector.extract_strided_slice %1 {offsets = [0, 1, 0], sizes = [16, 15, 128], strides = [1, 1, 1]} : vector<16x16x128xf32> to vector<16x15x128xf32>
    %12 = vector.extract_strided_slice %1 {offsets = [0, 0, 0], sizes = [16, 1, 128], strides = [1, 1, 1]} : vector<16x16x128xf32> to vector<16x1x128xf32>
    %13 = tpu.concatenate %11, %12 in 1 : vector<16x15x128xf32>, vector<16x1x128xf32> -> vector<16x16x128xf32>
    %14 = vector.extract_strided_slice %1 {offsets = [0, 15, 0], sizes = [16, 1, 128], strides = [1, 1, 1]} : vector<16x16x128xf32> to vector<16x1x128xf32>
    %15 = vector.extract_strided_slice %1 {offsets = [0, 0, 0], sizes = [16, 15, 128], strides = [1, 1, 1]} : vector<16x16x128xf32> to vector<16x15x128xf32>
    %16 = tpu.concatenate %14, %15 in 1 : vector<16x1x128xf32>, vector<16x15x128xf32> -> vector<16x16x128xf32>
    %17 = vector.extract_strided_slice %1 {offsets = [0, 14, 0], sizes = [16, 2, 128], strides = [1, 1, 1]} : vector<16x16x128xf32> to vector<16x2x128xf32>
    %18 = vector.extract_strided_slice %1 {offsets = [0, 0, 0], sizes = [16, 14, 128], strides = [1, 1, 1]} : vector<16x16x128xf32> to vector<16x14x128xf32>
    %19 = tpu.concatenate %17, %18 in 1 : vector<16x2x128xf32>, vector<16x14x128xf32> -> vector<16x16x128xf32>
    %20 = vector.extract_strided_slice %0 {offsets = [14, 0, 0], sizes = [2, 16, 128], strides = [1, 1, 1]} : vector<16x16x128xf32> to vector<2x16x128xf32>
    %21 = vector.extract_strided_slice %0 {offsets = [0, 0, 0], sizes = [14, 16, 128], strides = [1, 1, 1]} : vector<16x16x128xf32> to vector<14x16x128xf32>
    %22 = tpu.concatenate %20, %21 in 0 : vector<2x16x128xf32>, vector<14x16x128xf32> -> vector<16x16x128xf32>
    %23 = arith.mulf %22, %10 : vector<16x16x128xf32>
    %cst_8 = arith.constant dense<0.000000e+00> : vector<16x128xf32>
    %24 = vector.multi_reduction <add>, %23, %cst_8 [0] : vector<16x16x128xf32> to vector<16x128xf32>
    %cst_9 = arith.constant dense<0.000000e+00> : vector<128xf32>
    %25 = vector.multi_reduction <add>, %24, %cst_9 [0] : vector<16x128xf32> to vector<128xf32>
    %26 = vector.shape_cast %25 : vector<128xf32> to vector<1x128xf32>
    %27 = arith.mulf %22, %13 : vector<16x16x128xf32>
    %cst_10 = arith.constant dense<0.000000e+00> : vector<16x128xf32>
    %28 = vector.multi_reduction <add>, %27, %cst_10 [0] : vector<16x16x128xf32> to vector<16x128xf32>
    %cst_11 = arith.constant dense<0.000000e+00> : vector<128xf32>
    %29 = vector.multi_reduction <add>, %28, %cst_11 [0] : vector<16x128xf32> to vector<128xf32>
    %30 = vector.shape_cast %29 : vector<128xf32> to vector<1x128xf32>
    %31 = arith.mulf %22, %1 : vector<16x16x128xf32>
    %cst_12 = arith.constant dense<0.000000e+00> : vector<16x128xf32>
    %32 = vector.multi_reduction <add>, %31, %cst_12 [0] : vector<16x16x128xf32> to vector<16x128xf32>
    %cst_13 = arith.constant dense<0.000000e+00> : vector<128xf32>
    %33 = vector.multi_reduction <add>, %32, %cst_13 [0] : vector<16x128xf32> to vector<128xf32>
    %34 = vector.shape_cast %33 : vector<128xf32> to vector<1x128xf32>
    %35 = arith.mulf %22, %16 : vector<16x16x128xf32>
    %cst_14 = arith.constant dense<0.000000e+00> : vector<16x128xf32>
    %36 = vector.multi_reduction <add>, %35, %cst_14 [0] : vector<16x16x128xf32> to vector<16x128xf32>
    %cst_15 = arith.constant dense<0.000000e+00> : vector<128xf32>
    %37 = vector.multi_reduction <add>, %36, %cst_15 [0] : vector<16x128xf32> to vector<128xf32>
    %38 = vector.shape_cast %37 : vector<128xf32> to vector<1x128xf32>
    %39 = arith.mulf %22, %19 : vector<16x16x128xf32>
    %cst_16 = arith.constant dense<0.000000e+00> : vector<16x128xf32>
    %40 = vector.multi_reduction <add>, %39, %cst_16 [0] : vector<16x16x128xf32> to vector<16x128xf32>
    %cst_17 = arith.constant dense<0.000000e+00> : vector<128xf32>
    %41 = vector.multi_reduction <add>, %40, %cst_17 [0] : vector<16x128xf32> to vector<128xf32>
    %42 = vector.shape_cast %41 : vector<128xf32> to vector<1x128xf32>
    %43 = vector.extract_strided_slice %0 {offsets = [15, 0, 0], sizes = [1, 16, 128], strides = [1, 1, 1]} : vector<16x16x128xf32> to vector<1x16x128xf32>
    %44 = vector.extract_strided_slice %0 {offsets = [0, 0, 0], sizes = [15, 16, 128], strides = [1, 1, 1]} : vector<16x16x128xf32> to vector<15x16x128xf32>
    %45 = tpu.concatenate %43, %44 in 0 : vector<1x16x128xf32>, vector<15x16x128xf32> -> vector<16x16x128xf32>
    %46 = arith.mulf %45, %10 : vector<16x16x128xf32>
    %cst_18 = arith.constant dense<0.000000e+00> : vector<16x128xf32>
    %47 = vector.multi_reduction <add>, %46, %cst_18 [0] : vector<16x16x128xf32> to vector<16x128xf32>
    %cst_19 = arith.constant dense<0.000000e+00> : vector<128xf32>
    %48 = vector.multi_reduction <add>, %47, %cst_19 [0] : vector<16x128xf32> to vector<128xf32>
    %49 = vector.shape_cast %48 : vector<128xf32> to vector<1x128xf32>
    %50 = arith.mulf %45, %13 : vector<16x16x128xf32>
    %cst_20 = arith.constant dense<0.000000e+00> : vector<16x128xf32>
    %51 = vector.multi_reduction <add>, %50, %cst_20 [0] : vector<16x16x128xf32> to vector<16x128xf32>
    %cst_21 = arith.constant dense<0.000000e+00> : vector<128xf32>
    %52 = vector.multi_reduction <add>, %51, %cst_21 [0] : vector<16x128xf32> to vector<128xf32>
    %53 = vector.shape_cast %52 : vector<128xf32> to vector<1x128xf32>
    %54 = arith.mulf %45, %1 : vector<16x16x128xf32>
    %cst_22 = arith.constant dense<0.000000e+00> : vector<16x128xf32>
    %55 = vector.multi_reduction <add>, %54, %cst_22 [0] : vector<16x16x128xf32> to vector<16x128xf32>
    %cst_23 = arith.constant dense<0.000000e+00> : vector<128xf32>
    %56 = vector.multi_reduction <add>, %55, %cst_23 [0] : vector<16x128xf32> to vector<128xf32>
    %57 = vector.shape_cast %56 : vector<128xf32> to vector<1x128xf32>
    %58 = arith.mulf %45, %16 : vector<16x16x128xf32>
    %cst_24 = arith.constant dense<0.000000e+00> : vector<16x128xf32>
    %59 = vector.multi_reduction <add>, %58, %cst_24 [0] : vector<16x16x128xf32> to vector<16x128xf32>
    %cst_25 = arith.constant dense<0.000000e+00> : vector<128xf32>
    %60 = vector.multi_reduction <add>, %59, %cst_25 [0] : vector<16x128xf32> to vector<128xf32>
    %61 = vector.shape_cast %60 : vector<128xf32> to vector<1x128xf32>
    %62 = arith.mulf %45, %19 : vector<16x16x128xf32>
    %cst_26 = arith.constant dense<0.000000e+00> : vector<16x128xf32>
    %63 = vector.multi_reduction <add>, %62, %cst_26 [0] : vector<16x16x128xf32> to vector<16x128xf32>
    %cst_27 = arith.constant dense<0.000000e+00> : vector<128xf32>
    %64 = vector.multi_reduction <add>, %63, %cst_27 [0] : vector<16x128xf32> to vector<128xf32>
    %65 = vector.shape_cast %64 : vector<128xf32> to vector<1x128xf32>
    %66 = arith.mulf %0, %10 : vector<16x16x128xf32>
    %cst_28 = arith.constant dense<0.000000e+00> : vector<16x128xf32>
    %67 = vector.multi_reduction <add>, %66, %cst_28 [0] : vector<16x16x128xf32> to vector<16x128xf32>
    %cst_29 = arith.constant dense<0.000000e+00> : vector<128xf32>
    %68 = vector.multi_reduction <add>, %67, %cst_29 [0] : vector<16x128xf32> to vector<128xf32>
    %69 = vector.shape_cast %68 : vector<128xf32> to vector<1x128xf32>
    %70 = arith.mulf %0, %13 : vector<16x16x128xf32>
    %cst_30 = arith.constant dense<0.000000e+00> : vector<16x128xf32>
    %71 = vector.multi_reduction <add>, %70, %cst_30 [0] : vector<16x16x128xf32> to vector<16x128xf32>
    %cst_31 = arith.constant dense<0.000000e+00> : vector<128xf32>
    %72 = vector.multi_reduction <add>, %71, %cst_31 [0] : vector<16x128xf32> to vector<128xf32>
    %73 = vector.shape_cast %72 : vector<128xf32> to vector<1x128xf32>
    %74 = arith.mulf %0, %1 : vector<16x16x128xf32>
    %cst_32 = arith.constant dense<0.000000e+00> : vector<16x128xf32>
    %75 = vector.multi_reduction <add>, %74, %cst_32 [0] : vector<16x16x128xf32> to vector<16x128xf32>
    %cst_33 = arith.constant dense<0.000000e+00> : vector<128xf32>
    %76 = vector.multi_reduction <add>, %75, %cst_33 [0] : vector<16x128xf32> to vector<128xf32>
    %77 = vector.shape_cast %76 : vector<128xf32> to vector<1x128xf32>
    %78 = arith.mulf %0, %16 : vector<16x16x128xf32>
    %cst_34 = arith.constant dense<0.000000e+00> : vector<16x128xf32>
    %79 = vector.multi_reduction <add>, %78, %cst_34 [0] : vector<16x16x128xf32> to vector<16x128xf32>
    %cst_35 = arith.constant dense<0.000000e+00> : vector<128xf32>
    %80 = vector.multi_reduction <add>, %79, %cst_35 [0] : vector<16x128xf32> to vector<128xf32>
    %81 = vector.shape_cast %80 : vector<128xf32> to vector<1x128xf32>
    %82 = arith.mulf %0, %19 : vector<16x16x128xf32>
    %cst_36 = arith.constant dense<0.000000e+00> : vector<16x128xf32>
    %83 = vector.multi_reduction <add>, %82, %cst_36 [0] : vector<16x16x128xf32> to vector<16x128xf32>
    %cst_37 = arith.constant dense<0.000000e+00> : vector<128xf32>
    %84 = vector.multi_reduction <add>, %83, %cst_37 [0] : vector<16x128xf32> to vector<128xf32>
    %85 = vector.shape_cast %84 : vector<128xf32> to vector<1x128xf32>
    %86 = vector.extract_strided_slice %0 {offsets = [1, 0, 0], sizes = [15, 16, 128], strides = [1, 1, 1]} : vector<16x16x128xf32> to vector<15x16x128xf32>
    %87 = vector.extract_strided_slice %0 {offsets = [0, 0, 0], sizes = [1, 16, 128], strides = [1, 1, 1]} : vector<16x16x128xf32> to vector<1x16x128xf32>
    %88 = tpu.concatenate %86, %87 in 0 : vector<15x16x128xf32>, vector<1x16x128xf32> -> vector<16x16x128xf32>
    %89 = arith.mulf %88, %10 : vector<16x16x128xf32>
    %cst_38 = arith.constant dense<0.000000e+00> : vector<16x128xf32>
    %90 = vector.multi_reduction <add>, %89, %cst_38 [0] : vector<16x16x128xf32> to vector<16x128xf32>
    %cst_39 = arith.constant dense<0.000000e+00> : vector<128xf32>
    %91 = vector.multi_reduction <add>, %90, %cst_39 [0] : vector<16x128xf32> to vector<128xf32>
    %92 = vector.shape_cast %91 : vector<128xf32> to vector<1x128xf32>
    %93 = arith.mulf %88, %13 : vector<16x16x128xf32>
    %cst_40 = arith.constant dense<0.000000e+00> : vector<16x128xf32>
    %94 = vector.multi_reduction <add>, %93, %cst_40 [0] : vector<16x16x128xf32> to vector<16x128xf32>
    %cst_41 = arith.constant dense<0.000000e+00> : vector<128xf32>
    %95 = vector.multi_reduction <add>, %94, %cst_41 [0] : vector<16x128xf32> to vector<128xf32>
    %96 = vector.shape_cast %95 : vector<128xf32> to vector<1x128xf32>
    %97 = arith.mulf %88, %1 : vector<16x16x128xf32>
    %cst_42 = arith.constant dense<0.000000e+00> : vector<16x128xf32>
    %98 = vector.multi_reduction <add>, %97, %cst_42 [0] : vector<16x16x128xf32> to vector<16x128xf32>
    %cst_43 = arith.constant dense<0.000000e+00> : vector<128xf32>
    %99 = vector.multi_reduction <add>, %98, %cst_43 [0] : vector<16x128xf32> to vector<128xf32>
    %100 = vector.shape_cast %99 : vector<128xf32> to vector<1x128xf32>
    %101 = arith.mulf %88, %16 : vector<16x16x128xf32>
    %cst_44 = arith.constant dense<0.000000e+00> : vector<16x128xf32>
    %102 = vector.multi_reduction <add>, %101, %cst_44 [0] : vector<16x16x128xf32> to vector<16x128xf32>
    %cst_45 = arith.constant dense<0.000000e+00> : vector<128xf32>
    %103 = vector.multi_reduction <add>, %102, %cst_45 [0] : vector<16x128xf32> to vector<128xf32>
    %104 = vector.shape_cast %103 : vector<128xf32> to vector<1x128xf32>
    %105 = arith.mulf %88, %19 : vector<16x16x128xf32>
    %cst_46 = arith.constant dense<0.000000e+00> : vector<16x128xf32>
    %106 = vector.multi_reduction <add>, %105, %cst_46 [0] : vector<16x16x128xf32> to vector<16x128xf32>
    %cst_47 = arith.constant dense<0.000000e+00> : vector<128xf32>
    %107 = vector.multi_reduction <add>, %106, %cst_47 [0] : vector<16x128xf32> to vector<128xf32>
    %108 = vector.shape_cast %107 : vector<128xf32> to vector<1x128xf32>
    %109 = vector.extract_strided_slice %0 {offsets = [2, 0, 0], sizes = [14, 16, 128], strides = [1, 1, 1]} : vector<16x16x128xf32> to vector<14x16x128xf32>
    %110 = vector.extract_strided_slice %0 {offsets = [0, 0, 0], sizes = [2, 16, 128], strides = [1, 1, 1]} : vector<16x16x128xf32> to vector<2x16x128xf32>
    %111 = tpu.concatenate %109, %110 in 0 : vector<14x16x128xf32>, vector<2x16x128xf32> -> vector<16x16x128xf32>
    %112 = arith.mulf %111, %10 : vector<16x16x128xf32>
    %cst_48 = arith.constant dense<0.000000e+00> : vector<16x128xf32>
    %113 = vector.multi_reduction <add>, %112, %cst_48 [0] : vector<16x16x128xf32> to vector<16x128xf32>
    %cst_49 = arith.constant dense<0.000000e+00> : vector<128xf32>
    %114 = vector.multi_reduction <add>, %113, %cst_49 [0] : vector<16x128xf32> to vector<128xf32>
    %115 = vector.shape_cast %114 : vector<128xf32> to vector<1x128xf32>
    %116 = arith.mulf %111, %13 : vector<16x16x128xf32>
    %cst_50 = arith.constant dense<0.000000e+00> : vector<16x128xf32>
    %117 = vector.multi_reduction <add>, %116, %cst_50 [0] : vector<16x16x128xf32> to vector<16x128xf32>
    %cst_51 = arith.constant dense<0.000000e+00> : vector<128xf32>
    %118 = vector.multi_reduction <add>, %117, %cst_51 [0] : vector<16x128xf32> to vector<128xf32>
    %119 = vector.shape_cast %118 : vector<128xf32> to vector<1x128xf32>
    %120 = arith.mulf %111, %1 : vector<16x16x128xf32>
    %cst_52 = arith.constant dense<0.000000e+00> : vector<16x128xf32>
    %121 = vector.multi_reduction <add>, %120, %cst_52 [0] : vector<16x16x128xf32> to vector<16x128xf32>
    %cst_53 = arith.constant dense<0.000000e+00> : vector<128xf32>
    %122 = vector.multi_reduction <add>, %121, %cst_53 [0] : vector<16x128xf32> to vector<128xf32>
    %123 = vector.shape_cast %122 : vector<128xf32> to vector<1x128xf32>
    %124 = arith.mulf %111, %16 : vector<16x16x128xf32>
    %cst_54 = arith.constant dense<0.000000e+00> : vector<16x128xf32>
    %125 = vector.multi_reduction <add>, %124, %cst_54 [0] : vector<16x16x128xf32> to vector<16x128xf32>
    %cst_55 = arith.constant dense<0.000000e+00> : vector<128xf32>
    %126 = vector.multi_reduction <add>, %125, %cst_55 [0] : vector<16x128xf32> to vector<128xf32>
    %127 = vector.shape_cast %126 : vector<128xf32> to vector<1x128xf32>
    %128 = arith.mulf %111, %19 : vector<16x16x128xf32>
    %cst_56 = arith.constant dense<0.000000e+00> : vector<16x128xf32>
    %129 = vector.multi_reduction <add>, %128, %cst_56 [0] : vector<16x16x128xf32> to vector<16x128xf32>
    %cst_57 = arith.constant dense<0.000000e+00> : vector<128xf32>
    %130 = vector.multi_reduction <add>, %129, %cst_57 [0] : vector<16x128xf32> to vector<128xf32>
    %131 = vector.shape_cast %130 : vector<128xf32> to vector<1x128xf32>
    %cst_58 = arith.constant 0.000000e+00 : f32
    %132 = vector.broadcast %cst_58 : f32 to vector<5x128xf32>
    %133 = tpu.concatenate %4, %7, %26, %30, %34, %38, %42, %49, %53, %57, %61, %65, %69, %73, %77, %81 in 0 : vector<1x128xf32>, vector<1x128xf32>, vector<1x128xf32>, vector<1x128xf32>, vector<1x128xf32>, vector<1x128xf32>, vector<1x128xf32>, vector<1x128xf32>, vector<1x128xf32>, vector<1x128xf32>, vector<1x128xf32>, vector<1x128xf32>, vector<1x128xf32>, vector<1x128xf32>, vector<1x128xf32>, vector<1x128xf32> -> vector<16x128xf32>
    %134 = tpu.concatenate %85, %92, %96, %100, %104, %108, %115, %119, %123, %127, %131, %132 in 0 : vector<1x128xf32>, vector<1x128xf32>, vector<1x128xf32>, vector<1x128xf32>, vector<1x128xf32>, vector<1x128xf32>, vector<1x128xf32>, vector<1x128xf32>, vector<1x128xf32>, vector<1x128xf32>, vector<1x128xf32>, vector<5x128xf32> -> vector<16x128xf32>
    %135 = tpu.concatenate %133, %134 in 0 : vector<16x128xf32>, vector<16x128xf32> -> vector<32x128xf32>
    %136 = vector.shape_cast %135 : vector<32x128xf32> to vector<1x32x128xf32>
    %c0_59 = arith.constant 0 : index
    %c0_60 = arith.constant 0 : index
    %c0_61 = arith.constant 0 : index
    %137 = vector.load %arg3[%c0_59, %c0_60, %c0_61] : memref<1x32x128xf32, #tpu.memory_space<vmem>>, vector<1x32x128xf32>
    tpu.vector_store %arg3[%c0_59, %c0_60, %c0_61], %136 {strides = array<i32>} : memref<1x32x128xf32, #tpu.memory_space<vmem>>, vector<1x32x128xf32>,
    return
  }
  func.func @transform_0(%arg0: i32) -> (i32, i32, i32) {
    %c0_i32 = arith.constant 0 : i32
    %c0_i32_0 = arith.constant 0 : i32
    %c0_i32_1 = arith.constant 0 : i32
    return %c0_i32, %c0_i32_0, %arg0 : i32, i32, i32
  }
  func.func @transform_1(%arg0: i32) -> (i32, i32, i32) {
    %c0_i32 = arith.constant 0 : i32
    %c0_i32_0 = arith.constant 0 : i32
    %c0_i32_1 = arith.constant 0 : i32
    return %c0_i32, %c0_i32_0, %arg0 : i32, i32, i32
  }
  func.func @transform_2(%arg0: i32) -> (i32, i32, i32) {
    %c0_i32 = arith.constant 0 : i32
    %c0_i32_0 = arith.constant 0 : i32
    %c0_i32_1 = arith.constant 0 : i32
    return %arg0, %c0_i32, %c0_i32_0 : i32, i32, i32
  }
}

</mosaic_0001>

<bundles_post_ra>
// kernel: tpu_custom_call.1
= control target key start
LH: loop header
LB: loop body
LE: loop exit
PB: predicated region body
PF: predicated region fallthrough
CT: control target
= control target key end

     0   :  { %7 = vsyncpa [#allocation3], 0  ;;  %s6187_s0 = inlined_call_operand.hbm [shape: f32[16,16,128], index: 0, kind: input, shape index: {}]   ;;  %s6188_s1 = inlined_call_operand.hbm [shape: f32[16,16,128], index: 1, kind: input, shape index: {}]   ;;  %s6189_s2 = inlined_call_operand.hbm [shape: f32[1,32,128], index: 2, kind: output, shape index: {}]  }
   0x1   :  { %8 = vsyncpa [#allocation6], 0 }
   0x2   :  { %9 = vsyncpa [#allocation4], 0  ;;  %s2673_s9 = smov [#allocation2]   ;;  %s2601_s13 = scalar_lea.hbm %s6187_s0, 4096 }
   0x3   :  { %s15_s10 = sshll.u32 %s2673_s9, 4  ;;  %p2602_p0 = scmp.ne.s32.totalorder %s6187_s0, %s2601_s13  ;;  %s16_s10 = int_to_ptr.vmem [resolvable:$true] %s15_s10 }
   0x4   :  { %p2605_p1 = scmp.lt.u32.totalorder %s2601_s13, %s6187_s0 }
   0x6   :  { %p2607_p2 = pnand %p2605_p1, %p2602_p0 }
   0x8   :  { %2610 = shalt.err (!%p2607_p2)
}
   0x9   :  { %s2611_s18 = scalar_lea.vmem %s16_s10, 4096  ;;  %p2616_p4 = scmp.lt.s32.totalorder %s16_s10, %s16_s10 }
   0xa   :  { %p2612_p3 = scmp.ne.s32.totalorder %s16_s10, %s2611_s18  ;;  %p2617_p5 = scmp.lt.s32.totalorder %s2611_s18, %s2611_s18 }
   0xc   :  { %p2618_p6 = por %p2617_p5, %p2616_p4 }
   0xe   :  { %p2619_p7 = pnand %p2618_p6, %p2612_p3 }
  0x10   :  { %2622 = shalt.err (!%p2619_p7)
}
  0x11   :  { %s2674_s19 = smov 128   ;;  %s2675_s20 = smov 8  }
  0x12   :  { %21 = dma.hbm_to_vmem [thread:$0]  %s6187_s0, 4096, %s16_s10, [#allocation3], %s2674_s19, %s2674_s19, %s2675_s20  }
  0x13   :  { %s2676_s23 = smov [#allocation5]   ;;  %s2623_s27 = scalar_lea.hbm %s6188_s1, 4096 }
  0x14   :  { %s27_s24 = sshll.u32 %s2676_s23, 4  ;;  %p2624_p8 = scmp.ne.s32.totalorder %s6188_s1, %s2623_s27  ;;  %s28_s24 = int_to_ptr.vmem [resolvable:$true] %s27_s24 }
  0x15   :  { %p2627_p9 = scmp.lt.u32.totalorder %s2623_s27, %s6188_s1 }
  0x17   :  { %p2629_p10 = pnand %p2627_p9, %p2624_p8 }
  0x19   :  { %2632 = shalt.err (!%p2629_p10)
}
  0x1a   :  { %s2633_s4 = scalar_lea.vmem %s28_s24, 4096  ;;  %p2638_p12 = scmp.lt.s32.totalorder %s28_s24, %s28_s24 }
  0x1b   :  { %p2634_p11 = scmp.ne.s32.totalorder %s28_s24, %s2633_s4  ;;  %p2639_p13 = scmp.lt.s32.totalorder %s2633_s4, %s2633_s4 }
  0x1d   :  { %p2640_p0 = por %p2639_p13, %p2638_p12 }
  0x1f   :  { %p2641_p1 = pnand %p2640_p0, %p2634_p11 }
  0x21   :  { %2644 = shalt.err (!%p2641_p1)
}
  0x22   :  { %33 = dma.hbm_to_vmem [thread:$0]  %s6188_s1, 4096, %s28_s24, [#allocation6], %s2674_s19, %s2674_s19, %s2675_s20  }
  0x23   :  { %2667 = dma.done.wait [#allocation3], 4096  }
  0x24   :  { %2668 = vsyncadd [#allocation3], 4294963200 }
  0x25   :  { %2669 = dma.done.wait [#allocation6], 4096  }
  0x26   :  { %2670 = vsyncadd [#allocation6], 4294963200  ;;  %v2723_v0 = vld [vmem:[#allocation2] sm:$0xff]  ;;  %v2725_v1 = vld [vmem:[#allocation2 + $0x10] sm:$0xff]  ;;  %vm210_vm0 = vcmask 1045504   ;;  %vm323_vm1 = vcmask 1046528  }
  0x27   :  { %6638 = vst [vmem:[#allocation11_spill] sm:$0xff] %v2723_v0  ;;  %6639 = vst [vmem:[#allocation12_spill] sm:$0xff] %v2725_v1  ;;  %v2727_v2 = vld [vmem:[#allocation2 + $0x8] sm:$0xff]  ;;  %v2729_v3 = vld [vmem:[#allocation2 + $0x18] sm:$0xff]  ;;  %v104_v4 = vadd.f32 %v2725_v1, %v2723_v0  ;;  %vm468_vm2 = vcmask 1040384   ;;  %vm581_vm3 = vcmask 1041408  }
  0x28   :  { %6640 = vst [vmem:[#allocation13_spill] sm:$0xff] %v2727_v2  ;;  %6641 = vst [vmem:[#allocation14_spill] sm:$0xff] %v2729_v3  ;;  %v2733_v5 = vld [vmem:[#allocation2 + $0x20] sm:$0xff]  ;;  %v119_v6 = vadd.f32 %v2729_v3, %v2727_v2  ;;  %v2737_v7 = vld [vmem:[#allocation2 + $0x28] sm:$0xff]  ;;  %vm2389_vm4 = vcmask 1042432   ;;  %vm2391_vm5 = vcmask 1043456  }
  0x29   :  { %6642 = vst [vmem:[#allocation15_spill] sm:$0xff] %v2733_v5  ;;  %6643 = vst [vmem:[#allocation16_spill] sm:$0xff] %v2737_v7  ;;  %v105_v8 = vadd.f32 %v104_v4, %v2733_v5  ;;  %v2740_v9 = vld [vmem:[#allocation2 + $0x30] sm:$0xff]  ;;  %v2743_v11 = vld [vmem:[#allocation2 + $0x38] sm:$0xff]  ;;  %vm2393_vm6 = vcmask 1044480   ;;  %s2677_s1 = smov [#allocation7]  }
  0x2a   :  { %6644 = vst [vmem:[#allocation17_spill] sm:$0xff] %v2740_v9  ;;  %v120_v10 = vadd.f32 %v119_v6, %v2737_v7  ;;  %6645 = vst [vmem:[#allocation18_spill] sm:$0xff] %v2743_v11  ;;  %v2746_v13 = vld [vmem:[#allocation2 + $0x40] sm:$0xff]  ;;  %v2749_v15 = vld [vmem:[#allocation2 + $0x48] sm:$0xff]  ;;  %s2423_s6 = sshll.u32 %s2677_s1, 4  ;;  %s2424_s6 = int_to_ptr.vmem [resolvable:$true] %s2423_s6 }
  0x2b   :  { %v106_v12 = vadd.f32 %v105_v8, %v2740_v9  ;;  %6646 = vst [vmem:[#allocation19_spill] sm:$0xff] %v2746_v13  ;;  %6647 = vst [vmem:[#allocation20_spill] sm:$0xff] %v2749_v15  ;;  %v2752_v17 = vld [vmem:[#allocation2 + $0x50] sm:$0xff]  ;;  %v2755_v19 = vld [vmem:[#allocation2 + $0x58] sm:$0xff]  ;;  %s2645_s7 = scalar_lea.vmem %s2424_s6, 512  ;;  %p2650_p3 = scmp.lt.s32.totalorder %s2424_s6, %s2424_s6 }
  0x2c   :  { %v121_v14 = vadd.f32 %v120_v10, %v2743_v11  ;;  %6648 = vst [vmem:[#allocation21_spill] sm:$0xff] %v2752_v17  ;;  %6649 = vst [vmem:[#allocation22_spill] sm:$0xff] %v2755_v19  ;;  %v2758_v21 = vld [vmem:[#allocation2 + $0x60] sm:$0xff]  ;;  %v2760_v22 = vld [vmem:[#allocation2 + $0x68] sm:$0xff]  ;;  %p2646_p2 = scmp.ne.s32.totalorder %s2424_s6, %s2645_s7  ;;  %p2651_p4 = scmp.lt.s32.totalorder %s2645_s7, %s2645_s7 }
  0x2d   :  { %v107_v16 = vadd.f32 %v106_v12, %v2746_v13  ;;  %6650 = vst [vmem:[#allocation23_spill] sm:$0xff] %v2758_v21  ;;  %6651 = vst [vmem:[#allocation24_spill] sm:$0xff] %v2760_v22  ;;  %v2762_v23 = vld [vmem:[#allocation5] sm:$0xff]  ;;  %v2765_v25 = vld [vmem:[#allocation5 + $0x8] sm:$0xff] }
  0x2e   :  { %v122_v18 = vadd.f32 %v121_v14, %v2749_v15  ;;  %6652 = vst [vmem:[#allocation25_spill] sm:$0xff] %v2762_v23  ;;  %6653 = vst [vmem:[#allocation26_spill] sm:$0xff] %v2765_v25  ;;  %v2767_v26 = vld [vmem:[#allocation5 + $0x10] sm:$0xff]  ;;  %v2769_v27 = vld [vmem:[#allocation5 + $0x18] sm:$0xff]  ;;  %v6195_v6 = vrot.slane %v2762_v23, 2  ;;  %p2652_p5 = por %p2651_p4, %p2650_p3 }
  0x2f   :  { %v108_v20 = vadd.f32 %v107_v16, %v2752_v17  ;;  %6654 = vst [vmem:[#allocation27_spill] sm:$0xff] %v2767_v26  ;;  %6655 = vst [vmem:[#allocation28_spill] sm:$0xff] %v2769_v27  ;;  %v2772_v29 = vld [vmem:[#allocation2 + $0x70] sm:$0xff]  ;;  %v141_v31 = vadd.f32 %v2767_v26, %v2762_v23  ;;  %v156_v32 = vadd.f32 %v2769_v27, %v2765_v25  ;;  %v2779_v33 = vld [vmem:[#allocation2 + $0x78] sm:$0xff]  ;;  %v6194_v16 = vrot.slane %v2765_v25, 2 }
  0x30   :  { %v123_v24 = vadd.f32 %v122_v18, %v2755_v19  ;;  %6656 = vst [vmem:[#allocation29_spill] sm:$0xff] %v2772_v29  ;;  %6657 = vst [vmem:[#allocation30_spill] sm:$0xff] %v2779_v33  ;;  %v2781_v34 = vld [vmem:[#allocation5 + $0x20] sm:$0xff]  ;;  %v2783_v35 = vld [vmem:[#allocation5 + $0x28] sm:$0xff]  ;;  %p2653_p6 = pnand %p2652_p5, %p2646_p2 }
  0x31   :  { %v109_v28 = vadd.f32 %v108_v20, %v2758_v21  ;;  %6658 = vst [vmem:[#allocation31_spill] sm:$0xff] %v2781_v34  ;;  %6659 = vst [vmem:[#allocation32_spill] sm:$0xff] %v2783_v35  ;;  %v2786_v37 = vld [vmem:[#allocation2 + $0x80] sm:$0xff]  ;;  %v142_v39 = vadd.f32 %v141_v31, %v2781_v34  ;;  %v157_v40 = vadd.f32 %v156_v32, %v2783_v35  ;;  %v2791_v41 = vld [vmem:[#allocation2 + $0x88] sm:$0xff] }
  0x32   :  { %v124_v30 = vadd.f32 %v123_v24, %v2760_v22  ;;  %6660 = vst [vmem:[#allocation33_spill] sm:$0xff] %v2786_v37  ;;  %6661 = vst [vmem:[#allocation34_spill] sm:$0xff] %v2791_v41  ;;  %v2793_v42 = vld [vmem:[#allocation5 + $0x30] sm:$0xff]  ;;  %v2795_v43 = vld [vmem:[#allocation5 + $0x38] sm:$0xff] }
  0x33   :  { %v110_v36 = vadd.f32 %v109_v28, %v2772_v29  ;;  %6662 = vst [vmem:[#allocation35_spill] sm:$0xff] %v2793_v42  ;;  %6663 = vst [vmem:[#allocation36_spill] sm:$0xff] %v2795_v43  ;;  %v2798_v45 = vld [vmem:[#allocation2 + $0x90] sm:$0xff]  ;;  %v143_v47 = vadd.f32 %v142_v39, %v2793_v42  ;;  %v158_v48 = vadd.f32 %v157_v40, %v2795_v43  ;;  %v2803_v49 = vld [vmem:[#allocation2 + $0x98] sm:$0xff] }
  0x34   :  { %v125_v38 = vadd.f32 %v124_v30, %v2779_v33  ;;  %6664 = vst [vmem:[#allocation37_spill] sm:$0xff] %v2798_v45  ;;  %6665 = vst [vmem:[#allocation38_spill] sm:$0xff] %v2803_v49  ;;  %v2805_v50 = vld [vmem:[#allocation5 + $0x40] sm:$0xff]  ;;  %v2807_v51 = vld [vmem:[#allocation5 + $0x48] sm:$0xff] }
  0x35   :  { %v111_v44 = vadd.f32 %v110_v36, %v2786_v37  ;;  %6666 = vst [vmem:[#allocation39_spill] sm:$0xff] %v2805_v50  ;;  %6667 = vst [vmem:[#allocation40_spill] sm:$0xff] %v2807_v51  ;;  %v2810_v53 = vld [vmem:[#allocation2 + $0xa0] sm:$0xff]  ;;  %v144_v55 = vadd.f32 %v143_v47, %v2805_v50  ;;  %v159_v56 = vadd.f32 %v158_v48, %v2807_v51  ;;  %v2815_v57 = vld [vmem:[#allocation2 + $0xa8] sm:$0xff] }
  0x36   :  { %v126_v46 = vadd.f32 %v125_v38, %v2791_v41  ;;  %6668 = vst [vmem:[#allocation41_spill] sm:$0xff] %v2810_v53  ;;  %6669 = vst [vmem:[#allocation42_spill] sm:$0xff] %v2815_v57  ;;  %v2817_v58 = vld [vmem:[#allocation5 + $0x50] sm:$0xff]  ;;  %v2819_v59 = vld [vmem:[#allocation5 + $0x58] sm:$0xff] }
  0x37   :  { %v112_v52 = vadd.f32 %v111_v44, %v2798_v45  ;;  %6670 = vst [vmem:[#allocation43_spill] sm:$0xff] %v2817_v58  ;;  %6671 = vst [vmem:[#allocation44_spill] sm:$0xff] %v2819_v59  ;;  %v2822_v61 = vld [vmem:[#allocation2 + $0xb0] sm:$0xff]  ;;  %v145_v63 = vadd.f32 %v144_v55, %v2817_v58  ;;  %v160_v4 = vadd.f32 %v159_v56, %v2819_v59  ;;  %v2828_v8 = vld [vmem:[#allocation2 + $0xb8] sm:$0xff] }
  0x38   :  { %v127_v54 = vadd.f32 %v126_v46, %v2803_v49  ;;  %6672 = vst [vmem:[#allocation45_spill] sm:$0xff] %v2822_v61  ;;  %6673 = vst [vmem:[#allocation46_spill] sm:$0xff] %v2828_v8  ;;  %v2830_v10 = vld [vmem:[#allocation5 + $0x60] sm:$0xff]  ;;  %v2832_v12 = vld [vmem:[#allocation5 + $0x68] sm:$0xff] }
  0x39   :  { %v113_v60 = vadd.f32 %v112_v52, %v2810_v53  ;;  %6674 = vst [vmem:[#allocation47_spill] sm:$0xff] %v2830_v10  ;;  %6675 = vst [vmem:[#allocation48_spill] sm:$0xff] %v2832_v12  ;;  %v2838_v24 = vld [vmem:[#allocation2 + $0xc0] sm:$0xff]  ;;  %v146_v30 = vadd.f32 %v145_v63, %v2830_v10  ;;  %v161_v31 = vadd.f32 %v160_v4, %v2832_v12  ;;  %v2844_v36 = vld [vmem:[#allocation2 + $0xc8] sm:$0xff] }
  0x3a   :  { %v128_v62 = vadd.f32 %v127_v54, %v2815_v57  ;;  %6676 = vst [vmem:[#allocation49_spill] sm:$0xff] %v2838_v24  ;;  %6677 = vst [vmem:[#allocation50_spill] sm:$0xff] %v2844_v36  ;;  %v2846_v38 = vld [vmem:[#allocation5 + $0x70] sm:$0xff]  ;;  %v2848_v39 = vld [vmem:[#allocation5 + $0x78] sm:$0xff]  ;;  %v6703_v57 = vrot.slane %v2805_v50, 2 }
  0x3b   :  { %v114_v14 = vadd.f32 %v113_v60, %v2822_v61  ;;  %6678 = vst [vmem:[#allocation51_spill] sm:$0xff] %v2846_v38  ;;  %6679 = vst [vmem:[#allocation52_spill] sm:$0xff] %v2848_v39  ;;  %v2854_v48 = vld [vmem:[#allocation2 + $0xd0] sm:$0xff]  ;;  %v147_v54 = vadd.f32 %v146_v30, %v2846_v38  ;;  %v162_v55 = vadd.f32 %v161_v31, %v2848_v39  ;;  %v2860_v60 = vld [vmem:[#allocation2 + $0xd8] sm:$0xff] }
  0x3c   :  { %v129_v28 = vadd.f32 %v128_v62, %v2828_v8  ;;  %6680 = vst [vmem:[#allocation53_spill] sm:$0xff] %v2854_v48  ;;  %6681 = vst [vmem:[#allocation54_spill] sm:$0xff] %v2860_v60  ;;  %v2862_v62 = vld [vmem:[#allocation5 + $0x80] sm:$0xff]  ;;  %v2864_v63 = vld [vmem:[#allocation5 + $0x88] sm:$0xff] }
  0x3d   :  { %v115_v40 = vadd.f32 %v114_v14, %v2838_v24  ;;  %6682 = vst [vmem:[#allocation55_spill] sm:$0xff] %v2862_v62  ;;  %6683 = vst [vmem:[#allocation56_spill] sm:$0xff] %v2864_v63  ;;  %v2870_v18 = vld [vmem:[#allocation2 + $0xe0] sm:$0xff]  ;;  %v148_v31 = vadd.f32 %v147_v54, %v2862_v62  ;;  %v163_v56 = vadd.f32 %v162_v55, %v2864_v63  ;;  %v2876_v47 = vld [vmem:[#allocation2 + $0xe8] sm:$0xff]  ;;  %v6700_v24 = vrot.slane %v2793_v42, 2 }
  0x3e   :  { %v130_v52 = vadd.f32 %v129_v28, %v2844_v36  ;;  %6684 = vst [vmem:[#allocation57_spill] sm:$0xff] %v2870_v18  ;;  %6685 = vst [vmem:[#allocation58_spill] sm:$0xff] %v2876_v47  ;;  %v2878_v32 = vld [vmem:[#allocation5 + $0x90] sm:$0xff]  ;;  %v2898_v28 = vld [vmem:[#allocation2 + $0xf8] sm:$0xff]  ;;  %v6699_v36 = vrot.slane %v2795_v43, 2 }
  0x3f   :  { %v116_v4 = vadd.f32 %v115_v40, %v2854_v48  ;;  %6686 = vst [vmem:[#allocation59_spill] sm:$0xff] %v2878_v32  ;;  %v2880_v40 = vld [vmem:[#allocation5 + $0x98] sm:$0xff]  ;;  %v2886_v44 = vld [vmem:[#allocation2 + $0xf0] sm:$0xff]  ;;  %v149_v55 = vadd.f32 %v148_v31, %v2878_v32  ;;  %6690 = vst [vmem:[#allocation63_spill] sm:$0xff] %v2898_v28  ;;  %v6694_v31 = vrot.slane %v2767_v26, 2  ;;  %v6696_v48 = vrot.slane %v2783_v35, 2 }
  0x40   :  { %v131_v30 = vadd.f32 %v130_v52, %v2860_v60  ;;  %6687 = vst [vmem:[#allocation60_spill] sm:$0xff] %v2880_v40  ;;  %6688 = vst [vmem:[#allocation61_spill] sm:$0xff] %v2886_v44  ;;  %v164_v46 = vadd.f32 %v163_v56, %v2880_v40  ;;  %v2900_v14 = vld [vmem:[#allocation5 + $0xa0] sm:$0xff]  ;;  %v2902_v52 = vld [vmem:[#allocation5 + $0xa8] sm:$0xff] }
  0x41   :  { %v117_v20 = vadd.f32 %v116_v4, %v2870_v18  ;;  %v2896_v4 = vsel %vm210_vm0, %v6195_v6, %v6194_v16  ;;  %6691 = vst [vmem:[#allocation64_spill] sm:$0xff] %v2900_v14  ;;  %6692 = vst [vmem:[#allocation65_spill] sm:$0xff] %v2902_v52  ;;  %v6697_v16 = vrot.slane %v2781_v34, 2  ;;  %v150_v61 = vadd.f32 %v149_v55, %v2900_v14  ;;  %v2938_v53 = vld [vmem:[#allocation5 + $0xb8] sm:$0xff]  ;;  %v2956_v45 = vld [vmem:[#allocation5 + $0xc0] sm:$0xff] }
  0x42   :  { %v132_v54 = vadd.f32 %v131_v30, %v2876_v47  ;;  %6689 = vst [vmem:[#allocation62_spill] sm:$0xff] %v2896_v4  ;;  %v6693_v30 = vrot.slane %v2769_v27, 2  ;;  %6706 = vst [vmem:[#allocation71_spill] sm:$0xff] %v2938_v53  ;;  %v6711_v55 = vrot.slane %v2830_v10, 2  ;;  %v2958_v41 = vld [vmem:[#allocation5 + $0xc8] sm:$0xff]  ;;  %v2963_v29 = vld [vmem:[#allocation5 + $0xd0] sm:$0xff] }
  0x43   :  { %v118_v60 = vadd.f32 %v117_v20, %v2886_v44  ;;  %v2917_v6 = vsel %vm210_vm0, %v6697_v16, %v6696_v48  ;;  %v2924_v20 = vsel %vm210_vm0, %v6700_v24, %v6699_v36  ;;  %v2936_v48 = vld [vmem:[#allocation5 + $0xb0] sm:$0xff]  ;;  %v6707_v24 = vrot.slane %v2819_v59, 2  ;;  %6713 = vst [vmem:[#allocation74_spill] sm:$0xff] %v2956_v45  ;;  %6714 = vst [vmem:[#allocation75_spill] sm:$0xff] %v2958_v41  ;;  %v2965_v22 = vld [vmem:[#allocation5 + $0xd8] sm:$0xff] }
  0x44   :  { %v2910_v56 = vsel %vm210_vm0, %v6694_v31, %v6693_v30  ;;  %6698 = vst [vmem:[#allocation67_spill] sm:$0xff] %v2917_v6  ;;  %6701 = vst [vmem:[#allocation68_spill] sm:$0xff] %v2924_v20  ;;  %v133_v8 = vadd.f32 %v132_v54, %v2898_v28  ;;  %v165_v30 = vadd.f32 %v164_v46, %v2902_v52  ;;  %v6702_v31 = vrot.slane %v2807_v51, 2  ;;  %v2971_v21 = vld [vmem:[#allocation5 + $0xe0] sm:$0xff]  ;;  %v2980_v15 = vld [vmem:[#allocation5 + $0xf8] sm:$0xff] }
  0x45   :  { %6695 = vst [vmem:[#allocation66_spill] sm:$0xff] %v2910_v56  ;;  %6705 = vst [vmem:[#allocation70_spill] sm:$0xff] %v2936_v48  ;;  %v6708_v36 = vrot.slane %v2817_v58, 2  ;;  %v6710_v46 = vrot.slane %v2832_v12, 2  ;;  %v151_v33 = vadd.f32 %v150_v61, %v2936_v48  ;;  %v2975_v61 = vld [vmem:[#allocation5 + $0xf0] sm:$0xff]  ;;  %v242_v17 = vrot.slane %v2902_v52, 2 }
  0x46   :  { %v2934_v16 = vsel %vm210_vm0, %v6703_v57, %v6702_v31  ;;  %v134_v37 = vadd.f32 %v133_v8, %v118_v60  ;;  %6715 = vst [vmem:[#allocation76_spill] sm:$0xff] %v2963_v29  ;;  %6716 = vst [vmem:[#allocation77_spill] sm:$0xff] %v2965_v22  ;;  %v239_v57 = vrot.slane %v2880_v40, 2  ;;  %v241_v31 = vrot.slane %v2900_v14, 2  ;;  %v2973_v8 = vld [vmem:[#allocation5 + $0xe8] sm:$0xff] }
  0x47   :  { %6704 = vst [vmem:[#allocation69_spill] sm:$0xff] %v2934_v16  ;;  %v2945_v54 = vsel %vm210_vm0, %v6708_v36, %v6707_v24  ;;  %v2952_v49 = vsel %vm210_vm0, %v6711_v55, %v6710_v46  ;;  %v166_v24 = vadd.f32 %v165_v30, %v2938_v53  ;;  %v235_v36 = vrot.slane %v2862_v62, 2  ;;  %6717 = vst [vmem:[#allocation78_spill] sm:$0xff] %v2971_v21 }
  0x48   :  { %6709 = vst [vmem:[#allocation72_spill] sm:$0xff] %v2945_v54  ;;  %6712 = vst [vmem:[#allocation73_spill] sm:$0xff] %v2952_v49  ;;  %v236_v46 = vrot.slane %v2864_v63, 2  ;;  %v238_v55 = vrot.slane %v2878_v32, 2  ;;  %v135_v60 = vrot.slane %v134_v37, 4  ;;  %v152_v30 = vadd.f32 %v151_v33, %v2956_v45 }
  0x49   :  { %6718 = vst [vmem:[#allocation79_spill] sm:$0xff] %v2973_v8  ;;  %6719 = vst [vmem:[#allocation80_spill] sm:$0xff] %v2975_v61  ;;  %v167_v19 = vadd.f32 %v166_v24, %v2958_v41  ;;  %v244_v49 = vrot.slane %v2936_v48, 2  ;;  %v245_v13 = vrot.slane %v2938_v53, 2  ;;  %v247_v11 = vrot.slane %v2956_v45, 2 }
  0x4a   :  { %6720 = vst [vmem:[#allocation81_spill] sm:$0xff] %v2980_v15  ;;  %v248_v54 = vrot.slane %v2958_v41, 2  ;;  %v136_v9 = vadd.f32 %v135_v60, %v134_v37  ;;  %v153_v7 = vadd.f32 %v152_v30, %v2963_v29  ;;  %v250_v33 = vrot.slane %v2963_v29, 2 }
  0x4b   :  { %v168_v16 = vadd.f32 %v167_v19, %v2965_v22  ;;  %v251_v24 = vrot.slane %v2965_v22, 2  ;;  %v253_v5 = vrot.slane %v2971_v21, 2  ;;  %v254_v3 = vrot.slane %v2973_v8, 2 }
  0x4c   :  { %v256_v20 = vrot.slane %v2975_v61, 2  ;;  %v137_v1 = vrot.slane %v136_v9, 2  ;;  %v154_v2 = vadd.f32 %v153_v7, %v2971_v21  ;;  %v257_v60 = vrot.slane %v2980_v15, 2 }
  0x4d   :  { %v169_v37 = vadd.f32 %v168_v16, %v2973_v8  ;;  %v6721_v19 = vrot.slane %v2848_v39, 2  ;;  %v6722_v30 = vrot.slane %v2846_v38, 2  ;;  %v3004_v0 = vsel %vm210_vm0, %v235_v36, %v236_v46 }
  0x4e   :  { %6724 = vst [vmem:[#allocation83_spill] sm:$0xff] %v3004_v0  ;;  %v3007_v28 = vsel %vm210_vm0, %v238_v55, %v239_v57  ;;  %v3010_v56 = vsel %vm210_vm0, %v241_v31, %v242_v17  ;;  %v155_v7 = vadd.f32 %v154_v2, %v2975_v61  ;;  %v3015_v44 = vsel %vm210_vm0, %v244_v49, %v245_v13 }
  0x4f   :  { %v3001_v6 = vsel %vm210_vm0, %v6722_v30, %v6721_v19  ;;  %6725 = vst [vmem:[#allocation84_spill] sm:$0xff] %v3007_v28  ;;  %6726 = vst [vmem:[#allocation85_spill] sm:$0xff] %v3010_v56  ;;  %v170_v16 = vadd.f32 %v169_v37, %v2980_v15  ;;  %v3018_v47 = vsel %vm210_vm0, %v247_v11, %v248_v54  ;;  %v6731_v28 = vrot.slane %v2762_v23, 2 }
  0x50   :  { %6723 = vst [vmem:[#allocation82_spill] sm:$0xff] %v3001_v6  ;;  %6727 = vst [vmem:[#allocation86_spill] sm:$0xff] %v3015_v44  ;;  %v138_v19 = vadd.f32 %v137_v1, %v136_v9  ;;  %v3021_v30 = vsel %vm210_vm0, %v250_v33, %v251_v24  ;;  %v3024_v0 = vsel %vm210_vm0, %v253_v5, %v254_v3  ;;  %v6732_v56 = vrot.slane %v2765_v25, 2 }
  0x51   :  { %6728 = vst [vmem:[#allocation87_spill] sm:$0xff] %v3018_v47  ;;  %6729 = vst [vmem:[#allocation88_spill] sm:$0xff] %v3021_v30  ;;  %v171_v37 = vadd.f32 %v170_v16, %v155_v7  ;;  %v3034_v44 = vsel %vm210_vm0, %v256_v20, %v257_v60  ;;  %v6735_v47 = vrot.slane %v2767_v26, 2  ;;  %v6736_v1 = vrot.slane %v2769_v27, 2 }
  0x52   :  { %6730 = vst [vmem:[#allocation89_spill] sm:$0xff] %v3024_v0  ;;  %v3031_v2 = vsel %vm210_vm0, %v6732_v56, %v6731_v28  ;;  %6734 = vst [vmem:[#allocation91_spill] sm:$0xff] %v3034_v44  ;;  %v6738_v0 = vrot.slane %v2781_v34, 2  ;;  %v6739_v30 = vrot.slane %v2783_v35, 2  ;;  %v6741_v28 = vrot.slane %v2793_v42, 2 }
  0x53   :  { %6733 = vst [vmem:[#allocation90_spill] sm:$0xff] %v3031_v2  ;;  %v3041_v9 = vsel %vm210_vm0, %v6736_v1, %v6735_v47  ;;  %v6742_v56 = vrot.slane %v2795_v43, 2  ;;  %v6744_v16 = vrot.slane %v2805_v50, 2  ;;  %v6745_v44 = vrot.slane %v2807_v51, 2 }
  0x54   :  { %6737 = vst [vmem:[#allocation92_spill] sm:$0xff] %v3041_v9  ;;  %v3048_v6 = vsel %vm210_vm0, %v6739_v30, %v6738_v0  ;;  %v6747_v1 = vrot.slane %v2817_v58, 2  ;;  %v6748_v9 = vrot.slane %v2819_v59, 2  ;;  %v6750_v30 = vrot.slane %v2830_v10, 2 }
  0x55   :  { %6740 = vst [vmem:[#allocation93_spill] sm:$0xff] %v3048_v6  ;;  %v3055_v7 = vsel %vm210_vm0, %v6742_v56, %v6741_v28  ;;  %v3062_v47 = vsel %vm210_vm0, %v6745_v44, %v6744_v16  ;;  %v6751_v6 = vrot.slane %v2832_v12, 2  ;;  %v172_v56 = vrot.slane %v171_v37, 4 }
  0x56   :  { %6743 = vst [vmem:[#allocation94_spill] sm:$0xff] %v3055_v7  ;;  %6746 = vst [vmem:[#allocation95_spill] sm:$0xff] %v3062_v47  ;;  %v3069_v0 = vsel %vm210_vm0, %v6748_v9, %v6747_v1  ;;  %v139_v47 = vrot.slane %v138_v19, 1  ;;  %v6753_v2 = vrot.slane %v2846_v38, 2  ;;  %v6754_v9 = vrot.slane %v2848_v39, 2 }
  0x57   :  { %6749 = vst [vmem:[#allocation96_spill] sm:$0xff] %v3069_v0  ;;  %v3076_v28 = vsel %vm210_vm0, %v6751_v6, %v6750_v30  ;;  %v330_v0 = vrot.slane %v2781_v34, 1  ;;  %v331_v6 = vrot.slane %v2783_v35, 1  ;;  %v173_v30 = vadd.f32 %v172_v56, %v171_v37 }
  0x58   :  { %6752 = vst [vmem:[#allocation97_spill] sm:$0xff] %v3076_v28  ;;  %v3086_v1 = vsel %vm210_vm0, %v6754_v9, %v6753_v2  ;;  %v3091_v28 = vsel %vm210_vm0, %v236_v46, %v235_v36  ;;  %v3094_v44 = vsel %vm210_vm0, %v239_v57, %v238_v55  ;;  %v3097_v16 = vsel %vm210_vm0, %v242_v17, %v241_v31 }
  0x59   :  { %6755 = vst [vmem:[#allocation98_spill] sm:$0xff] %v3086_v1  ;;  %6756 = vst [vmem:[#allocation99_spill] sm:$0xff] %v3091_v28  ;;  %v3100_v7 = vsel %vm210_vm0, %v245_v13, %v244_v49  ;;  %v3103_v2 = vsel %vm210_vm0, %v248_v54, %v247_v11  ;;  %v3106_v9 = vsel %vm210_vm0, %v251_v24, %v250_v33  ;;  %v174_v36 = vrot.slane %v173_v30, 2 }
  0x5a   :  { %6757 = vst [vmem:[#allocation100_spill] sm:$0xff] %v3094_v44  ;;  %6758 = vst [vmem:[#allocation101_spill] sm:$0xff] %v3097_v16  ;;  %v3109_v37 = vsel %vm210_vm0, %v254_v3, %v253_v5  ;;  %v3112_v46 = vsel %vm210_vm0, %v257_v60, %v256_v20  ;;  %v6764_v57 = vrot.slane %v2765_v25, 1  ;;  %v6765_v17 = vrot.slane %v2762_v23, 1 }
  0x5b   :  { %6759 = vst [vmem:[#allocation102_spill] sm:$0xff] %v3100_v7  ;;  %6760 = vst [vmem:[#allocation103_spill] sm:$0xff] %v3103_v2  ;;  %v6767_v11 = vrot.slane %v2769_v27, 1  ;;  %v6768_v49 = vrot.slane %v2767_v26, 1  ;;  %v3128_v3 = vadd.f32 %v139_v47, %v138_v19  ;;  %v3131_v5 = vsel %vm323_vm1, %v330_v0, %v331_v6 }
  0x5c   :  { %6761 = vst [vmem:[#allocation104_spill] sm:$0xff] %v3106_v9  ;;  %6762 = vst [vmem:[#allocation105_spill] sm:$0xff] %v3109_v37  ;;  %v3119_v13 = vsel %vm323_vm1, %v6765_v17, %v6764_v57  ;;  %v333_v20 = vrot.slane %v2793_v42, 1  ;;  %v334_v31 = vrot.slane %v2795_v43, 1  ;;  %v175_v55 = vadd.f32 %v174_v36, %v173_v30 }
  0x5d   :  { %6763 = vst [vmem:[#allocation106_spill] sm:$0xff] %v3112_v46  ;;  %6766 = vst [vmem:[#allocation107_spill] sm:$0xff] %v3119_v13  ;;  %v3126_v54 = vsel %vm323_vm1, %v6768_v49, %v6767_v11  ;;  %v336_v33 = vrot.slane %v2805_v50, 1  ;;  %v337_v24 = vrot.slane %v2807_v51, 1  ;;  %v339_v60 = vrot.slane %v2817_v58, 1 }
  0x5e   :  { %6769 = vst [vmem:[#allocation108_spill] sm:$0xff] %v3126_v54  ;;  %6770 = vst [vmem:[#allocation109_spill] sm:$0xff] %v3128_v3  ;;  %v340_v56 = vrot.slane %v2819_v59, 1  ;;  %v342_v57 = vrot.slane %v2830_v10, 1  ;;  %v343_v19 = vrot.slane %v2832_v12, 1  ;;  %v345_v47 = vrot.slane %v2846_v38, 1 }
  0x5f   :  { %6771 = vst [vmem:[#allocation110_spill] sm:$0xff] %v3131_v5  ;;  %v346_v17 = vrot.slane %v2848_v39, 1  ;;  %v348_v11 = vrot.slane %v2862_v62, 1  ;;  %v349_v30 = vrot.slane %v2864_v63, 1  ;;  %v351_v36 = vrot.slane %v2878_v32, 1 }
  0x60   :  { %v352_v49 = vrot.slane %v2880_v40, 1  ;;  %v354_v3 = vrot.slane %v2900_v14, 1  ;;  %v355_v5 = vrot.slane %v2902_v52, 1  ;;  %v357_v54 = vrot.slane %v2936_v48, 1 }
  0x61   :  { %v176_v13 = vrot.slane %v175_v55, 1  ;;  %v358_v46 = vrot.slane %v2938_v53, 1  ;;  %v360_v37 = vrot.slane %v2956_v45, 1  ;;  %v361_v9 = vrot.slane %v2958_v41, 1 }
  0x62   :  { %v363_v2 = vrot.slane %v2963_v29, 1  ;;  %v364_v7 = vrot.slane %v2965_v22, 1  ;;  %v366_v16 = vrot.slane %v2971_v21, 1  ;;  %v367_v44 = vrot.slane %v2973_v8, 1 }
  0x63   :  { %v3158_v28 = vsel %vm323_vm1, %v333_v20, %v334_v31  ;;  %v3161_v1 = vsel %vm323_vm1, %v336_v33, %v337_v24  ;;  %v369_v4 = vrot.slane %v2975_v61, 1  ;;  %v370_v18 = vrot.slane %v2980_v15, 1 }
  0x64   :  { %6772 = vst [vmem:[#allocation111_spill] sm:$0xff] %v3158_v28  ;;  %6773 = vst [vmem:[#allocation112_spill] sm:$0xff] %v3161_v1  ;;  %v3166_v45 = vsel %vm323_vm1, %v339_v60, %v340_v56  ;;  %v3169_v29 = vsel %vm323_vm1, %v342_v57, %v343_v19  ;;  %v3172_v21 = vsel %vm323_vm1, %v345_v47, %v346_v17 }
  0x65   :  { %6774 = vst [vmem:[#allocation113_spill] sm:$0xff] %v3166_v45  ;;  %6775 = vst [vmem:[#allocation114_spill] sm:$0xff] %v3169_v29  ;;  %v3175_v48 = vsel %vm323_vm1, %v348_v11, %v349_v30  ;;  %v3178_v28 = vsel %vm323_vm1, %v351_v36, %v352_v49  ;;  %v3181_v1 = vsel %vm323_vm1, %v354_v3, %v355_v5 }
  0x66   :  { %6776 = vst [vmem:[#allocation115_spill] sm:$0xff] %v3172_v21  ;;  %6777 = vst [vmem:[#allocation116_spill] sm:$0xff] %v3175_v48  ;;  %v3184_v61 = vsel %vm323_vm1, %v357_v54, %v358_v46  ;;  %v3187_v45 = vsel %vm323_vm1, %v360_v37, %v361_v9  ;;  %v3189_v14 = vadd.f32 %v176_v13, %v175_v55  ;;  %v6785_v48 = vrot.slane %v2762_v23, 1 }
  0x67   :  { %6778 = vst [vmem:[#allocation117_spill] sm:$0xff] %v3178_v28  ;;  %6779 = vst [vmem:[#allocation118_spill] sm:$0xff] %v3181_v1  ;;  %v3192_v29 = vsel %vm323_vm1, %v363_v2, %v364_v7  ;;  %v3195_v21 = vsel %vm323_vm1, %v366_v16, %v367_v44  ;;  %v6786_v28 = vrot.slane %v2765_v25, 1  ;;  %v6789_v13 = vrot.slane %v2767_v26, 1 }
  0x68   :  { %6780 = vst [vmem:[#allocation119_spill] sm:$0xff] %v3184_v61  ;;  %6781 = vst [vmem:[#allocation120_spill] sm:$0xff] %v3187_v45  ;;  %v3205_v61 = vsel %vm323_vm1, %v369_v4, %v370_v18  ;;  %v6790_v55 = vrot.slane %v2769_v27, 1  ;;  %v3230_v45 = vsel %vm323_vm1, %v346_v17, %v345_v47  ;;  %v451_v47 = vrot.slane %v2980_v15, 7 }
  0x69   :  { %6782 = vst [vmem:[#allocation121_spill] sm:$0xff] %v3189_v14  ;;  %6783 = vst [vmem:[#allocation122_spill] sm:$0xff] %v3192_v29  ;;  %v3202_v1 = vsel %vm323_vm1, %v6786_v28, %v6785_v48  ;;  %v3218_v29 = vsel %vm323_vm1, %v334_v31, %v333_v20  ;;  %v3221_v48 = vsel %vm323_vm1, %v337_v24, %v336_v33  ;;  %v471_v17 = vrot.slane %v2767_v26, 7 }
  0x6a   :  { %6784 = vst [vmem:[#allocation123_spill] sm:$0xff] %v3195_v21  ;;  %6787 = vst [vmem:[#allocation124_spill] sm:$0xff] %v3202_v1  ;;  %v3212_v14 = vsel %vm323_vm1, %v6790_v55, %v6789_v13  ;;  %v3215_v21 = vsel %vm323_vm1, %v331_v6, %v330_v0  ;;  %v3224_v28 = vsel %vm323_vm1, %v340_v56, %v339_v60  ;;  %v436_v56 = vrot.slane %v2765_v25, 7  ;;  %v6813_v1 = vld [vmem:[#allocation80_spill] sm:$0xff] }
  0x6b   :  { %6788 = vst [vmem:[#allocation125_spill] sm:$0xff] %v3205_v61  ;;  %6791 = vst [vmem:[#allocation126_spill] sm:$0xff] %v3212_v14  ;;  %v3227_v61 = vsel %vm323_vm1, %v343_v19, %v342_v57  ;;  %v3233_v13 = vsel %vm323_vm1, %v349_v30, %v348_v11  ;;  %v3236_v0 = vsel %vm323_vm1, %v352_v49, %v351_v36  ;;  %v449_v57 = vrot.slane %v2965_v22, 7 }
  0x6c   :  { %6792 = vst [vmem:[#allocation127_spill] sm:$0xff] %v3215_v21  ;;  %6793 = vst [vmem:[#allocation128_spill] sm:$0xff] %v3218_v29  ;;  %v3239_v6 = vsel %vm323_vm1, %v355_v5, %v354_v3  ;;  %v3242_v20 = vsel %vm323_vm1, %v358_v46, %v357_v54  ;;  %v3245_v31 = vsel %vm323_vm1, %v361_v9, %v360_v37  ;;  %v437_v3 = vrot.slane %v2769_v27, 7  ;;  %v6812_v21 = vld [vmem:[#allocation78_spill] sm:$0xff] }
  0x6d   :  { %6794 = vst [vmem:[#allocation129_spill] sm:$0xff] %v3221_v48  ;;  %6795 = vst [vmem:[#allocation130_spill] sm:$0xff] %v3224_v28  ;;  %v3248_v33 = vsel %vm323_vm1, %v364_v7, %v363_v2  ;;  %v3251_v24 = vsel %vm323_vm1, %v367_v44, %v366_v16  ;;  %v3254_v60 = vsel %vm323_vm1, %v370_v18, %v369_v4  ;;  %v438_v5 = vrot.slane %v2783_v35, 7  ;;  %v6811_v48 = vld [vmem:[#allocation76_spill] sm:$0xff] }
  0x6e   :  { %6796 = vst [vmem:[#allocation131_spill] sm:$0xff] %v3227_v61  ;;  %6797 = vst [vmem:[#allocation132_spill] sm:$0xff] %v3230_v45  ;;  %v439_v46 = vrot.slane %v2795_v43, 7  ;;  %v440_v9 = vrot.slane %v2807_v51, 7  ;;  %v441_v37 = vrot.slane %v2819_v59, 7  ;;  %v442_v7 = vrot.slane %v2832_v12, 7 }
  0x6f   :  { %6798 = vst [vmem:[#allocation133_spill] sm:$0xff] %v3233_v13  ;;  %6799 = vst [vmem:[#allocation134_spill] sm:$0xff] %v3236_v0  ;;  %v443_v44 = vrot.slane %v2848_v39, 7  ;;  %v444_v16 = vrot.slane %v2864_v63, 7  ;;  %v445_v18 = vrot.slane %v2880_v40, 7  ;;  %v446_v4 = vrot.slane %v2902_v52, 7 }
  0x70   :  { %6800 = vst [vmem:[#allocation135_spill] sm:$0xff] %v3239_v6  ;;  %6801 = vst [vmem:[#allocation136_spill] sm:$0xff] %v3242_v20  ;;  %v447_v2 = vrot.slane %v2938_v53, 7  ;;  %v448_v54 = vrot.slane %v2958_v41, 7  ;;  %v450_v19 = vrot.slane %v2973_v8, 7  ;;  %v473_v11 = vrot.slane %v2781_v34, 7 }
  0x71   :  { %6802 = vst [vmem:[#allocation137_spill] sm:$0xff] %v3245_v31  ;;  %6803 = vst [vmem:[#allocation138_spill] sm:$0xff] %v3248_v33  ;;  %v475_v30 = vrot.slane %v2793_v42, 7  ;;  %v477_v36 = vrot.slane %v2805_v50, 7  ;;  %v479_v49 = vrot.slane %v2817_v58, 7  ;;  %v481_v55 = vrot.slane %v2830_v10, 7 }
  0x72   :  { %6804 = vst [vmem:[#allocation139_spill] sm:$0xff] %v3251_v24  ;;  %6805 = vst [vmem:[#allocation140_spill] sm:$0xff] %v3254_v60  ;;  %v483_v60 = vrot.slane %v2846_v38, 7  ;;  %v485_v24 = vrot.slane %v2862_v62, 7  ;;  %v6806_v33 = vrot.slane %v2762_v23, 7  ;;  %v487_v20 = vrot.slane %v2878_v32, 7 }
  0x73   :  { %v6808_v6 = vld [vmem:[#allocation64_spill] sm:$0xff]  ;;  %v6809_v13 = vld [vmem:[#allocation70_spill] sm:$0xff]  ;;  %v495_v29 = vrot.slane %v6811_v48, 7  ;;  %v497_v14 = vrot.slane %v6812_v21, 7  ;;  %v499_v38 = vrot.slane %v6813_v1, 7  ;;  %v3293_v62 = vsel %vm468_vm2, %v471_v17, %v437_v3 }
  0x74   :  { %v3283_v31 = vsel %vm468_vm2, %v6806_v33, %v436_v56  ;;  %v489_v0 = vrot.slane %v6808_v6, 7  ;;  %v491_v45 = vrot.slane %v6809_v13, 7  ;;  %v6810_v61 = vld [vmem:[#allocation74_spill] sm:$0xff]  ;;  %6814 = vst [vmem:[#allocation142_spill] sm:$0xff] %v3293_v62  ;;  %v3296_v33 = vsel %vm468_vm2, %v473_v11, %v438_v5 }
  0x75   :  { %6807 = vst [vmem:[#allocation141_spill] sm:$0xff] %v3283_v31  ;;  %v493_v28 = vrot.slane %v6810_v61, 7  ;;  %6815 = vst [vmem:[#allocation143_spill] sm:$0xff] %v3296_v33  ;;  %v3299_v31 = vsel %vm468_vm2, %v475_v30, %v439_v46  ;;  %v3302_v6 = vsel %vm468_vm2, %v477_v36, %v440_v9  ;;  %v3305_v61 = vsel %vm468_vm2, %v479_v49, %v441_v37 }
  0x76   :  { %6816 = vst [vmem:[#allocation144_spill] sm:$0xff] %v3299_v31  ;;  %6817 = vst [vmem:[#allocation145_spill] sm:$0xff] %v3302_v6  ;;  %v3308_v48 = vsel %vm468_vm2, %v481_v55, %v442_v7  ;;  %v3311_v1 = vsel %vm468_vm2, %v483_v60, %v443_v44  ;;  %v3314_v62 = vsel %vm468_vm2, %v485_v24, %v444_v16 }
  0x77   :  { %6818 = vst [vmem:[#allocation146_spill] sm:$0xff] %v3305_v61  ;;  %6819 = vst [vmem:[#allocation147_spill] sm:$0xff] %v3308_v48  ;;  %v3317_v33 = vsel %vm468_vm2, %v487_v20, %v445_v18  ;;  %v3320_v31 = vsel %vm468_vm2, %v489_v0, %v446_v4  ;;  %v3323_v6 = vsel %vm468_vm2, %v491_v45, %v447_v2  ;;  %v6825_v61 = vrot.slane %v2762_v23, 7 }
  0x78   :  { %6820 = vst [vmem:[#allocation148_spill] sm:$0xff] %v3311_v1  ;;  %6821 = vst [vmem:[#allocation149_spill] sm:$0xff] %v3314_v62  ;;  %v3331_v48 = vsel %vm468_vm2, %v493_v28, %v448_v54  ;;  %v3334_v1 = vsel %vm468_vm2, %v495_v29, %v449_v57  ;;  %v3337_v62 = vsel %vm468_vm2, %v497_v14, %v450_v19 }
  0x79   :  { %6822 = vst [vmem:[#allocation150_spill] sm:$0xff] %v3317_v33  ;;  %6823 = vst [vmem:[#allocation151_spill] sm:$0xff] %v3320_v31  ;;  %v3328_v21 = vsel %vm468_vm2, %v436_v56, %v6825_v61  ;;  %v3340_v33 = vsel %vm468_vm2, %v499_v38, %v451_v47  ;;  %v3343_v31 = vsel %vm468_vm2, %v437_v3, %v471_v17  ;;  %v582_v17 = vrot.slane %v2762_v23, 6 }
  0x7a   :  { %6824 = vst [vmem:[#allocation152_spill] sm:$0xff] %v3323_v6  ;;  %6826 = vst [vmem:[#allocation153_spill] sm:$0xff] %v3328_v21  ;;  %v3346_v6 = vsel %vm468_vm2, %v438_v5, %v473_v11  ;;  %v3349_v61 = vsel %vm468_vm2, %v439_v46, %v475_v30  ;;  %v3352_v56 = vsel %vm468_vm2, %v440_v9, %v477_v36  ;;  %v584_v11 = vrot.slane %v2767_v26, 6  ;;  %v6853_v21 = vld [vmem:[#allocation80_spill] sm:$0xff] }
  0x7b   :  { %6827 = vst [vmem:[#allocation154_spill] sm:$0xff] %v3331_v48  ;;  %6828 = vst [vmem:[#allocation155_spill] sm:$0xff] %v3334_v1  ;;  %v3355_v1 = vsel %vm468_vm2, %v441_v37, %v479_v49  ;;  %v3364_v3 = vsel %vm468_vm2, %v444_v16, %v485_v24  ;;  %v3367_v5 = vsel %vm468_vm2, %v445_v18, %v487_v20  ;;  %v549_v20 = vrot.slane %v2765_v25, 6  ;;  %v6847_v48 = vld [vmem:[#allocation55_spill] sm:$0xff] }
  0x7c   :  { %6829 = vst [vmem:[#allocation156_spill] sm:$0xff] %v3337_v62  ;;  %6830 = vst [vmem:[#allocation157_spill] sm:$0xff] %v3340_v33  ;;  %v3358_v62 = vsel %vm468_vm2, %v442_v7, %v481_v55  ;;  %v3361_v33 = vsel %vm468_vm2, %v443_v44, %v483_v60  ;;  %v3370_v46 = vsel %vm468_vm2, %v446_v4, %v489_v0  ;;  %v550_v0 = vrot.slane %v2769_v27, 6 }
  0x7d   :  { %6831 = vst [vmem:[#allocation158_spill] sm:$0xff] %v3343_v31  ;;  %6832 = vst [vmem:[#allocation159_spill] sm:$0xff] %v3346_v6  ;;  %v3373_v9 = vsel %vm468_vm2, %v447_v2, %v491_v45  ;;  %v3376_v37 = vsel %vm468_vm2, %v448_v54, %v493_v28  ;;  %v3379_v7 = vsel %vm468_vm2, %v449_v57, %v495_v29  ;;  %v551_v44 = vrot.slane %v2783_v35, 6  ;;  %v6852_v6 = vld [vmem:[#allocation78_spill] sm:$0xff] }
  0x7e   :  { %6833 = vst [vmem:[#allocation160_spill] sm:$0xff] %v3349_v61  ;;  %6834 = vst [vmem:[#allocation161_spill] sm:$0xff] %v3352_v56  ;;  %v3382_v60 = vsel %vm468_vm2, %v450_v19, %v497_v14  ;;  %v3385_v24 = vsel %vm468_vm2, %v451_v47, %v499_v38  ;;  %v552_v45 = vrot.slane %v2795_v43, 6  ;;  %v553_v28 = vrot.slane %v2807_v51, 6  ;;  %v6851_v56 = vld [vmem:[#allocation76_spill] sm:$0xff]  ;;  %v6935_v51 = vld [vmem:[#allocation87_spill] sm:$0xff] }
  0x7f   :  { %6835 = vst [vmem:[#allocation162_spill] sm:$0xff] %v3355_v1  ;;  %6836 = vst [vmem:[#allocation163_spill] sm:$0xff] %v3358_v62  ;;  %v554_v16 = vrot.slane %v2819_v59, 6  ;;  %v555_v29 = vrot.slane %v2832_v12, 6  ;;  %v556_v14 = vrot.slane %v2848_v39, 6  ;;  %v557_v18 = vrot.slane %v2864_v63, 6 }
  0x80   :  { %6837 = vst [vmem:[#allocation164_spill] sm:$0xff] %v3361_v33  ;;  %6838 = vst [vmem:[#allocation165_spill] sm:$0xff] %v3364_v3  ;;  %v558_v38 = vrot.slane %v2880_v40, 6  ;;  %v559_v4 = vrot.slane %v2902_v52, 6  ;;  %v560_v2 = vrot.slane %v2938_v53, 6  ;;  %v561_v54 = vrot.slane %v2958_v41, 6 }
  0x81   :  { %6839 = vst [vmem:[#allocation166_spill] sm:$0xff] %v3367_v5  ;;  %6840 = vst [vmem:[#allocation167_spill] sm:$0xff] %v3370_v46  ;;  %v562_v57 = vrot.slane %v2965_v22, 6  ;;  %v563_v19 = vrot.slane %v2973_v8, 6  ;;  %v564_v47 = vrot.slane %v2980_v15, 6  ;;  %v586_v30 = vrot.slane %v2781_v34, 6 }
  0x82   :  { %6841 = vst [vmem:[#allocation168_spill] sm:$0xff] %v3373_v9  ;;  %6842 = vst [vmem:[#allocation169_spill] sm:$0xff] %v3376_v37  ;;  %v588_v36 = vrot.slane %v2793_v42, 6  ;;  %v590_v49 = vrot.slane %v2805_v50, 6  ;;  %v592_v55 = vrot.slane %v2817_v58, 6  ;;  %v598_v37 = vrot.slane %v6847_v48, 6 }
  0x83   :  { %6843 = vst [vmem:[#allocation170_spill] sm:$0xff] %v3379_v7  ;;  %6844 = vst [vmem:[#allocation171_spill] sm:$0xff] %v3382_v60  ;;  %v6846_v60 = vld [vmem:[#allocation51_spill] sm:$0xff]  ;;  %v600_v9 = vrot.slane %v2878_v32, 6  ;;  %v6848_v46 = vld [vmem:[#allocation64_spill] sm:$0xff]  ;;  %v604_v3 = vrot.slane %v6809_v13, 6  ;;  %v3417_v1 = vsel %vm581_vm3, %v582_v17, %v549_v20  ;;  %v3423_v8 = vsel %vm581_vm3, %v584_v11, %v550_v0 }
  0x84   :  { %6845 = vst [vmem:[#allocation172_spill] sm:$0xff] %v3385_v24  ;;  %v594_v24 = vrot.slane %v2830_v10, 6  ;;  %v596_v7 = vrot.slane %v6846_v60, 6  ;;  %v602_v5 = vrot.slane %v6848_v46, 6  ;;  %v6849_v33 = vld [vmem:[#allocation74_spill] sm:$0xff]  ;;  %6850 = vst [vmem:[#allocation173_spill] sm:$0xff] %v3417_v1  ;;  %v3426_v22 = vsel %vm581_vm3, %v586_v30, %v551_v44 }
  0x85   :  { %v606_v62 = vrot.slane %v6849_v33, 6  ;;  %v608_v61 = vrot.slane %v6851_v56, 6  ;;  %v610_v31 = vrot.slane %v6852_v6, 6  ;;  %v612_v15 = vrot.slane %v6853_v21, 6  ;;  %6854 = vst [vmem:[#allocation174_spill] sm:$0xff] %v3423_v8  ;;  %6855 = vst [vmem:[#allocation175_spill] sm:$0xff] %v3426_v22 }
  0x86   :  { %v3429_v41 = vsel %vm581_vm3, %v588_v36, %v552_v45  ;;  %v3432_v33 = vsel %vm581_vm3, %v590_v49, %v553_v28  ;;  %v3435_v1 = vsel %vm581_vm3, %v592_v55, %v554_v16  ;;  %v3438_v56 = vsel %vm581_vm3, %v594_v24, %v555_v29  ;;  %v6916_v6 = vld [vmem:[#allocation98_spill] sm:$0xff]  ;;  %v6917_v53 = vld [vmem:[#allocation23_spill] sm:$0xff]  ;;  %v6919_v52 = vld [vmem:[#allocation24_spill] sm:$0xff] }
  0x87   :  { %6856 = vst [vmem:[#allocation176_spill] sm:$0xff] %v3429_v41  ;;  %6857 = vst [vmem:[#allocation177_spill] sm:$0xff] %v3432_v33  ;;  %v3441_v21 = vsel %vm581_vm3, %v596_v7, %v556_v14  ;;  %v3444_v8 = vsel %vm581_vm3, %v598_v37, %v557_v18  ;;  %v3447_v22 = vsel %vm581_vm3, %v600_v9, %v558_v38  ;;  %v6918_v13 = vld [vmem:[#allocation83_spill] sm:$0xff]  ;;  %v6921_v40 = vld [vmem:[#allocation29_spill] sm:$0xff] }
  0x88   :  { %6858 = vst [vmem:[#allocation178_spill] sm:$0xff] %v3435_v1  ;;  %6859 = vst [vmem:[#allocation179_spill] sm:$0xff] %v3438_v56  ;;  %v3450_v41 = vsel %vm581_vm3, %v602_v5, %v559_v4  ;;  %v3453_v33 = vsel %vm581_vm3, %v604_v3, %v560_v2  ;;  %v3456_v1 = vsel %vm581_vm3, %v606_v62, %v561_v54  ;;  %v6920_v46 = vld [vmem:[#allocation99_spill] sm:$0xff]  ;;  %v6922_v32 = vld [vmem:[#allocation84_spill] sm:$0xff] }
  0x89   :  { %6860 = vst [vmem:[#allocation180_spill] sm:$0xff] %v3441_v21  ;;  %6861 = vst [vmem:[#allocation181_spill] sm:$0xff] %v3444_v8  ;;  %v3459_v56 = vsel %vm581_vm3, %v608_v61, %v562_v57  ;;  %v3462_v21 = vsel %vm581_vm3, %v610_v31, %v563_v19  ;;  %v3465_v8 = vsel %vm581_vm3, %v612_v15, %v564_v47  ;;  %v6923_v63 = vld [vmem:[#allocation30_spill] sm:$0xff]  ;;  %v6924_v48 = vld [vmem:[#allocation100_spill] sm:$0xff] }
  0x8a   :  { %6862 = vst [vmem:[#allocation182_spill] sm:$0xff] %v3447_v22  ;;  %6863 = vst [vmem:[#allocation183_spill] sm:$0xff] %v3450_v41  ;;  %v3468_v22 = vsel %vm581_vm3, %v549_v20, %v582_v17  ;;  %v3471_v41 = vsel %vm581_vm3, %v550_v0, %v584_v11  ;;  %v3489_v20 = vsel %vm581_vm3, %v556_v14, %v596_v7  ;;  %v6884_v7 = vld [vmem:[#allocation58_spill] sm:$0xff]  ;;  %v6925_v39 = vld [vmem:[#allocation33_spill] sm:$0xff] }
  0x8b   :  { %6864 = vst [vmem:[#allocation184_spill] sm:$0xff] %v3453_v33  ;;  %6865 = vst [vmem:[#allocation185_spill] sm:$0xff] %v3456_v1  ;;  %v3474_v33 = vsel %vm581_vm3, %v551_v44, %v586_v30  ;;  %v3477_v1 = vsel %vm581_vm3, %v552_v45, %v588_v36  ;;  %v3492_v0 = vsel %vm581_vm3, %v557_v18, %v598_v37  ;;  %v6885_v14 = vld [vmem:[#allocation90_spill] sm:$0xff]  ;;  %v6886_v37 = vld [vmem:[#allocation61_spill] sm:$0xff] }
  0x8c   :  { %6866 = vst [vmem:[#allocation186_spill] sm:$0xff] %v3459_v56  ;;  %6867 = vst [vmem:[#allocation187_spill] sm:$0xff] %v3462_v21  ;;  %v3480_v56 = vsel %vm581_vm3, %v553_v28, %v590_v49  ;;  %v3483_v21 = vsel %vm581_vm3, %v554_v16, %v592_v55  ;;  %v3495_v44 = vsel %vm581_vm3, %v558_v38, %v600_v9  ;;  %v6887_v18 = vld [vmem:[#allocation66_spill] sm:$0xff]  ;;  %v6888_v9 = vld [vmem:[#allocation63_spill] sm:$0xff] }
  0x8d   :  { %6868 = vst [vmem:[#allocation188_spill] sm:$0xff] %v3465_v8  ;;  %6869 = vst [vmem:[#allocation189_spill] sm:$0xff] %v3468_v22  ;;  %v3486_v8 = vsel %vm581_vm3, %v555_v29, %v594_v24  ;;  %v3498_v45 = vsel %vm581_vm3, %v559_v4, %v602_v5  ;;  %v3501_v28 = vsel %vm581_vm3, %v560_v2, %v604_v3  ;;  %v6882_v24 = vld [vmem:[#allocation57_spill] sm:$0xff]  ;;  %v6883_v29 = vld [vmem:[#allocation62_spill] sm:$0xff] }
  0x8e   :  { %6870 = vst [vmem:[#allocation190_spill] sm:$0xff] %v3471_v41  ;;  %6871 = vst [vmem:[#allocation191_spill] sm:$0xff] %v3474_v33  ;;  %v3504_v16 = vsel %vm581_vm3, %v561_v54, %v606_v62  ;;  %v662_v17 = vmul.f32 %v6883_v29, %v6882_v24  ;;  %v663_v11 = vmul.f32 %v6885_v14, %v6884_v7  ;;  %v6889_v38 = vld [vmem:[#allocation92_spill] sm:$0xff]  ;;  %v6893_v4 = vld [vmem:[#allocation11_spill] sm:$0xff] }
  0x8f   :  { %6872 = vst [vmem:[#allocation192_spill] sm:$0xff] %v3477_v1  ;;  %6873 = vst [vmem:[#allocation193_spill] sm:$0xff] %v3480_v56  ;;  %v664_v30 = vmul.f32 %v6887_v18, %v6886_v37  ;;  %v665_v36 = vmul.f32 %v6889_v38, %v6888_v9  ;;  %v3515_v5 = vsel %vm581_vm3, %v562_v57, %v608_v61  ;;  %v6894_v2 = vld [vmem:[#allocation67_spill] sm:$0xff]  ;;  %v6895_v49 = vld [vmem:[#allocation13_spill] sm:$0xff] }
  0x90   :  { %6874 = vst [vmem:[#allocation194_spill] sm:$0xff] %v3483_v21  ;;  %6875 = vst [vmem:[#allocation195_spill] sm:$0xff] %v3486_v8  ;;  %v3518_v3 = vsel %vm581_vm3, %v563_v19, %v610_v31  ;;  %v3521_v62 = vsel %vm581_vm3, %v564_v47, %v612_v15  ;;  %v666_v54 = vmul.f32 %v6894_v2, %v6893_v4  ;;  %v6896_v55 = vld [vmem:[#allocation93_spill] sm:$0xff]  ;;  %v6897_v29 = vld [vmem:[#allocation12_spill] sm:$0xff] }
  0x91   :  { %6876 = vst [vmem:[#allocation196_spill] sm:$0xff] %v3489_v20  ;;  %6877 = vst [vmem:[#allocation197_spill] sm:$0xff] %v3492_v0  ;;  %v667_v14 = vmul.f32 %v6896_v55, %v6895_v49  ;;  %v6898_v18 = vld [vmem:[#allocation68_spill] sm:$0xff]  ;;  %v6900_v38 = vld [vmem:[#allocation94_spill] sm:$0xff]  ;;  %v694_v41 = vadd.f32 %v664_v30, %v662_v17 }
  0x92   :  { %6878 = vst [vmem:[#allocation198_spill] sm:$0xff] %v3495_v44  ;;  %6879 = vst [vmem:[#allocation199_spill] sm:$0xff] %v3498_v45  ;;  %v6901_v61 = vld [vmem:[#allocation15_spill] sm:$0xff]  ;;  %v6902_v57 = vld [vmem:[#allocation69_spill] sm:$0xff] }
  0x93   :  { %6880 = vst [vmem:[#allocation200_spill] sm:$0xff] %v3501_v28  ;;  %6881 = vst [vmem:[#allocation201_spill] sm:$0xff] %v3504_v16  ;;  %v668_v16 = vmul.f32 %v6898_v18, %v6897_v29  ;;  %v6899_v28 = vld [vmem:[#allocation14_spill] sm:$0xff]  ;;  %v6903_v31 = vld [vmem:[#allocation16_spill] sm:$0xff]  ;;  %v695_v17 = vadd.f32 %v694_v41, %v666_v54 }
  0x94   :  { %6890 = vst [vmem:[#allocation202_spill] sm:$0xff] %v3515_v5  ;;  %6891 = vst [vmem:[#allocation203_spill] sm:$0xff] %v3518_v3  ;;  %v669_v45 = vmul.f32 %v6900_v38, %v6899_v28  ;;  %v670_v5 = vmul.f32 %v6902_v57, %v6901_v61  ;;  %v6904_v19 = vld [vmem:[#allocation95_spill] sm:$0xff]  ;;  %v6905_v15 = vld [vmem:[#allocation17_spill] sm:$0xff]  ;;  %v709_v57 = vadd.f32 %v665_v36, %v663_v11 }
  0x95   :  { %6892 = vst [vmem:[#allocation204_spill] sm:$0xff] %v3521_v62  ;;  %v671_v3 = vmul.f32 %v6904_v19, %v6903_v31  ;;  %v6906_v47 = vld [vmem:[#allocation72_spill] sm:$0xff]  ;;  %v6907_v44 = vld [vmem:[#allocation18_spill] sm:$0xff]  ;;  %v6909_v20 = vld [vmem:[#allocation19_spill] sm:$0xff] }
  0x96   :  { %v672_v62 = vmul.f32 %v6906_v47, %v6905_v15  ;;  %v6908_v2 = vld [vmem:[#allocation96_spill] sm:$0xff]  ;;  %v6910_v55 = vld [vmem:[#allocation73_spill] sm:$0xff]  ;;  %v6914_v38 = vld [vmem:[#allocation82_spill] sm:$0xff]  ;;  %v678_v47 = vmul.f32 %v6918_v13, %v6917_v53  ;;  %v710_v11 = vadd.f32 %v709_v57, %v667_v14  ;;  %v696_v57 = vadd.f32 %v695_v17, %v668_v16 }
  0x97   :  { %v673_v0 = vmul.f32 %v6908_v2, %v6907_v44  ;;  %v674_v8 = vmul.f32 %v6910_v55, %v6909_v20  ;;  %v6911_v21 = vld [vmem:[#allocation20_spill] sm:$0xff]  ;;  %v6912_v18 = vld [vmem:[#allocation97_spill] sm:$0xff]  ;;  %v6915_v22 = vld [vmem:[#allocation22_spill] sm:$0xff]  ;;  %v679_v2 = vmul.f32 %v6920_v46, %v6919_v52  ;;  %v680_v55 = vmul.f32 %v6922_v32, %v6921_v40 }
  0x98   :  { %v675_v56 = vmul.f32 %v6912_v18, %v6911_v21  ;;  %v6913_v1 = vld [vmem:[#allocation21_spill] sm:$0xff]  ;;  %v677_v19 = vmul.f32 %v6916_v6, %v6915_v22  ;;  %v681_v18 = vmul.f32 %v6924_v48, %v6923_v63  ;;  %v6927_v30 = vld [vmem:[#allocation34_spill] sm:$0xff]  ;;  %v6941_v14 = vld [vmem:[#allocation88_spill] sm:$0xff] }
  0x99   :  { %v676_v33 = vmul.f32 %v6914_v38, %v6913_v1  ;;  %v6926_v60 = vld [vmem:[#allocation85_spill] sm:$0xff]  ;;  %v6930_v13 = vld [vmem:[#allocation86_spill] sm:$0xff]  ;;  %v6944_v42 = vld [vmem:[#allocation104_spill] sm:$0xff] }
  0x9a   :  { %v3557_v38 = vmul.f32 %v6926_v60, %v6925_v39  ;;  %v6928_v36 = vld [vmem:[#allocation101_spill] sm:$0xff]  ;;  %v6931_v46 = vld [vmem:[#allocation38_spill] sm:$0xff]  ;;  %v6938_v60 = vld [vmem:[#allocation103_spill] sm:$0xff] }
  0x9b   :  { %v683_v6 = vmul.f32 %v6928_v36, %v6927_v30  ;;  %v6929_v12 = vld [vmem:[#allocation37_spill] sm:$0xff]  ;;  %v6932_v59 = vld [vmem:[#allocation102_spill] sm:$0xff]  ;;  %v711_v36 = vadd.f32 %v710_v11, %v669_v45  ;;  %v697_v45 = vadd.f32 %v696_v57, %v670_v5  ;;  %v6958_v11 = vld [vmem:[#allocation107_spill] sm:$0xff] }
  0x9c   :  { %v3563_v10 = vmul.f32 %v6930_v13, %v6929_v12  ;;  %v3567_v58 = vmul.f32 %v6932_v59, %v6931_v46  ;;  %v6934_v32 = vld [vmem:[#allocation41_spill] sm:$0xff]  ;;  %v6937_v50 = vld [vmem:[#allocation42_spill] sm:$0xff]  ;;  %v6963_v5 = vld [vmem:[#allocation127_spill] sm:$0xff] }
  0x9d   :  { %v3571_v48 = vmul.f32 %v6935_v51, %v6934_v32  ;;  %v3575_v43 = vmul.f32 %v6938_v60, %v6937_v50  ;;  %v6940_v41 = vld [vmem:[#allocation45_spill] sm:$0xff]  ;;  %v6943_v13 = vld [vmem:[#allocation46_spill] sm:$0xff]  ;;  %v712_v17 = vadd.f32 %v711_v36, %v671_v3  ;;  %v736_v3 = vmul.f32 %v6963_v5, %v6895_v49  ;;  %v6964_v36 = vld [vmem:[#allocation111_spill] sm:$0xff] }
  0x9e   :  { %6933 = vst [vmem:[#allocation11_spill] sm:$0xff] %v3567_v58  ;;  %v3579_v54 = vmul.f32 %v6941_v14, %v6940_v41  ;;  %v3583_v35 = vmul.f32 %v6944_v42, %v6943_v13  ;;  %v6946_v59 = vld [vmem:[#allocation49_spill] sm:$0xff]  ;;  %v6949_v51 = vld [vmem:[#allocation50_spill] sm:$0xff]  ;;  %v731_v42 = vmul.f32 %v6958_v11, %v6882_v24  ;;  %v698_v58 = vadd.f32 %v697_v45, %v672_v62  ;;  %v6965_v11 = vld [vmem:[#allocation128_spill] sm:$0xff] }
  0x9f   :  { %6936 = vst [vmem:[#allocation17_spill] sm:$0xff] %v3571_v48  ;;  %6939 = vst [vmem:[#allocation21_spill] sm:$0xff] %v3575_v43  ;;  %v6947_v34 = vld [vmem:[#allocation89_spill] sm:$0xff]  ;;  %v6953_v43 = vld [vmem:[#allocation91_spill] sm:$0xff]  ;;  %v737_v57 = vmul.f32 %v6964_v36, %v6897_v29 }
  0xa0   :  { %6942 = vst [vmem:[#allocation22_spill] sm:$0xff] %v3579_v54  ;;  %6945 = vst [vmem:[#allocation23_spill] sm:$0xff] %v3583_v35  ;;  %v3587_v27 = vmul.f32 %v6947_v34, %v6946_v59  ;;  %v6950_v48 = vld [vmem:[#allocation105_spill] sm:$0xff]  ;;  %v6955_v14 = vld [vmem:[#allocation54_spill] sm:$0xff]  ;;  %v699_v62 = vadd.f32 %v698_v58, %v674_v8 }
  0xa1   :  { %v3591_v26 = vmul.f32 %v6950_v48, %v6949_v51  ;;  %v6952_v60 = vld [vmem:[#allocation53_spill] sm:$0xff]  ;;  %v6956_v54 = vld [vmem:[#allocation106_spill] sm:$0xff]  ;;  %v6959_v34 = vld [vmem:[#allocation124_spill] sm:$0xff] }
  0xa2   :  { %6948 = vst [vmem:[#allocation24_spill] sm:$0xff] %v3587_v27  ;;  %v3595_v25 = vmul.f32 %v6953_v43, %v6952_v60  ;;  %v3599_v16 = vmul.f32 %v6956_v54, %v6955_v14  ;;  %v732_v27 = vmul.f32 %v6959_v34, %v6884_v7  ;;  %v6960_v35 = vld [vmem:[#allocation108_spill] sm:$0xff]  ;;  %v6962_v43 = vld [vmem:[#allocation110_spill] sm:$0xff]  ;;  %v713_v54 = vadd.f32 %v712_v17, %v673_v0  ;;  %v6971_v29 = vld [vmem:[#allocation131_spill] sm:$0xff] }
  0xa3   :  { %6951 = vst [vmem:[#allocation29_spill] sm:$0xff] %v3591_v26  ;;  %v733_v48 = vmul.f32 %v6960_v35, %v6886_v37  ;;  %v6961_v26 = vld [vmem:[#allocation126_spill] sm:$0xff]  ;;  %v738_v34 = vmul.f32 %v6965_v11, %v6899_v28  ;;  %v6967_v37 = vld [vmem:[#allocation129_spill] sm:$0xff]  ;;  %v744_v11 = vmul.f32 %v6971_v29, %v6911_v21  ;;  %v6972_v28 = vld [vmem:[#allocation115_spill] sm:$0xff] }
  0xa4   :  { %6954 = vst [vmem:[#allocation30_spill] sm:$0xff] %v3595_v25  ;;  %6957 = vst [vmem:[#allocation33_spill] sm:$0xff] %v3599_v16  ;;  %v734_v23 = vmul.f32 %v6961_v26, %v6888_v9  ;;  %v735_v25 = vmul.f32 %v6962_v43, %v6893_v4  ;;  %v6966_v16 = vld [vmem:[#allocation112_spill] sm:$0xff]  ;;  %v740_v26 = vmul.f32 %v6967_v37, %v6903_v31  ;;  %v6968_v9 = vld [vmem:[#allocation113_spill] sm:$0xff] }
  0xa5   :  { %v739_v35 = vmul.f32 %v6966_v16, %v6901_v61  ;;  %v741_v43 = vmul.f32 %v6968_v9, %v6905_v15  ;;  %v714_v0 = vadd.f32 %v713_v54, %v675_v56  ;;  %v6969_v45 = vld [vmem:[#allocation130_spill] sm:$0xff]  ;;  %v745_v16 = vmul.f32 %v6972_v28, %v6913_v1  ;;  %v6973_v9 = vld [vmem:[#allocation132_spill] sm:$0xff]  ;;  %v6975_v54 = vld [vmem:[#allocation133_spill] sm:$0xff] }
  0xa6   :  { %v742_v17 = vmul.f32 %v6969_v45, %v6907_v44  ;;  %v6970_v5 = vld [vmem:[#allocation114_spill] sm:$0xff]  ;;  %v763_v61 = vadd.f32 %v733_v48, %v731_v42  ;;  %v778_v49 = vadd.f32 %v734_v23, %v732_v27  ;;  %v700_v37 = vadd.f32 %v699_v62, %v676_v33  ;;  %v6974_v8 = vld [vmem:[#allocation116_spill] sm:$0xff] }
  0xa7   :  { %v743_v36 = vmul.f32 %v6970_v5, %v6909_v20  ;;  %v715_v31 = vadd.f32 %v714_v0, %v677_v19  ;;  %v746_v58 = vmul.f32 %v6973_v9, %v6915_v22  ;;  %v747_v56 = vmul.f32 %v6974_v8, %v6917_v53  ;;  %v6976_v5 = vld [vmem:[#allocation117_spill] sm:$0xff]  ;;  %v6977_v23 = vld [vmem:[#allocation134_spill] sm:$0xff]  ;;  %v6979_v22 = vld [vmem:[#allocation135_spill] sm:$0xff] }
  0xa8   :  { %v748_v45 = vmul.f32 %v6975_v54, %v6919_v52  ;;  %v749_v20 = vmul.f32 %v6976_v5, %v6921_v40  ;;  %v764_v29 = vadd.f32 %v763_v61, %v735_v25  ;;  %v779_v21 = vadd.f32 %v778_v49, %v736_v3  ;;  %v6978_v42 = vld [vmem:[#allocation118_spill] sm:$0xff]  ;;  %v6980_v53 = vld [vmem:[#allocation119_spill] sm:$0xff]  ;;  %v6982_v49 = vld [vmem:[#allocation120_spill] sm:$0xff] }
  0xa9   :  { %v701_v44 = vadd.f32 %v700_v37, %v678_v47  ;;  %v716_v28 = vadd.f32 %v715_v31, %v679_v2  ;;  %v750_v27 = vmul.f32 %v6977_v23, %v6923_v63  ;;  %v751_v48 = vmul.f32 %v6978_v42, %v6925_v39  ;;  %v6981_v37 = vld [vmem:[#allocation136_spill] sm:$0xff]  ;;  %v6983_v31 = vld [vmem:[#allocation137_spill] sm:$0xff]  ;;  %v6984_v3 = vld [vmem:[#allocation122_spill] sm:$0xff] }
  0xaa   :  { %v752_v33 = vmul.f32 %v6979_v22, %v6927_v30  ;;  %v3647_v19 = vmul.f32 %v6980_v53, %v6929_v12  ;;  %v765_v52 = vadd.f32 %v764_v29, %v737_v57  ;;  %v780_v62 = vadd.f32 %v779_v21, %v738_v34  ;;  %v6987_v57 = vld [vmem:[#allocation139_spill] sm:$0xff]  ;;  %v7005_v9 = vld [vmem:[#allocation22_spill] sm:$0xff] }
  0xab   :  { %v702_v0 = vadd.f32 %v701_v44, %v680_v55  ;;  %v717_v25 = vadd.f32 %v716_v28, %v681_v18  ;;  %v754_v2 = vmul.f32 %v6981_v37, %v6931_v46  ;;  %v3653_v61 = vmul.f32 %v6982_v49, %v6934_v32  ;;  %v6985_v44 = vld [vmem:[#allocation138_spill] sm:$0xff]  ;;  %v6986_v18 = vld [vmem:[#allocation123_spill] sm:$0xff] }
  0xac   :  { %v3657_v47 = vmul.f32 %v6983_v31, %v6937_v50  ;;  %v3661_v22 = vmul.f32 %v6984_v3, %v6940_v41  ;;  %v766_v53 = vadd.f32 %v765_v52, %v739_v35  ;;  %v781_v29 = vadd.f32 %v780_v62, %v740_v26  ;;  %v6988_v3 = vld [vmem:[#allocation125_spill] sm:$0xff]  ;;  %v6990_v62 = vld [vmem:[#allocation140_spill] sm:$0xff]  ;;  %v6993_v37 = vld [vmem:[#allocation26_spill] sm:$0xff] }
  0xad   :  { %v703_v21 = vadd.f32 %v702_v0, %v3557_v38  ;;  %v718_v34 = vadd.f32 %v717_v25, %v683_v6  ;;  %v3666_v28 = vmul.f32 %v6985_v44, %v6943_v13  ;;  %v3670_v55 = vmul.f32 %v6986_v18, %v6946_v59  ;;  %v6989_v38 = vld [vmem:[#allocation11_spill] sm:$0xff]  ;;  %v6992_v25 = vld [vmem:[#allocation25_spill] sm:$0xff] }
  0xae   :  { %v3674_v31 = vmul.f32 %v6987_v57, %v6949_v51  ;;  %v3678_v49 = vmul.f32 %v6988_v3, %v6952_v60  ;;  %v767_v26 = vadd.f32 %v766_v53, %v741_v43  ;;  %v782_v35 = vadd.f32 %v781_v29, %v742_v17  ;;  %v6994_v3 = vld [vmem:[#allocation61_spill] sm:$0xff]  ;;  %v6995_v23 = vld [vmem:[#allocation27_spill] sm:$0xff] }
  0xaf   :  { %v704_v6 = vadd.f32 %v703_v21, %v3563_v10  ;;  %v719_v52 = vadd.f32 %v718_v34, %v6989_v38  ;;  %v3684_v0 = vmul.f32 %v6990_v62, %v6955_v14  ;;  %v800_v18 = vmul.f32 %v6992_v25, %v6882_v24  ;;  %v6996_v17 = vld [vmem:[#allocation17_spill] sm:$0xff]  ;;  %v6998_v21 = vld [vmem:[#allocation63_spill] sm:$0xff]  ;;  %v6999_v34 = vld [vmem:[#allocation28_spill] sm:$0xff] }
  0xb0   :  { %v768_v44 = vadd.f32 %v767_v26, %v743_v36  ;;  %v783_v57 = vadd.f32 %v782_v35, %v744_v11  ;;  %v801_v42 = vmul.f32 %v6993_v37, %v6884_v7  ;;  %v802_v43 = vmul.f32 %v6995_v23, %v6994_v3  ;;  %v6997_v10 = vld [vmem:[#allocation21_spill] sm:$0xff]  ;;  %v7000_v62 = vld [vmem:[#allocation31_spill] sm:$0xff]  ;;  %v7002_v11 = vld [vmem:[#allocation32_spill] sm:$0xff] }
  0xb1   :  { %6991 = vst [vmem:[#allocation34_spill] sm:$0xff] %v3684_v0  ;;  %v705_v53 = vadd.f32 %v704_v6, %v6996_v17  ;;  %v720_v29 = vadd.f32 %v719_v52, %v6997_v10  ;;  %v803_v38 = vmul.f32 %v6999_v34, %v6998_v21  ;;  %v804_v5 = vmul.f32 %v7000_v62, %v6893_v4  ;;  %v7001_v36 = vld [vmem:[#allocation13_spill] sm:$0xff]  ;;  %v7003_v35 = vld [vmem:[#allocation12_spill] sm:$0xff]  ;;  %v7004_v37 = vld [vmem:[#allocation35_spill] sm:$0xff] }
  0xb2   :  { %v769_v54 = vadd.f32 %v768_v44, %v745_v16  ;;  %v784_v25 = vadd.f32 %v783_v57, %v746_v58  ;;  %v805_v26 = vmul.f32 %v7002_v11, %v7001_v36  ;;  %v806_v8 = vmul.f32 %v7004_v37, %v7003_v35  ;;  %v7006_v3 = vld [vmem:[#allocation23_spill] sm:$0xff]  ;;  %v7007_v17 = vld [vmem:[#allocation14_spill] sm:$0xff]  ;;  %v7008_v52 = vld [vmem:[#allocation36_spill] sm:$0xff] }
  0xb3   :  { %v706_v23 = vadd.f32 %v705_v53, %v7005_v9  ;;  %v721_v6 = vadd.f32 %v720_v29, %v7006_v3  ;;  %v807_v10 = vmul.f32 %v7008_v52, %v7007_v17  ;;  %v7009_v7 = vld [vmem:[#allocation15_spill] sm:$0xff]  ;;  %v7011_v16 = vld [vmem:[#allocation16_spill] sm:$0xff]  ;;  %v7015_v35 = vld [vmem:[#allocation29_spill] sm:$0xff] }
  0xb4   :  { %v7010_v34 = vld [vmem:[#allocation39_spill] sm:$0xff]  ;;  %v770_v24 = vadd.f32 %v769_v54, %v747_v56  ;;  %v785_v4 = vadd.f32 %v784_v25, %v748_v45  ;;  %v7012_v58 = vld [vmem:[#allocation40_spill] sm:$0xff]  ;;  %v7016_v53 = vld [vmem:[#allocation18_spill] sm:$0xff]  ;;  %v832_v56 = vadd.f32 %v802_v43, %v800_v18  ;;  %v847_v45 = vadd.f32 %v803_v38, %v801_v42 }
  0xb5   :  { %v808_v21 = vmul.f32 %v7010_v34, %v7009_v7  ;;  %v809_v44 = vmul.f32 %v7012_v58, %v7011_v16  ;;  %v7013_v57 = vld [vmem:[#allocation43_spill] sm:$0xff]  ;;  %v7014_v36 = vld [vmem:[#allocation24_spill] sm:$0xff]  ;;  %v722_v9 = vadd.f32 %v721_v6, %v7015_v35  ;;  %v7020_v54 = vld [vmem:[#allocation30_spill] sm:$0xff] }
  0xb6   :  { %v810_v62 = vmul.f32 %v7013_v57, %v6905_v15  ;;  %v707_v11 = vadd.f32 %v706_v23, %v7014_v36  ;;  %v7017_v3 = vld [vmem:[#allocation44_spill] sm:$0xff]  ;;  %v7018_v37 = vld [vmem:[#allocation19_spill] sm:$0xff]  ;;  %v771_v14 = vadd.f32 %v770_v24, %v749_v20  ;;  %v786_v7 = vadd.f32 %v785_v4, %v750_v27  ;;  %v7021_v34 = vld [vmem:[#allocation33_spill] sm:$0xff] }
  0xb7   :  { %v811_v29 = vmul.f32 %v7017_v3, %v7016_v53  ;;  %v7019_v17 = vld [vmem:[#allocation47_spill] sm:$0xff]  ;;  %v723_v16 = vadd.f32 %v722_v9, %v7021_v34  ;;  %v7022_v58 = vld [vmem:[#allocation20_spill] sm:$0xff]  ;;  %v833_v53 = vadd.f32 %v832_v56, %v804_v5  ;;  %v848_v3 = vadd.f32 %v847_v45, %v805_v26 }
  0xb8   :  { %v812_v52 = vmul.f32 %v7019_v17, %v7018_v37  ;;  %v708_v25 = vadd.f32 %v707_v11, %v7020_v54  ;;  %v7023_v15 = vld [vmem:[#allocation48_spill] sm:$0xff]  ;;  %v7024_v23 = vld [vmem:[#allocation51_spill] sm:$0xff]  ;;  %v772_v36 = vadd.f32 %v771_v14, %v751_v48  ;;  %v787_v35 = vadd.f32 %v786_v7, %v752_v33  ;;  %v3724_v37 = vld [vmem:[#allocation2 + $0x58] sm:$0xff] }
  0xb9   :  { %v813_v57 = vmul.f32 %v7023_v15, %v7022_v58  ;;  %v814_v6 = vmul.f32 %v7024_v23, %v6913_v1  ;;  %v7025_v20 = vld [vmem:[#allocation52_spill] sm:$0xff]  ;;  %v3728_v27 = vld [vmem:[#allocation2 + $0x60] sm:$0xff]  ;;  %v834_v48 = vadd.f32 %v833_v53, %v806_v8  ;;  %v849_v33 = vadd.f32 %v848_v3, %v807_v10  ;;  %v7031_v8 = vld [vmem:[#allocation65_spill] sm:$0xff] }
  0xba   :  { %v724_v0 = vadd.f32 %v723_v16, %v708_v25  ;;  %v815_v24 = vmul.f32 %v3724_v37, %v7025_v20  ;;  %v7026_v42 = vld [vmem:[#allocation55_spill] sm:$0xff]  ;;  %v3732_v43 = vld [vmem:[#allocation2 + $0x68] sm:$0xff]  ;;  %v773_v14 = vadd.f32 %v772_v36, %v3647_v19  ;;  %v788_v5 = vadd.f32 %v787_v35, %v754_v2  ;;  %v7032_v10 = vld [vmem:[#allocation70_spill] sm:$0xff] }
  0xbb   :  { %v816_v18 = vmul.f32 %v3728_v27, %v7026_v42  ;;  %v7027_v38 = vld [vmem:[#allocation56_spill] sm:$0xff]  ;;  %v7028_v4 = vld [vmem:[#allocation59_spill] sm:$0xff]  ;;  %v835_v25 = vadd.f32 %v834_v48, %v808_v21  ;;  %v850_v34 = vadd.f32 %v849_v33, %v809_v44  ;;  %v821_v2 = vmul.f32 %v7031_v8, %v6927_v30  ;;  %v7038_v36 = vld [vmem:[#allocation78_spill] sm:$0xff] }
  0xbc   :  { %v817_v1 = vmul.f32 %v3732_v43, %v7027_v38  ;;  %v725_v26 = vrot.slane %v724_v0, 4  ;;  %v818_v11 = vmul.f32 %v7028_v4, %v6921_v40  ;;  %v7029_v9 = vld [vmem:[#allocation60_spill] sm:$0xff]  ;;  %v774_v45 = vadd.f32 %v773_v14, %v3653_v61  ;;  %v7033_v40 = vld [vmem:[#allocation71_spill] sm:$0xff]  ;;  %v7043_v42 = vld [vmem:[#allocation81_spill] sm:$0xff] }
  0xbd   :  { %v819_v17 = vmul.f32 %v7029_v9, %v6923_v63  ;;  %v7030_v7 = vld [vmem:[#allocation64_spill] sm:$0xff]  ;;  %v789_v54 = vadd.f32 %v788_v5, %v3657_v47  ;;  %v822_v16 = vmul.f32 %v7032_v10, %v6929_v12  ;;  %v823_v58 = vmul.f32 %v7033_v40, %v6931_v46  ;;  %v7034_v47 = vld [vmem:[#allocation74_spill] sm:$0xff]  ;;  %v7037_v46 = vld [vmem:[#allocation77_spill] sm:$0xff] }
  0xbe   :  { %v820_v56 = vmul.f32 %v7030_v7, %v6925_v39  ;;  %v726_v19 = vadd.f32 %v725_v26, %v724_v0  ;;  %v775_v63 = vadd.f32 %v774_v45, %v3661_v22  ;;  %v836_v15 = vadd.f32 %v835_v25, %v810_v62  ;;  %v7035_v0 = vld [vmem:[#allocation75_spill] sm:$0xff]  ;;  %v7036_v30 = vld [vmem:[#allocation76_spill] sm:$0xff]  ;;  %v7045_v14 = vld [vmem:[#allocation153_spill] sm:$0xff] }
  0xbf   :  { %v790_v39 = vadd.f32 %v789_v54, %v3666_v28  ;;  %v851_v61 = vadd.f32 %v850_v34, %v811_v29  ;;  %v3755_v21 = vmul.f32 %v7034_v47, %v6934_v32  ;;  %v3759_v44 = vmul.f32 %v7035_v0, %v6937_v50  ;;  %v7039_v50 = vld [vmem:[#allocation79_spill] sm:$0xff]  ;;  %v7046_v48 = vld [vmem:[#allocation58_spill] sm:$0xff]  ;;  %v7048_v26 = vld [vmem:[#allocation61_spill] sm:$0xff] }
  0xc0   :  { %v3763_v12 = vmul.f32 %v7036_v30, %v6940_v41  ;;  %v3767_v23 = vmul.f32 %v7037_v46, %v6943_v13  ;;  %v776_v22 = vadd.f32 %v775_v63, %v3670_v55  ;;  %v837_v62 = vadd.f32 %v836_v15, %v812_v52  ;;  %v7040_v41 = vld [vmem:[#allocation80_spill] sm:$0xff]  ;;  %v7041_v55 = vld [vmem:[#allocation34_spill] sm:$0xff]  ;;  %v7050_v45 = vld [vmem:[#allocation63_spill] sm:$0xff] }
  0xc1   :  { %v791_v28 = vadd.f32 %v790_v39, %v3674_v31  ;;  %v852_v29 = vadd.f32 %v851_v61, %v813_v57  ;;  %v727_v32 = vrot.slane %v726_v19, 2  ;;  %v3773_v35 = vmul.f32 %v7038_v36, %v6946_v59  ;;  %v7042_v57 = vld [vmem:[#allocation54_spill] sm:$0xff]  ;;  %v7044_v59 = vld [vmem:[#allocation57_spill] sm:$0xff]  ;;  %v7053_v25 = vld [vmem:[#allocation159_spill] sm:$0xff] }
  0xc2   :  { %v3777_v53 = vmul.f32 %v7039_v50, %v6949_v51  ;;  %v3781_v3 = vmul.f32 %v7040_v41, %v6952_v60  ;;  %v777_v13 = vadd.f32 %v776_v22, %v3678_v49  ;;  %v838_v31 = vadd.f32 %v837_v62, %v814_v6  ;;  %v7047_v51 = vld [vmem:[#allocation141_spill] sm:$0xff]  ;;  %v7049_v4 = vld [vmem:[#allocation158_spill] sm:$0xff]  ;;  %v3801_v8 = vld [vmem:[#allocation2 + $0x8] sm:$0xff] }
  0xc3   :  { %v792_v20 = vadd.f32 %v791_v28, %v7041_v55  ;;  %v853_v52 = vadd.f32 %v852_v29, %v815_v24  ;;  %v3787_v38 = vmul.f32 %v7043_v42, %v7042_v57  ;;  %v869_v5 = vmul.f32 %v7045_v14, %v7044_v59  ;;  %v7051_v54 = vld [vmem:[#allocation142_spill] sm:$0xff]  ;;  %v3797_v24 = vld [vmem:[#allocation2] sm:$0xff]  ;;  %7054 = vst [vmem:[#allocation38_spill] sm:$0xff] %v3801_v8  ;;  %v3805_v63 = vld [vmem:[#allocation2 + $0x10] sm:$0xff] }
  0xc4   :  { %v870_v33 = vmul.f32 %v7047_v51, %v7046_v48  ;;  %v871_v60 = vmul.f32 %v7049_v4, %v7048_v26  ;;  %v839_v7 = vadd.f32 %v838_v31, %v816_v18  ;;  %v872_v6 = vmul.f32 %v7051_v54, %v7050_v45  ;;  %7052 = vst [vmem:[#allocation37_spill] sm:$0xff] %v3797_v24  ;;  %v7055_v10 = vld [vmem:[#allocation143_spill] sm:$0xff]  ;;  %v7057_v39 = vld [vmem:[#allocation160_spill] sm:$0xff]  ;;  %v3809_v18 = vld [vmem:[#allocation2 + $0x18] sm:$0xff] }
  0xc5   :  { %v793_v9 = vadd.f32 %v792_v20, %v777_v13  ;;  %v854_v49 = vadd.f32 %v853_v52, %v817_v1  ;;  %v873_v34 = vmul.f32 %v3797_v24, %v7053_v25  ;;  %v874_v40 = vmul.f32 %v3801_v8, %v7055_v10  ;;  %7056 = vst [vmem:[#allocation41_spill] sm:$0xff] %v3805_v63  ;;  %v7059_v1 = vld [vmem:[#allocation144_spill] sm:$0xff]  ;;  %v3813_v22 = vld [vmem:[#allocation2 + $0x20] sm:$0xff]  ;;  %v7061_v28 = vld [vmem:[#allocation161_spill] sm:$0xff] }
  0xc6   :  { %v875_v15 = vmul.f32 %v3805_v63, %v7057_v39  ;;  %7058 = vst [vmem:[#allocation42_spill] sm:$0xff] %v3809_v18  ;;  %v876_v61 = vmul.f32 %v3809_v18, %v7059_v1  ;;  %v728_v47 = vadd.f32 %v727_v32, %v726_v19  ;;  %v840_v30 = vadd.f32 %v839_v7, %v818_v11  ;;  %v3817_v29 = vld [vmem:[#allocation2 + $0x28] sm:$0xff]  ;;  %v7063_v36 = vld [vmem:[#allocation145_spill] sm:$0xff]  ;;  %v7065_v13 = vld [vmem:[#allocation162_spill] sm:$0xff] }
  0xc7   :  { %v794_v0 = vrot.slane %v793_v9, 4  ;;  %v855_v46 = vadd.f32 %v854_v49, %v819_v17  ;;  %7060 = vst [vmem:[#allocation45_spill] sm:$0xff] %v3813_v22  ;;  %v877_v62 = vmul.f32 %v3813_v22, %v7061_v28  ;;  %7062 = vst [vmem:[#allocation46_spill] sm:$0xff] %v3817_v29  ;;  %v878_v50 = vmul.f32 %v3817_v29, %v7063_v36  ;;  %v3821_v41 = vld [vmem:[#allocation2 + $0x30] sm:$0xff]  ;;  %v3825_v20 = vld [vmem:[#allocation2 + $0x38] sm:$0xff] }
  0xc8   :  { %7064 = vst [vmem:[#allocation49_spill] sm:$0xff] %v3821_v41  ;;  %v879_v55 = vmul.f32 %v3821_v41, %v7065_v13  ;;  %7066 = vst [vmem:[#allocation50_spill] sm:$0xff] %v3825_v20  ;;  %v7067_v19 = vld [vmem:[#allocation146_spill] sm:$0xff]  ;;  %v841_v32 = vadd.f32 %v840_v30, %v820_v56  ;;  %v3829_v52 = vld [vmem:[#allocation2 + $0x40] sm:$0xff]  ;;  %v901_v13 = vadd.f32 %v871_v60, %v869_v5 }
  0xc9   :  { %v880_v11 = vmul.f32 %v3825_v20, %v7067_v19  ;;  %v795_v17 = vadd.f32 %v794_v0, %v793_v9  ;;  %v856_v31 = vadd.f32 %v855_v46, %v821_v2  ;;  %7068 = vst [vmem:[#allocation53_spill] sm:$0xff] %v3829_v52  ;;  %v7069_v57 = vld [vmem:[#allocation163_spill] sm:$0xff]  ;;  %v3833_v59 = vld [vmem:[#allocation2 + $0x48] sm:$0xff]  ;;  %v3837_v7 = vld [vmem:[#allocation2 + $0x50] sm:$0xff]  ;;  %v916_v19 = vadd.f32 %v872_v6, %v870_v33 }
  0xca   :  { %v881_v42 = vmul.f32 %v3829_v52, %v7069_v57  ;;  %v7070_v48 = vld [vmem:[#allocation147_spill] sm:$0xff]  ;;  %v7071_v49 = vld [vmem:[#allocation164_spill] sm:$0xff]  ;;  %v729_v9 = vrot.slane %v728_v47, 1  ;;  %v842_v56 = vadd.f32 %v841_v32, %v822_v16  ;;  %v7073_v46 = vld [vmem:[#allocation165_spill] sm:$0xff]  ;;  %v902_v28 = vadd.f32 %v901_v13, %v873_v34 }
  0xcb   :  { %v882_v26 = vmul.f32 %v3833_v59, %v7070_v48  ;;  %v883_v45 = vmul.f32 %v3837_v7, %v7071_v49  ;;  %v857_v2 = vadd.f32 %v856_v31, %v823_v58  ;;  %v7072_v0 = vld [vmem:[#allocation148_spill] sm:$0xff]  ;;  %v3845_v57 = vmul.f32 %v3728_v27, %v7073_v46  ;;  %v7074_v36 = vld [vmem:[#allocation149_spill] sm:$0xff]  ;;  %v7075_v58 = vld [vmem:[#allocation166_spill] sm:$0xff] }
  0xcc   :  { %v884_v30 = vmul.f32 %v3724_v37, %v7072_v0  ;;  %v3849_v48 = vmul.f32 %v3732_v43, %v7074_v36  ;;  %v917_v1 = vadd.f32 %v916_v19, %v874_v40  ;;  %v796_v39 = vrot.slane %v795_v17, 2  ;;  %v3853_v16 = vld [vmem:[#allocation2 + $0x70] sm:$0xff]  ;;  %v3859_v6 = vld [vmem:[#allocation2 + $0x78] sm:$0xff]  ;;  %v3865_v36 = vld [vmem:[#allocation2 + $0x80] sm:$0xff] }
  0xcd   :  { %v843_v5 = vadd.f32 %v842_v56, %v3755_v21  ;;  %v858_v33 = vadd.f32 %v857_v2, %v3759_v44  ;;  %v3857_v60 = vmul.f32 %v3853_v16, %v7075_v58  ;;  %v7076_v32 = vld [vmem:[#allocation150_spill] sm:$0xff]  ;;  %v7077_v34 = vld [vmem:[#allocation167_spill] sm:$0xff]  ;;  %v903_v21 = vadd.f32 %v902_v28, %v875_v15  ;;  %v3875_v2 = vld [vmem:[#allocation2 + $0x88] sm:$0xff] }
  0xce   :  { %v3863_v31 = vmul.f32 %v3859_v6, %v7076_v32  ;;  %v3869_v40 = vmul.f32 %v3865_v36, %v7077_v34  ;;  %v918_v44 = vadd.f32 %v917_v1, %v876_v61  ;;  %v3871_v13 = vadd.f32 %v729_v9, %v728_v47  ;;  %v7079_v58 = vld [vmem:[#allocation151_spill] sm:$0xff]  ;;  %v3881_v46 = vld [vmem:[#allocation2 + $0x90] sm:$0xff]  ;;  %v7080_v0 = vld [vmem:[#allocation168_spill] sm:$0xff] }
  0xcf   :  { %v844_v19 = vadd.f32 %v843_v5, %v3763_v12  ;;  %v859_v56 = vadd.f32 %v858_v33, %v3767_v23  ;;  %v3879_v32 = vmul.f32 %v3875_v2, %v7079_v58  ;;  %v3885_v34 = vmul.f32 %v3881_v46, %v7080_v0  ;;  %v3887_v15 = vld [vmem:[#allocation2 + $0x98] sm:$0xff]  ;;  %v7081_v1 = vld [vmem:[#allocation152_spill] sm:$0xff]  ;;  %v3895_v5 = vld [vmem:[#allocation2 + $0xa0] sm:$0xff] }
  0xd0   :  { %7078 = vst [vmem:[#allocation11_spill] sm:$0xff] %v3871_v13  ;;  %v3891_v61 = vmul.f32 %v3887_v15, %v7081_v1  ;;  %v904_v12 = vadd.f32 %v903_v21, %v877_v62  ;;  %v919_v23 = vadd.f32 %v918_v44, %v878_v50  ;;  %v797_v47 = vadd.f32 %v796_v39, %v795_v17  ;;  %v7082_v33 = vld [vmem:[#allocation169_spill] sm:$0xff]  ;;  %v3901_v0 = vld [vmem:[#allocation2 + $0xa8] sm:$0xff]  ;;  %v7083_v58 = vld [vmem:[#allocation154_spill] sm:$0xff] }
  0xd1   :  { %v845_v28 = vadd.f32 %v844_v19, %v3773_v35  ;;  %v860_v9 = vadd.f32 %v859_v56, %v3777_v53  ;;  %v3899_v13 = vmul.f32 %v3895_v5, %v7082_v33  ;;  %v3905_v49 = vmul.f32 %v3901_v0, %v7083_v58  ;;  %v3907_v1 = vld [vmem:[#allocation2 + $0xb0] sm:$0xff]  ;;  %v7084_v62 = vld [vmem:[#allocation170_spill] sm:$0xff]  ;;  %v7085_v44 = vld [vmem:[#allocation155_spill] sm:$0xff] }
  0xd2   :  { %v3911_v39 = vmul.f32 %v3907_v1, %v7084_v62  ;;  %v905_v35 = vadd.f32 %v904_v12, %v879_v55  ;;  %v920_v53 = vadd.f32 %v919_v23, %v880_v11  ;;  %v3915_v21 = vld [vmem:[#allocation2 + $0xb8] sm:$0xff]  ;;  %v3921_v56 = vld [vmem:[#allocation2 + $0xc0] sm:$0xff]  ;;  %v3927_v62 = vld [vmem:[#allocation2 + $0xc8] sm:$0xff] }
  0xd3   :  { %v846_v50 = vadd.f32 %v845_v28, %v3781_v3  ;;  %v861_v17 = vadd.f32 %v860_v9, %v3787_v38  ;;  %v3919_v19 = vmul.f32 %v3915_v21, %v7085_v44  ;;  %v7086_v58 = vld [vmem:[#allocation171_spill] sm:$0xff]  ;;  %7087 = vst [vmem:[#allocation25_spill] sm:$0xff] %v3927_v62  ;;  %v7088_v55 = vld [vmem:[#allocation156_spill] sm:$0xff]  ;;  %v3933_v3 = vld [vmem:[#allocation2 + $0xd0] sm:$0xff]  ;;  %v798_v9 = vrot.slane %v797_v47, 1 }
  0xd4   :  { %v3925_v33 = vmul.f32 %v3921_v56, %v7086_v58  ;;  %v3931_v11 = vmul.f32 %v3927_v62, %v7088_v55  ;;  %7089 = vst [vmem:[#allocation26_spill] sm:$0xff] %v3933_v3  ;;  %v7090_v38 = vld [vmem:[#allocation172_spill] sm:$0xff]  ;;  %v906_v23 = vadd.f32 %v905_v35, %v881_v42  ;;  %v921_v28 = vadd.f32 %v920_v53, %v882_v26  ;;  %v3939_v10 = vld [vmem:[#allocation2 + $0xd8] sm:$0xff]  ;;  %v7093_v58 = vld [vmem:[#allocation157_spill] sm:$0xff] }
  0xd5   :  { %v3937_v12 = vmul.f32 %v3933_v3, %v7090_v38  ;;  %v862_v44 = vadd.f32 %v861_v17, %v846_v50  ;;  %7092 = vst [vmem:[#allocation17_spill] sm:$0xff] %v3939_v10  ;;  %v3943_v25 = vmul.f32 %v3939_v10, %v7093_v58  ;;  %v3945_v54 = vld [vmem:[#allocation2 + $0xe0] sm:$0xff]  ;;  %v7096_v55 = vld [vmem:[#allocation189_spill] sm:$0xff]  ;;  %v3949_v62 = vld [vmem:[#allocation2 + $0xe8] sm:$0xff] }
  0xd6   :  { %7095 = vst [vmem:[#allocation28_spill] sm:$0xff] %v3945_v54  ;;  %v938_v4 = vmul.f32 %v3945_v54, %v7096_v55  ;;  %v907_v51 = vadd.f32 %v906_v23, %v883_v45  ;;  %v922_v14 = vadd.f32 %v921_v28, %v884_v30  ;;  %7097 = vst [vmem:[#allocation31_spill] sm:$0xff] %v3949_v62  ;;  %v7098_v38 = vld [vmem:[#allocation173_spill] sm:$0xff]  ;;  %v7100_v35 = vld [vmem:[#allocation190_spill] sm:$0xff] }
  0xd7   :  { %7091 = vst [vmem:[#allocation27_spill] sm:$0xff] %v3937_v12  ;;  %7094 = vst [vmem:[#allocation21_spill] sm:$0xff] %v3943_v25  ;;  %v939_v42 = vmul.f32 %v3949_v62, %v7098_v38  ;;  %v3953_v26 = vld [vmem:[#allocation2 + $0xf0] sm:$0xff]  ;;  %v863_v50 = vrot.slane %v862_v44, 4  ;;  %v3957_v17 = vld [vmem:[#allocation2 + $0xf8] sm:$0xff] }
  0xd8   :  { %7099 = vst [vmem:[#allocation13_spill] sm:$0xff] %v3953_v26  ;;  %v940_v53 = vmul.f32 %v3953_v26, %v7100_v35  ;;  %7101 = vst [vmem:[#allocation32_spill] sm:$0xff] %v3957_v17  ;;  %v7102_v58 = vld [vmem:[#allocation174_spill] sm:$0xff]  ;;  %v7103_v12 = vld [vmem:[#allocation191_spill] sm:$0xff]  ;;  %v908_v28 = vadd.f32 %v907_v51, %v3845_v57  ;;  %v923_v38 = vadd.f32 %v922_v14, %v3849_v48 }
  0xd9   :  { %v941_v25 = vmul.f32 %v3957_v17, %v7102_v58  ;;  %v942_v45 = vmul.f32 %v3797_v24, %v7103_v12  ;;  %v7104_v30 = vld [vmem:[#allocation175_spill] sm:$0xff]  ;;  %v7105_v55 = vld [vmem:[#allocation192_spill] sm:$0xff]  ;;  %v3971_v26 = vadd.f32 %v798_v9, %v797_v47  ;;  %v7108_v10 = vld [vmem:[#allocation193_spill] sm:$0xff]  ;;  %v864_v51 = vadd.f32 %v863_v50, %v862_v44 }
  0xda   :  { %v943_v23 = vmul.f32 %v3801_v8, %v7104_v30  ;;  %v944_v62 = vmul.f32 %v3805_v63, %v7105_v55  ;;  %v7106_v35 = vld [vmem:[#allocation176_spill] sm:$0xff]  ;;  %v946_v58 = vmul.f32 %v3813_v22, %v7108_v10  ;;  %v7109_v17 = vld [vmem:[#allocation177_spill] sm:$0xff]  ;;  %v7110_v24 = vld [vmem:[#allocation194_spill] sm:$0xff]  ;;  %v909_v14 = vadd.f32 %v908_v28, %v3857_v60 }
  0xdb   :  { %v945_v54 = vmul.f32 %v3809_v18, %v7106_v35  ;;  %7107 = vst [vmem:[#allocation12_spill] sm:$0xff] %v3971_v26  ;;  %v947_v12 = vmul.f32 %v3817_v29, %v7109_v17  ;;  %v948_v30 = vmul.f32 %v3821_v41, %v7110_v24  ;;  %v924_v57 = vadd.f32 %v923_v38, %v3863_v31  ;;  %v7111_v48 = vld [vmem:[#allocation178_spill] sm:$0xff]  ;;  %v7112_v35 = vld [vmem:[#allocation195_spill] sm:$0xff]  ;;  %v7114_v44 = vld [vmem:[#allocation196_spill] sm:$0xff] }
  0xdc   :  { %v949_v55 = vmul.f32 %v3825_v20, %v7111_v48  ;;  %v950_v47 = vmul.f32 %v3829_v52, %v7112_v35  ;;  %v7113_v9 = vld [vmem:[#allocation179_spill] sm:$0xff]  ;;  %v970_v10 = vadd.f32 %v940_v53, %v938_v4  ;;  %v985_v22 = vadd.f32 %v941_v25, %v939_v42  ;;  %v7115_v50 = vld [vmem:[#allocation180_spill] sm:$0xff]  ;;  %v7116_v38 = vld [vmem:[#allocation197_spill] sm:$0xff] }
  0xdd   :  { %v951_v26 = vmul.f32 %v3833_v59, %v7113_v9  ;;  %v910_v17 = vadd.f32 %v909_v14, %v3869_v40  ;;  %v925_v24 = vadd.f32 %v924_v57, %v3879_v32  ;;  %v952_v60 = vmul.f32 %v3837_v7, %v7114_v44  ;;  %v7117_v48 = vld [vmem:[#allocation181_spill] sm:$0xff]  ;;  %v7118_v32 = vld [vmem:[#allocation198_spill] sm:$0xff]  ;;  %v7120_v57 = vld [vmem:[#allocation199_spill] sm:$0xff] }
  0xde   :  { %v953_v31 = vmul.f32 %v3724_v37, %v7115_v50  ;;  %v954_v28 = vmul.f32 %v3728_v27, %v7116_v38  ;;  %v955_v35 = vmul.f32 %v3732_v43, %v7117_v48  ;;  %v971_v52 = vadd.f32 %v970_v10, %v942_v45  ;;  %v7119_v53 = vld [vmem:[#allocation182_spill] sm:$0xff] }
  0xdf   :  { %v986_v9 = vadd.f32 %v985_v22, %v943_v23  ;;  %v865_v4 = vrot.slane %v864_v51, 2  ;;  %v911_v25 = vadd.f32 %v910_v17, %v3885_v34  ;;  %v926_v40 = vadd.f32 %v925_v24, %v3891_v61  ;;  %v7121_v22 = vld [vmem:[#allocation183_spill] sm:$0xff]  ;;  %v7122_v17 = vld [vmem:[#allocation200_spill] sm:$0xff]  ;;  %v7124_v23 = vld [vmem:[#allocation201_spill] sm:$0xff] }
  0xe0   :  { %v956_v42 = vmul.f32 %v3853_v16, %v7118_v32  ;;  %v957_v14 = vmul.f32 %v3859_v6, %v7119_v53  ;;  %v958_v50 = vmul.f32 %v3865_v36, %v7120_v57  ;;  %v972_v38 = vadd.f32 %v971_v52, %v944_v62  ;;  %v7123_v61 = vld [vmem:[#allocation184_spill] sm:$0xff]  ;;  %v7125_v62 = vld [vmem:[#allocation185_spill] sm:$0xff] }
  0xe1   :  { %v987_v44 = vadd.f32 %v986_v9, %v945_v54  ;;  %v912_v48 = vadd.f32 %v911_v25, %v3899_v13  ;;  %v927_v10 = vadd.f32 %v926_v40, %v3905_v49  ;;  %v959_v34 = vmul.f32 %v3875_v2, %v7121_v22  ;;  %v7126_v25 = vld [vmem:[#allocation202_spill] sm:$0xff] }
  0xe2   :  { %v960_v24 = vmul.f32 %v3881_v46, %v7122_v17  ;;  %v961_v45 = vmul.f32 %v3887_v15, %v7123_v61  ;;  %v4015_v53 = vmul.f32 %v3895_v5, %v7124_v23  ;;  %v973_v57 = vadd.f32 %v972_v38, %v946_v58  ;;  %v7127_v17 = vld [vmem:[#allocation186_spill] sm:$0xff]  ;;  %v7133_v38 = vld [vmem:[#allocation204_spill] sm:$0xff] }
  0xe3   :  { %v988_v52 = vadd.f32 %v987_v44, %v947_v12  ;;  %v866_v54 = vadd.f32 %v865_v4, %v864_v51  ;;  %v913_v13 = vadd.f32 %v912_v48, %v3911_v39  ;;  %v928_v49 = vadd.f32 %v927_v10, %v3919_v19  ;;  %v7128_v39 = vld [vmem:[#allocation203_spill] sm:$0xff]  ;;  %v7131_v48 = vld [vmem:[#allocation25_spill] sm:$0xff]  ;;  %v7135_v10 = vld [vmem:[#allocation188_spill] sm:$0xff] }
  0xe4   :  { %v963_v9 = vmul.f32 %v3901_v0, %v7125_v62  ;;  %v4023_v40 = vmul.f32 %v3907_v1, %v7126_v25  ;;  %v4027_v61 = vmul.f32 %v3915_v21, %v7127_v17  ;;  %v974_v23 = vadd.f32 %v973_v57, %v948_v30  ;;  %v7130_v51 = vld [vmem:[#allocation187_spill] sm:$0xff]  ;;  %v7136_v17 = vld [vmem:[#allocation17_spill] sm:$0xff] }
  0xe5   :  { %v989_v22 = vadd.f32 %v988_v52, %v949_v55  ;;  %v914_v58 = vadd.f32 %v913_v13, %v3925_v33  ;;  %v929_v12 = vadd.f32 %v928_v49, %v3931_v11  ;;  %v4033_v19 = vmul.f32 %v3921_v56, %v7128_v39  ;;  %v7138_v11 = vld [vmem:[#allocation27_spill] sm:$0xff]  ;;  %v7139_v13 = vld [vmem:[#allocation21_spill] sm:$0xff]  ;;  %v7140_v39 = vld [vmem:[#allocation62_spill] sm:$0xff] }
  0xe6   :  { %v4037_v44 = vmul.f32 %v7131_v48, %v7130_v51  ;;  %v4041_v4 = vmul.f32 %v3933_v3, %v7133_v38  ;;  %v4045_v30 = vmul.f32 %v7136_v17, %v7135_v10  ;;  %v975_v55 = vadd.f32 %v974_v23, %v950_v47  ;;  %v7141_v25 = vld [vmem:[#allocation13_spill] sm:$0xff]  ;;  %v7142_v48 = vld [vmem:[#allocation90_spill] sm:$0xff]  ;;  %v7147_v47 = vld [vmem:[#allocation67_spill] sm:$0xff] }
  0xe7   :  { %7129 = vst [vmem:[#allocation35_spill] sm:$0xff] %v4033_v19  ;;  %v990_v33 = vadd.f32 %v989_v22, %v951_v26  ;;  %v867_v57 = vrot.slane %v866_v54, 1  ;;  %v915_v52 = vadd.f32 %v914_v58, %v7138_v11  ;;  %v930_v49 = vadd.f32 %v929_v12, %v7139_v13  ;;  %v7145_v3 = vld [vmem:[#allocation37_spill] sm:$0xff] }
  0xe8   :  { %7132 = vst [vmem:[#allocation22_spill] sm:$0xff] %v4037_v44  ;;  %7134 = vst [vmem:[#allocation23_spill] sm:$0xff] %v4041_v4  ;;  %v1007_v62 = vmul.f32 %v7141_v25, %v7140_v39  ;;  %v976_v51 = vadd.f32 %v975_v55, %v952_v60  ;;  %v7143_v44 = vld [vmem:[#allocation32_spill] sm:$0xff]  ;;  %v7144_v4 = vld [vmem:[#allocation66_spill] sm:$0xff]  ;;  %v1011_v22 = vmul.f32 %v3805_v63, %v7147_v47 }
  0xe9   :  { %7137 = vst [vmem:[#allocation14_spill] sm:$0xff] %v4045_v30  ;;  %v991_v32 = vadd.f32 %v990_v33, %v953_v31  ;;  %v1008_v38 = vmul.f32 %v7143_v44, %v7142_v48  ;;  %v1009_v19 = vmul.f32 %v7145_v3, %v7144_v4  ;;  %v931_v10 = vadd.f32 %v930_v49, %v915_v52  ;;  %v7146_v30 = vld [vmem:[#allocation92_spill] sm:$0xff]  ;;  %v7148_v23 = vld [vmem:[#allocation93_spill] sm:$0xff]  ;;  %v7151_v33 = vld [vmem:[#allocation94_spill] sm:$0xff] }
  0xea   :  { %v1010_v26 = vmul.f32 %v3801_v8, %v7146_v30  ;;  %v1012_v58 = vmul.f32 %v3809_v18, %v7148_v23  ;;  %v977_v12 = vadd.f32 %v976_v51, %v954_v28  ;;  %v7149_v60 = vld [vmem:[#allocation68_spill] sm:$0xff]  ;;  %v7150_v31 = vld [vmem:[#allocation45_spill] sm:$0xff]  ;;  %v1014_v13 = vmul.f32 %v3817_v29, %v7151_v33  ;;  %v7154_v4 = vld [vmem:[#allocation95_spill] sm:$0xff] }
  0xeb   :  { %v992_v11 = vadd.f32 %v991_v32, %v955_v35  ;;  %v1013_v55 = vmul.f32 %v7150_v31, %v7149_v60  ;;  %v4065_v48 = vadd.f32 %v867_v57, %v866_v54  ;;  %v932_v52 = vrot.slane %v931_v10, 4  ;;  %v7153_v49 = vld [vmem:[#allocation69_spill] sm:$0xff]  ;;  %v7155_v23 = vld [vmem:[#allocation72_spill] sm:$0xff] }
  0xec   :  { %v1015_v30 = vmul.f32 %v3821_v41, %v7153_v49  ;;  %v1016_v47 = vmul.f32 %v3825_v20, %v7154_v4  ;;  %v978_v39 = vadd.f32 %v977_v12, %v956_v42  ;;  %v7156_v28 = vld [vmem:[#allocation53_spill] sm:$0xff]  ;;  %v7157_v32 = vld [vmem:[#allocation96_spill] sm:$0xff]  ;;  %v1039_v57 = vadd.f32 %v1009_v19, %v1007_v62  ;;  %v7160_v4 = vld [vmem:[#allocation82_spill] sm:$0xff] }
  0xed   :  { %7152 = vst [vmem:[#allocation36_spill] sm:$0xff] %v4065_v48  ;;  %v993_v63 = vadd.f32 %v992_v11, %v957_v14  ;;  %v1017_v35 = vmul.f32 %v7156_v28, %v7155_v23  ;;  %v1018_v51 = vmul.f32 %v3833_v59, %v7157_v32  ;;  %v933_v60 = vadd.f32 %v932_v52, %v931_v10  ;;  %v7158_v31 = vld [vmem:[#allocation73_spill] sm:$0xff]  ;;  %v7161_v14 = vld [vmem:[#allocation98_spill] sm:$0xff]  ;;  %v7162_v11 = vld [vmem:[#allocation83_spill] sm:$0xff] }
  0xee   :  { %v1019_v54 = vmul.f32 %v3837_v7, %v7158_v31  ;;  %v1054_v48 = vadd.f32 %v1010_v26, %v1008_v38  ;;  %v979_v33 = vadd.f32 %v978_v39, %v958_v50  ;;  %v7159_v49 = vld [vmem:[#allocation97_spill] sm:$0xff]  ;;  %v1021_v42 = vmul.f32 %v3728_v27, %v7160_v4  ;;  %v7163_v62 = vld [vmem:[#allocation99_spill] sm:$0xff]  ;;  %v7165_v19 = vld [vmem:[#allocation100_spill] sm:$0xff] }
  0xef   :  { %v994_v29 = vadd.f32 %v993_v63, %v959_v34  ;;  %v1020_v41 = vmul.f32 %v3724_v37, %v7159_v49  ;;  %v1022_v12 = vmul.f32 %v3732_v43, %v7161_v14  ;;  %v1023_v32 = vmul.f32 %v3853_v16, %v7162_v11  ;;  %v7164_v63 = vld [vmem:[#allocation84_spill] sm:$0xff]  ;;  %v7166_v11 = vld [vmem:[#allocation85_spill] sm:$0xff] }
  0xf0   :  { %v1040_v10 = vadd.f32 %v1039_v57, %v1011_v22  ;;  %v1055_v52 = vadd.f32 %v1054_v48, %v1012_v58  ;;  %v980_v23 = vadd.f32 %v979_v33, %v960_v24  ;;  %v1024_v50 = vmul.f32 %v3859_v6, %v7163_v62  ;;  %v7167_v24 = vld [vmem:[#allocation101_spill] sm:$0xff]  ;;  %v7169_v58 = vld [vmem:[#allocation102_spill] sm:$0xff] }
  0xf1   :  { %v995_v31 = vadd.f32 %v994_v29, %v961_v45  ;;  %v1025_v34 = vmul.f32 %v3865_v36, %v7164_v63  ;;  %v934_v39 = vrot.slane %v933_v60, 2  ;;  %v1026_v38 = vmul.f32 %v3875_v2, %v7165_v19  ;;  %v7168_v45 = vld [vmem:[#allocation86_spill] sm:$0xff]  ;;  %v7179_v19 = vld [vmem:[#allocation105_spill] sm:$0xff] }
  0xf2   :  { %v1041_v26 = vadd.f32 %v1040_v10, %v1013_v55  ;;  %v1056_v4 = vadd.f32 %v1055_v52, %v1014_v13  ;;  %v981_v14 = vadd.f32 %v980_v23, %v4015_v53  ;;  %v1027_v48 = vmul.f32 %v3881_v46, %v7166_v11  ;;  %v7170_v53 = vld [vmem:[#allocation87_spill] sm:$0xff]  ;;  %v7172_v52 = vld [vmem:[#allocation88_spill] sm:$0xff] }
  0xf3   :  { %v996_v49 = vadd.f32 %v995_v31, %v963_v9  ;;  %v1028_v29 = vmul.f32 %v3887_v15, %v7167_v24  ;;  %v1029_v22 = vmul.f32 %v3895_v5, %v7168_v45  ;;  %v1030_v33 = vmul.f32 %v3901_v0, %v7169_v58  ;;  %v7171_v23 = vld [vmem:[#allocation103_spill] sm:$0xff] }
  0xf4   :  { %v1042_v57 = vadd.f32 %v1041_v26, %v1015_v30  ;;  %v1057_v63 = vadd.f32 %v1056_v4, %v1016_v47  ;;  %v982_v55 = vadd.f32 %v981_v14, %v4023_v40  ;;  %v1031_v9 = vmul.f32 %v3907_v1, %v7170_v53  ;;  %v7173_v58 = vld [vmem:[#allocation35_spill] sm:$0xff]  ;;  %v7174_v4 = vld [vmem:[#allocation22_spill] sm:$0xff]  ;;  %v7175_v40 = vld [vmem:[#allocation104_spill] sm:$0xff] }
  0xf5   :  { %v997_v13 = vadd.f32 %v996_v49, %v4027_v61  ;;  %v1032_v31 = vmul.f32 %v3915_v21, %v7171_v23  ;;  %v935_v10 = vadd.f32 %v934_v39, %v933_v60  ;;  %v4108_v24 = vmul.f32 %v3921_v56, %v7172_v52  ;;  %v7176_v14 = vld [vmem:[#allocation25_spill] sm:$0xff]  ;;  %v7178_v26 = vld [vmem:[#allocation26_spill] sm:$0xff]  ;;  %v7180_v39 = vld [vmem:[#allocation91_spill] sm:$0xff] }
  0xf6   :  { %v1043_v45 = vadd.f32 %v1042_v57, %v1017_v35  ;;  %v1058_v11 = vadd.f32 %v1057_v63, %v1018_v51  ;;  %v983_v30 = vadd.f32 %v982_v55, %v7173_v58  ;;  %v1034_v61 = vmul.f32 %v7176_v14, %v7175_v40  ;;  %v7177_v49 = vld [vmem:[#allocation89_spill] sm:$0xff]  ;;  %v7181_v52 = vld [vmem:[#allocation28_spill] sm:$0xff]  ;;  %v7183_v63 = vld [vmem:[#allocation23_spill] sm:$0xff] }
  0xf7   :  { %v998_v47 = vadd.f32 %v997_v13, %v7174_v4  ;;  %v4116_v53 = vmul.f32 %v7178_v26, %v7177_v49  ;;  %v4120_v60 = vmul.f32 %v7136_v17, %v7179_v19  ;;  %v4124_v23 = vmul.f32 %v7181_v52, %v7180_v39  ;;  %v7184_v57 = vld [vmem:[#allocation14_spill] sm:$0xff]  ;;  %v7186_v4 = vld [vmem:[#allocation31_spill] sm:$0xff]  ;;  %v7188_v14 = vld [vmem:[#allocation124_spill] sm:$0xff] }
  0xf8   :  { %v1044_v35 = vadd.f32 %v1043_v45, %v1019_v54  ;;  %v1059_v51 = vadd.f32 %v1058_v11, %v1020_v41  ;;  %v984_v58 = vadd.f32 %v983_v30, %v7183_v63  ;;  %v7185_v13 = vld [vmem:[#allocation106_spill] sm:$0xff]  ;;  %v7187_v49 = vld [vmem:[#allocation107_spill] sm:$0xff]  ;;  %v936_v26 = vrot.slane %v935_v10, 1  ;;  %v7189_v54 = vld [vmem:[#allocation108_spill] sm:$0xff] }
  0xf9   :  { %7182 = vst [vmem:[#allocation15_spill] sm:$0xff] %v4124_v23  ;;  %v999_v55 = vadd.f32 %v998_v47, %v7184_v57  ;;  %v4130_v40 = vmul.f32 %v7186_v4, %v7185_v13  ;;  %v1076_v62 = vmul.f32 %v7141_v25, %v7187_v49  ;;  %v1077_v39 = vmul.f32 %v7143_v44, %v7188_v14  ;;  %v7190_v11 = vld [vmem:[#allocation126_spill] sm:$0xff]  ;;  %v7192_v47 = vld [vmem:[#allocation41_spill] sm:$0xff]  ;;  %v7193_v4 = vld [vmem:[#allocation127_spill] sm:$0xff] }
  0xfa   :  { %v1045_v19 = vadd.f32 %v1044_v35, %v1021_v42  ;;  %v1060_v17 = vadd.f32 %v1059_v51, %v1022_v12  ;;  %v1078_v41 = vmul.f32 %v7145_v3, %v7189_v54  ;;  %v1079_v45 = vmul.f32 %v3801_v8, %v7190_v11  ;;  %v7191_v30 = vld [vmem:[#allocation110_spill] sm:$0xff]  ;;  %v7194_v42 = vld [vmem:[#allocation111_spill] sm:$0xff]  ;;  %v7195_v12 = vld [vmem:[#allocation45_spill] sm:$0xff] }
  0xfb   :  { %v1000_v23 = vadd.f32 %v999_v55, %v984_v58  ;;  %v1080_v63 = vmul.f32 %v7192_v47, %v7191_v30  ;;  %v1081_v49 = vmul.f32 %v3809_v18, %v7193_v4  ;;  %v1082_v35 = vmul.f32 %v7195_v12, %v7194_v42  ;;  %v7196_v14 = vld [vmem:[#allocation128_spill] sm:$0xff]  ;;  %v7197_v58 = vld [vmem:[#allocation46_spill] sm:$0xff]  ;;  %v7199_v54 = vld [vmem:[#allocation49_spill] sm:$0xff] }
  0xfc   :  { %v1046_v57 = vadd.f32 %v1045_v19, %v1023_v32  ;;  %v1061_v13 = vadd.f32 %v1060_v17, %v1024_v50  ;;  %v1083_v55 = vmul.f32 %v7197_v58, %v7196_v14  ;;  %v7198_v44 = vld [vmem:[#allocation112_spill] sm:$0xff]  ;;  %v7200_v25 = vld [vmem:[#allocation129_spill] sm:$0xff]  ;;  %v4152_v8 = vadd.f32 %v936_v26, %v935_v10  ;;  %v7203_v30 = vld [vmem:[#allocation130_spill] sm:$0xff] }
  0xfd   :  { %v1001_v51 = vrot.slane %v1000_v23, 4  ;;  %v1084_v3 = vmul.f32 %v7199_v54, %v7198_v44  ;;  %v1085_v11 = vmul.f32 %v3825_v20, %v7200_v25  ;;  %v7202_v50 = vld [vmem:[#allocation113_spill] sm:$0xff]  ;;  %v1087_v42 = vmul.f32 %v3833_v59, %v7203_v30  ;;  %v7204_v12 = vld [vmem:[#allocation114_spill] sm:$0xff]  ;;  %v7205_v54 = vld [vmem:[#allocation131_spill] sm:$0xff] }
  0xfe   :  { %7201 = vst [vmem:[#allocation39_spill] sm:$0xff] %v4152_v8  ;;  %v1047_v32 = vadd.f32 %v1046_v57, %v1025_v34  ;;  %v1062_v17 = vadd.f32 %v1061_v13, %v1026_v38  ;;  %v1086_v19 = vmul.f32 %v7156_v28, %v7202_v50  ;;  %v1088_v14 = vmul.f32 %v3837_v7, %v7204_v12  ;;  %v7206_v26 = vld [vmem:[#allocation115_spill] sm:$0xff]  ;;  %v7207_v38 = vld [vmem:[#allocation132_spill] sm:$0xff]  ;;  %v7209_v12 = vld [vmem:[#allocation133_spill] sm:$0xff] }
  0xff   :  { %v1002_v4 = vadd.f32 %v1001_v51, %v1000_v23  ;;  %v1108_v58 = vadd.f32 %v1078_v41, %v1076_v62  ;;  %v1089_v25 = vmul.f32 %v3724_v37, %v7205_v54  ;;  %v1123_v10 = vadd.f32 %v1079_v45, %v1077_v39  ;;  %v7208_v23 = vld [vmem:[#allocation116_spill] sm:$0xff]  ;;  %v7210_v41 = vld [vmem:[#allocation117_spill] sm:$0xff]  ;;  %v7211_v45 = vld [vmem:[#allocation134_spill] sm:$0xff] }
 0x100   :  { %v1048_v18 = vadd.f32 %v1047_v32, %v1027_v48  ;;  %v1063_v44 = vadd.f32 %v1062_v17, %v1028_v29  ;;  %v1090_v34 = vmul.f32 %v3728_v27, %v7206_v26  ;;  %v1091_v13 = vmul.f32 %v3732_v43, %v7207_v38  ;;  %v7212_v54 = vld [vmem:[#allocation118_spill] sm:$0xff]  ;;  %v4247_v50 = vld [vmem:[#allocation5 + $0x28] sm:$0xff] }
 0x101   :  { %v1092_v57 = vmul.f32 %v3853_v16, %v7208_v23  ;;  %v1109_v51 = vadd.f32 %v1108_v58, %v1080_v63  ;;  %v1093_v62 = vmul.f32 %v3859_v6, %v7209_v12  ;;  %v1124_v48 = vadd.f32 %v1123_v10, %v1081_v49  ;;  %v7215_v63 = vld [vmem:[#allocation136_spill] sm:$0xff]  ;;  %7238 = vst [vmem:[#allocation18_spill] sm:$0xff] %v4247_v50 }
 0x102   :  { %v1049_v8 = vadd.f32 %v1048_v18, %v1029_v22  ;;  %v1064_v30 = vadd.f32 %v1063_v44, %v1030_v33  ;;  %v1003_v29 = vrot.slane %v1002_v4, 2  ;;  %v1094_v39 = vmul.f32 %v3865_v36, %v7210_v41  ;;  %v7213_v44 = vld [vmem:[#allocation135_spill] sm:$0xff]  ;;  %v4231_v12 = vld [vmem:[#allocation5 + $0x8] sm:$0xff] }
 0x103   :  { %v1095_v32 = vmul.f32 %v3875_v2, %v7211_v45  ;;  %v1110_v17 = vadd.f32 %v1109_v51, %v1082_v35  ;;  %v4176_v23 = vmul.f32 %v3881_v46, %v7212_v54  ;;  %v1125_v18 = vadd.f32 %v1124_v48, %v1083_v55  ;;  %v7214_v33 = vld [vmem:[#allocation119_spill] sm:$0xff]  ;;  %v7217_v51 = vld [vmem:[#allocation137_spill] sm:$0xff]  ;;  %7231 = vst [vmem:[#allocation40_spill] sm:$0xff] %v4231_v12 }
 0x104   :  { %v1050_v26 = vadd.f32 %v1049_v8, %v1031_v9  ;;  %v1065_v38 = vadd.f32 %v1064_v30, %v1032_v31  ;;  %v4180_v22 = vmul.f32 %v3887_v15, %v7213_v44  ;;  %v4184_v49 = vmul.f32 %v3895_v5, %v7214_v33  ;;  %v7216_v31 = vld [vmem:[#allocation120_spill] sm:$0xff]  ;;  %v7218_v33 = vld [vmem:[#allocation122_spill] sm:$0xff]  ;;  %v4227_v45 = vld [vmem:[#allocation5] sm:$0xff] }
 0x105   :  { %v4188_v58 = vmul.f32 %v3901_v0, %v7215_v63  ;;  %v1111_v35 = vadd.f32 %v1110_v17, %v1084_v3  ;;  %v4193_v30 = vmul.f32 %v3907_v1, %v7216_v31  ;;  %v1126_v55 = vadd.f32 %v1125_v18, %v1085_v11  ;;  %v7221_v11 = vld [vmem:[#allocation123_spill] sm:$0xff]  ;;  %7229 = vst [vmem:[#allocation16_spill] sm:$0xff] %v4227_v45 }
 0x106   :  { %v1051_v8 = vadd.f32 %v1050_v26, %v4108_v24  ;;  %v1066_v9 = vadd.f32 %v1065_v38, %v1034_v61  ;;  %v1004_v10 = vadd.f32 %v1003_v29, %v1002_v4  ;;  %v4197_v48 = vmul.f32 %v3915_v21, %v7217_v51  ;;  %v7219_v61 = vld [vmem:[#allocation138_spill] sm:$0xff]  ;;  %v7220_v26 = vld [vmem:[#allocation25_spill] sm:$0xff]  ;;  %v7223_v18 = vld [vmem:[#allocation139_spill] sm:$0xff] }
 0x107   :  { %v4201_v44 = vmul.f32 %v3921_v56, %v7218_v33  ;;  %v1112_v63 = vadd.f32 %v1111_v35, %v1086_v19  ;;  %v4207_v38 = vmul.f32 %v7220_v26, %v7219_v61  ;;  %v1127_v17 = vadd.f32 %v1126_v55, %v1087_v42  ;;  %v7222_v4 = vld [vmem:[#allocation26_spill] sm:$0xff]  ;;  %v7224_v51 = vld [vmem:[#allocation17_spill] sm:$0xff]  ;;  %v7226_v35 = vld [vmem:[#allocation15_spill] sm:$0xff] }
 0x108   :  { %v1052_v3 = vadd.f32 %v1051_v8, %v4116_v53  ;;  %v1067_v24 = vadd.f32 %v1066_v9, %v4120_v60  ;;  %v4211_v29 = vmul.f32 %v7222_v4, %v7221_v11  ;;  %v4215_v31 = vmul.f32 %v7224_v51, %v7223_v18  ;;  %v7225_v33 = vld [vmem:[#allocation125_spill] sm:$0xff]  ;;  %v7227_v9 = vld [vmem:[#allocation140_spill] sm:$0xff]  ;;  %v7228_v61 = vld [vmem:[#allocation31_spill] sm:$0xff] }
 0x109   :  { %v4219_v19 = vmul.f32 %v7181_v52, %v7225_v33  ;;  %v1113_v53 = vadd.f32 %v1112_v63, %v1088_v14  ;;  %v4225_v42 = vmul.f32 %v7228_v61, %v7227_v9  ;;  %v1128_v55 = vadd.f32 %v1127_v17, %v1089_v25  ;;  %v7230_v18 = vld [vmem:[#allocation13_spill] sm:$0xff]  ;;  %v7232_v33 = vld [vmem:[#allocation32_spill] sm:$0xff]  ;;  %v4239_v25 = vld [vmem:[#allocation5 + $0x18] sm:$0xff] }
 0x10a   :  { %v1053_v60 = vadd.f32 %v1052_v3, %v7226_v35  ;;  %v1068_v8 = vadd.f32 %v1067_v24, %v4130_v40  ;;  %v1005_v11 = vrot.slane %v1004_v10, 1  ;;  %v1145_v41 = vmul.f32 %v4227_v45, %v7230_v18  ;;  %v4235_v40 = vld [vmem:[#allocation5 + $0x10] sm:$0xff]  ;;  %7235 = vst [vmem:[#allocation24_spill] sm:$0xff] %v4239_v25  ;;  %v4243_v9 = vld [vmem:[#allocation5 + $0x20] sm:$0xff] }
 0x10b   :  { %v1114_v54 = vadd.f32 %v1113_v53, %v1090_v34  ;;  %v1146_v14 = vmul.f32 %v4231_v12, %v7232_v33  ;;  %v1129_v3 = vadd.f32 %v1128_v55, %v1091_v13  ;;  %7233 = vst [vmem:[#allocation43_spill] sm:$0xff] %v4235_v40  ;;  %v7234_v24 = vld [vmem:[#allocation37_spill] sm:$0xff]  ;;  %v7236_v34 = vld [vmem:[#allocation38_spill] sm:$0xff]  ;;  %7237 = vst [vmem:[#allocation29_spill] sm:$0xff] %v4243_v9 }
 0x10c   :  { %v1069_v63 = vadd.f32 %v1068_v8, %v1053_v60  ;;  %v1147_v35 = vmul.f32 %v4235_v40, %v7234_v24  ;;  %v1148_v17 = vmul.f32 %v4239_v25, %v7236_v34  ;;  %v1149_v45 = vmul.f32 %v4243_v9, %v7192_v47  ;;  %v7239_v60 = vld [vmem:[#allocation42_spill] sm:$0xff]  ;;  %v4251_v8 = vld [vmem:[#allocation5 + $0x30] sm:$0xff]  ;;  %v4259_v25 = vld [vmem:[#allocation5 + $0x40] sm:$0xff] }
 0x10d   :  { %v1115_v53 = vadd.f32 %v1114_v54, %v1092_v57  ;;  %v1150_v13 = vmul.f32 %v4247_v50, %v7239_v60  ;;  %7240 = vst [vmem:[#allocation44_spill] sm:$0xff] %v4251_v8  ;;  %v7241_v55 = vld [vmem:[#allocation45_spill] sm:$0xff]  ;;  %v1130_v24 = vadd.f32 %v1129_v3, %v1093_v62  ;;  %v4255_v33 = vld [vmem:[#allocation5 + $0x38] sm:$0xff]  ;;  %7244 = vst [vmem:[#allocation47_spill] sm:$0xff] %v4259_v25 }
 0x10e   :  { %v1151_v40 = vmul.f32 %v4251_v8, %v7241_v55  ;;  %v1070_v12 = vrot.slane %v1069_v63, 4  ;;  %7242 = vst [vmem:[#allocation19_spill] sm:$0xff] %v4255_v33  ;;  %v7243_v54 = vld [vmem:[#allocation46_spill] sm:$0xff]  ;;  %v7245_v9 = vld [vmem:[#allocation49_spill] sm:$0xff]  ;;  %v4263_v34 = vadd.f32 %v1005_v11, %v1004_v10  ;;  %v4265_v60 = vld [vmem:[#allocation5 + $0x48] sm:$0xff] }
 0x10f   :  { %v1152_v57 = vmul.f32 %v4255_v33, %v7243_v54  ;;  %v1153_v47 = vmul.f32 %v4259_v25, %v7245_v9  ;;  %v1116_v50 = vadd.f32 %v1115_v53, %v1094_v39  ;;  %7247 = vst [vmem:[#allocation33_spill] sm:$0xff] %v4265_v60  ;;  %v1154_v8 = vmul.f32 %v4265_v60, %v3825_v20  ;;  %v4269_v55 = vld [vmem:[#allocation5 + $0x50] sm:$0xff]  ;;  %v4273_v54 = vld [vmem:[#allocation5 + $0x58] sm:$0xff]  ;;  %v4277_v10 = vld [vmem:[#allocation5 + $0x60] sm:$0xff] }
 0x110   :  { %7246 = vst [vmem:[#allocation30_spill] sm:$0xff] %v4263_v34  ;;  %7248 = vst [vmem:[#allocation20_spill] sm:$0xff] %v4269_v55  ;;  %v1155_v62 = vmul.f32 %v4269_v55, %v7156_v28  ;;  %v1071_v3 = vadd.f32 %v1070_v12, %v1069_v63  ;;  %v1131_v33 = vadd.f32 %v1130_v24, %v1095_v32  ;;  %v4282_v53 = vld [vmem:[#allocation5 + $0x68] sm:$0xff]  ;;  %v4287_v63 = vld [vmem:[#allocation5 + $0x70] sm:$0xff] }
 0x111   :  { %7249 = vst [vmem:[#allocation48_spill] sm:$0xff] %v4273_v54  ;;  %v1156_v25 = vmul.f32 %v4273_v54, %v3833_v59  ;;  %7250 = vst [vmem:[#allocation51_spill] sm:$0xff] %v4277_v10  ;;  %v1157_v39 = vmul.f32 %v4277_v10, %v3837_v7  ;;  %v1117_v11 = vadd.f32 %v1116_v50, %v4176_v23  ;;  %v4291_v54 = vld [vmem:[#allocation5 + $0x78] sm:$0xff]  ;;  %v4295_v50 = vld [vmem:[#allocation5 + $0x80] sm:$0xff] }
 0x112   :  { %7251 = vst [vmem:[#allocation52_spill] sm:$0xff] %v4282_v53  ;;  %v1158_v34 = vmul.f32 %v4282_v53, %v3724_v37  ;;  %v1177_v55 = vadd.f32 %v1147_v35, %v1145_v41  ;;  %v1192_v12 = vadd.f32 %v1148_v17, %v1146_v14  ;;  %v1132_v32 = vadd.f32 %v1131_v33, %v4180_v22  ;;  %v4302_v14 = vld [vmem:[#allocation5 + $0x88] sm:$0xff]  ;;  %v4307_v53 = vld [vmem:[#allocation5 + $0x90] sm:$0xff]  ;;  %v4318_v60 = vld [vmem:[#allocation5 + $0xa0] sm:$0xff] }
 0x113   :  { %7252 = vst [vmem:[#allocation55_spill] sm:$0xff] %v4287_v63  ;;  %v1159_v24 = vmul.f32 %v4287_v63, %v3728_v27  ;;  %7253 = vst [vmem:[#allocation56_spill] sm:$0xff] %v4291_v54  ;;  %v1160_v10 = vmul.f32 %v4291_v54, %v3732_v43  ;;  %v4299_v23 = vmul.f32 %v4295_v50, %v3853_v16  ;;  %v1072_v17 = vrot.slane %v1071_v3, 2 }
 0x114   :  { %7254 = vst [vmem:[#allocation59_spill] sm:$0xff] %v4295_v50  ;;  %v1118_v41 = vadd.f32 %v1117_v11, %v4184_v49  ;;  %7255 = vst [vmem:[#allocation60_spill] sm:$0xff] %v4302_v14  ;;  %v1162_v22 = vmul.f32 %v4302_v14, %v3859_v6  ;;  %v1178_v33 = vadd.f32 %v1177_v55, %v1149_v45  ;;  %v4313_v50 = vld [vmem:[#allocation5 + $0x98] sm:$0xff] }
 0x115   :  { %v1193_v35 = vadd.f32 %v1192_v12, %v1150_v13  ;;  %v1133_v63 = vadd.f32 %v1132_v32, %v4188_v58  ;;  %7256 = vst [vmem:[#allocation64_spill] sm:$0xff] %v4307_v53  ;;  %v4311_v54 = vmul.f32 %v4307_v53, %v3865_v36  ;;  %7257 = vst [vmem:[#allocation65_spill] sm:$0xff] %v4313_v50  ;;  %v4325_v12 = vld [vmem:[#allocation5 + $0xa8] sm:$0xff]  ;;  %v4329_v53 = vld [vmem:[#allocation5 + $0xb0] sm:$0xff] }
 0x116   :  { %v1164_v49 = vmul.f32 %v4313_v50, %v3875_v2  ;;  %v1119_v11 = vadd.f32 %v1118_v41, %v4193_v30  ;;  %7258 = vst [vmem:[#allocation70_spill] sm:$0xff] %v4318_v60  ;;  %v4322_v45 = vmul.f32 %v4318_v60, %v3881_v46  ;;  %v1179_v58 = vadd.f32 %v1178_v33, %v1151_v40  ;;  %v4335_v41 = vld [vmem:[#allocation5 + $0xb8] sm:$0xff] }
 0x117   :  { %v1194_v13 = vadd.f32 %v1193_v35, %v1152_v57  ;;  %v1134_v55 = vadd.f32 %v1133_v63, %v4197_v48  ;;  %7259 = vst [vmem:[#allocation71_spill] sm:$0xff] %v4325_v12  ;;  %v1166_v32 = vmul.f32 %v4325_v12, %v3887_v15  ;;  %7260 = vst [vmem:[#allocation74_spill] sm:$0xff] %v4329_v53  ;;  %v4342_v48 = vld [vmem:[#allocation5 + $0xc0] sm:$0xff]  ;;  %v4349_v12 = vld [vmem:[#allocation5 + $0xc8] sm:$0xff] }
 0x118   :  { %v4333_v30 = vmul.f32 %v4329_v53, %v3895_v5  ;;  %7261 = vst [vmem:[#allocation75_spill] sm:$0xff] %v4335_v41  ;;  %v4339_v60 = vmul.f32 %v4335_v41, %v3901_v0  ;;  %v1120_v40 = vadd.f32 %v1119_v11, %v4201_v44  ;;  %7262 = vst [vmem:[#allocation76_spill] sm:$0xff] %v4342_v48  ;;  %v4355_v41 = vld [vmem:[#allocation5 + $0xd0] sm:$0xff] }
 0x119   :  { %v4346_v57 = vmul.f32 %v4342_v48, %v3907_v1  ;;  %v1180_v63 = vadd.f32 %v1179_v58, %v1153_v47  ;;  %v1195_v33 = vadd.f32 %v1194_v13, %v1154_v8  ;;  %v1073_v35 = vadd.f32 %v1072_v17, %v1071_v3  ;;  %7263 = vst [vmem:[#allocation77_spill] sm:$0xff] %v4349_v12  ;;  %v4362_v48 = vld [vmem:[#allocation5 + $0xd8] sm:$0xff]  ;;  %v4369_v17 = vld [vmem:[#allocation5 + $0xe0] sm:$0xff]  ;;  %v4375_v13 = vld [vmem:[#allocation5 + $0xe8] sm:$0xff] }
 0x11a   :  { %v1135_v53 = vadd.f32 %v1134_v55, %v4207_v38  ;;  %v4353_v50 = vmul.f32 %v4349_v12, %v3915_v21  ;;  %7264 = vst [vmem:[#allocation78_spill] sm:$0xff] %v4355_v41  ;;  %v4359_v44 = vmul.f32 %v4355_v41, %v3921_v56  ;;  %v1121_v11 = vadd.f32 %v1120_v40, %v4211_v29  ;;  %v4381_v55 = vld [vmem:[#allocation5 + $0xf0] sm:$0xff]  ;;  %v7274_v12 = vld [vmem:[#allocation32_spill] sm:$0xff] }
 0x11b   :  { %7265 = vst [vmem:[#allocation79_spill] sm:$0xff] %v4362_v48  ;;  %v4366_v47 = vmul.f32 %v4362_v48, %v7220_v26  ;;  %v1181_v38 = vadd.f32 %v1180_v63, %v1155_v62  ;;  %v1196_v8 = vadd.f32 %v1195_v33, %v1156_v25  ;;  %7266 = vst [vmem:[#allocation80_spill] sm:$0xff] %v4369_v17  ;;  %v4388_v25 = vld [vmem:[#allocation5 + $0xf8] sm:$0xff]  ;;  %v1074_v33 = vrot.slane %v1073_v35, 1  ;;  %v7273_v41 = vld [vmem:[#allocation141_spill] sm:$0xff] }
 0x11c   :  { %v1136_v3 = vadd.f32 %v1135_v53, %v4215_v31  ;;  %v4373_v58 = vmul.f32 %v4369_v17, %v7222_v4  ;;  %7267 = vst [vmem:[#allocation34_spill] sm:$0xff] %v4375_v13  ;;  %v4379_v29 = vmul.f32 %v4375_v13, %v7224_v51  ;;  %7268 = vst [vmem:[#allocation54_spill] sm:$0xff] %v4381_v55  ;;  %v7272_v17 = vld [vmem:[#allocation153_spill] sm:$0xff]  ;;  %v7277_v51 = vld [vmem:[#allocation142_spill] sm:$0xff] }
 0x11d   :  { %v4385_v62 = vmul.f32 %v4381_v55, %v7181_v52  ;;  %v1122_v31 = vadd.f32 %v1121_v11, %v4219_v19  ;;  %7270 = vst [vmem:[#allocation57_spill] sm:$0xff] %v4388_v25  ;;  %v4392_v53 = vmul.f32 %v4388_v25, %v7228_v61  ;;  %v1182_v40 = vadd.f32 %v1181_v38, %v1157_v39  ;;  %v7275_v19 = vld [vmem:[#allocation158_spill] sm:$0xff]  ;;  %v7276_v11 = vld [vmem:[#allocation37_spill] sm:$0xff]  ;;  %v7279_v39 = vld [vmem:[#allocation159_spill] sm:$0xff] }
 0x11e   :  { %v1197_v63 = vadd.f32 %v1196_v8, %v1158_v34  ;;  %v1137_v13 = vadd.f32 %v1136_v3, %v4225_v42  ;;  %v1214_v48 = vmul.f32 %v7230_v18, %v7272_v17  ;;  %v1215_v55 = vmul.f32 %v7274_v12, %v7273_v41  ;;  %v7278_v4 = vld [vmem:[#allocation38_spill] sm:$0xff]  ;;  %v7280_v34 = vld [vmem:[#allocation41_spill] sm:$0xff]  ;;  %v7281_v8 = vld [vmem:[#allocation143_spill] sm:$0xff] }
 0x11f   :  { %7269 = vst [vmem:[#allocation81_spill] sm:$0xff] %v4385_v62  ;;  %7271 = vst [vmem:[#allocation58_spill] sm:$0xff] %v4392_v53  ;;  %v1183_v14 = vadd.f32 %v1182_v40, %v1159_v24  ;;  %v1216_v52 = vmul.f32 %v7276_v11, %v7275_v19  ;;  %v1217_v25 = vmul.f32 %v7278_v4, %v7277_v51  ;;  %v7282_v42 = vld [vmem:[#allocation42_spill] sm:$0xff]  ;;  %v7283_v61 = vld [vmem:[#allocation160_spill] sm:$0xff] }
 0x120   :  { %v1198_v62 = vadd.f32 %v1197_v63, %v1160_v10  ;;  %v1138_v53 = vadd.f32 %v1137_v13, %v1122_v31  ;;  %v1218_v38 = vmul.f32 %v7280_v34, %v7279_v39  ;;  %v1219_v3 = vmul.f32 %v7282_v42, %v7281_v8  ;;  %v7284_v17 = vld [vmem:[#allocation45_spill] sm:$0xff]  ;;  %v7285_v10 = vld [vmem:[#allocation144_spill] sm:$0xff]  ;;  %v7286_v40 = vld [vmem:[#allocation46_spill] sm:$0xff] }
 0x121   :  { %v1220_v18 = vmul.f32 %v7284_v17, %v7283_v61  ;;  %v1184_v41 = vadd.f32 %v1183_v14, %v4299_v23  ;;  %v1221_v63 = vmul.f32 %v7286_v40, %v7285_v10  ;;  %v7287_v19 = vld [vmem:[#allocation161_spill] sm:$0xff]  ;;  %v4414_v51 = vadd.f32 %v1074_v33, %v1073_v35  ;;  %v7290_v34 = vld [vmem:[#allocation162_spill] sm:$0xff] }
 0x122   :  { %v1199_v24 = vadd.f32 %v1198_v62, %v1162_v22  ;;  %v1222_v11 = vmul.f32 %v7245_v9, %v7287_v19  ;;  %v1139_v13 = vrot.slane %v1138_v53, 4  ;;  %v7289_v31 = vld [vmem:[#allocation145_spill] sm:$0xff]  ;;  %v1224_v8 = vmul.f32 %v7156_v28, %v7290_v34  ;;  %v7291_v23 = vld [vmem:[#allocation146_spill] sm:$0xff]  ;;  %v7292_v22 = vld [vmem:[#allocation163_spill] sm:$0xff] }
 0x123   :  { %7288 = vst [vmem:[#allocation61_spill] sm:$0xff] %v4414_v51  ;;  %v1223_v39 = vmul.f32 %v3825_v20, %v7289_v31  ;;  %v1185_v61 = vadd.f32 %v1184_v41, %v4311_v54  ;;  %v1225_v14 = vmul.f32 %v3833_v59, %v7291_v23  ;;  %v1226_v62 = vmul.f32 %v3837_v7, %v7292_v22  ;;  %v7293_v19 = vld [vmem:[#allocation147_spill] sm:$0xff]  ;;  %v7294_v9 = vld [vmem:[#allocation164_spill] sm:$0xff]  ;;  %v7296_v41 = vld [vmem:[#allocation165_spill] sm:$0xff] }
 0x124   :  { %v1200_v17 = vadd.f32 %v1199_v24, %v1164_v49  ;;  %v1140_v10 = vadd.f32 %v1139_v13, %v1138_v53  ;;  %v1227_v35 = vmul.f32 %v3724_v37, %v7293_v19  ;;  %v1246_v33 = vadd.f32 %v1216_v52, %v1214_v48  ;;  %v7295_v54 = vld [vmem:[#allocation148_spill] sm:$0xff]  ;;  %v7297_v23 = vld [vmem:[#allocation149_spill] sm:$0xff] }
 0x125   :  { %v1261_v51 = vadd.f32 %v1217_v25, %v1215_v55  ;;  %v1186_v31 = vadd.f32 %v1185_v61, %v4322_v45  ;;  %v1228_v34 = vmul.f32 %v3728_v27, %v7294_v9  ;;  %v1229_v49 = vmul.f32 %v3732_v43, %v7295_v54  ;;  %v7298_v61 = vld [vmem:[#allocation166_spill] sm:$0xff]  ;;  %v7300_v25 = vld [vmem:[#allocation167_spill] sm:$0xff]  ;;  %v7321_v19 = vld [vmem:[#allocation173_spill] sm:$0xff] }
 0x126   :  { %v1201_v20 = vadd.f32 %v1200_v17, %v1166_v32  ;;  %v1230_v24 = vmul.f32 %v3853_v16, %v7296_v41  ;;  %v1231_v53 = vmul.f32 %v3859_v6, %v7297_v23  ;;  %v1247_v13 = vadd.f32 %v1246_v33, %v1218_v38  ;;  %v7299_v32 = vld [vmem:[#allocation150_spill] sm:$0xff]  ;;  %v7301_v38 = vld [vmem:[#allocation151_spill] sm:$0xff]  ;;  %v7304_v33 = vld [vmem:[#allocation169_spill] sm:$0xff] }
 0x127   :  { %v1262_v22 = vadd.f32 %v1261_v51, %v1219_v3  ;;  %v1187_v52 = vadd.f32 %v1186_v31, %v4333_v30  ;;  %v1232_v45 = vmul.f32 %v3865_v36, %v7298_v61  ;;  %v1233_v17 = vmul.f32 %v3875_v2, %v7299_v32  ;;  %v7303_v3 = vld [vmem:[#allocation152_spill] sm:$0xff] }
 0x128   :  { %v1202_v48 = vadd.f32 %v1201_v20, %v4339_v60  ;;  %v1141_v55 = vrot.slane %v1140_v10, 2  ;;  %v1234_v54 = vmul.f32 %v3881_v46, %v7300_v25  ;;  %v1248_v41 = vadd.f32 %v1247_v13, %v1220_v18  ;;  %v7302_v20 = vld [vmem:[#allocation168_spill] sm:$0xff]  ;;  %v7306_v13 = vld [vmem:[#allocation170_spill] sm:$0xff] }
 0x129   :  { %v1263_v9 = vadd.f32 %v1262_v22, %v1221_v63  ;;  %v1188_v23 = vadd.f32 %v1187_v52, %v4346_v57  ;;  %v1235_v30 = vmul.f32 %v3887_v15, %v7301_v38  ;;  %v1236_v60 = vmul.f32 %v3895_v5, %v7302_v20  ;;  %v7307_v20 = vld [vmem:[#allocation155_spill] sm:$0xff] }
 0x12a   :  { %v1203_v51 = vadd.f32 %v1202_v48, %v4353_v50  ;;  %v1237_v31 = vmul.f32 %v3901_v0, %v7303_v3  ;;  %v4454_v32 = vmul.f32 %v3907_v1, %v7304_v33  ;;  %v1249_v25 = vadd.f32 %v1248_v41, %v1222_v11  ;;  %v7305_v50 = vld [vmem:[#allocation154_spill] sm:$0xff]  ;;  %v7308_v11 = vld [vmem:[#allocation171_spill] sm:$0xff]  ;;  %v7311_v41 = vld [vmem:[#allocation17_spill] sm:$0xff] }
 0x12b   :  { %v1264_v18 = vadd.f32 %v1263_v9, %v1223_v39  ;;  %v1189_v63 = vadd.f32 %v1188_v23, %v4359_v44  ;;  %v1239_v22 = vmul.f32 %v3915_v21, %v7305_v50  ;;  %v4462_v52 = vmul.f32 %v3921_v56, %v7306_v13  ;;  %v7310_v23 = vld [vmem:[#allocation156_spill] sm:$0xff]  ;;  %v7316_v50 = vld [vmem:[#allocation31_spill] sm:$0xff] }
 0x12c   :  { %v1204_v57 = vadd.f32 %v1203_v51, %v4366_v47  ;;  %v1142_v48 = vadd.f32 %v1141_v55, %v1140_v10  ;;  %v4466_v3 = vmul.f32 %v7220_v26, %v7307_v20  ;;  %v1250_v33 = vadd.f32 %v1249_v25, %v1224_v8  ;;  %v7309_v47 = vld [vmem:[#allocation26_spill] sm:$0xff]  ;;  %v7312_v13 = vld [vmem:[#allocation172_spill] sm:$0xff]  ;;  %v7315_v20 = vld [vmem:[#allocation157_spill] sm:$0xff] }
 0x12d   :  { %v1265_v38 = vadd.f32 %v1264_v18, %v1225_v14  ;;  %v1190_v9 = vadd.f32 %v1189_v63, %v4373_v58  ;;  %v4472_v39 = vmul.f32 %v7309_v47, %v7308_v11  ;;  %v4476_v51 = vmul.f32 %v7311_v41, %v7310_v23  ;;  %v7313_v10 = vld [vmem:[#allocation28_spill] sm:$0xff]  ;;  %v7317_v25 = vld [vmem:[#allocation81_spill] sm:$0xff]  ;;  %v7318_v18 = vld [vmem:[#allocation58_spill] sm:$0xff] }
 0x12e   :  { %v1205_v44 = vadd.f32 %v1204_v57, %v4379_v29  ;;  %v4480_v55 = vmul.f32 %v7313_v10, %v7312_v13  ;;  %v4484_v8 = vmul.f32 %v7316_v50, %v7315_v20  ;;  %v1251_v14 = vadd.f32 %v1250_v33, %v1226_v62  ;;  %v7319_v57 = vld [vmem:[#allocation189_spill] sm:$0xff]  ;;  %v7324_v50 = vld [vmem:[#allocation174_spill] sm:$0xff] }
 0x12f   :  { %v1266_v58 = vadd.f32 %v1265_v38, %v1227_v35  ;;  %v1191_v29 = vadd.f32 %v1190_v9, %v7317_v25  ;;  %v7320_v11 = vld [vmem:[#allocation13_spill] sm:$0xff]  ;;  %v1284_v23 = vmul.f32 %v7274_v12, %v7321_v19  ;;  %v1143_v41 = vrot.slane %v1142_v48, 1  ;;  %v7325_v35 = vld [vmem:[#allocation191_spill] sm:$0xff] }
 0x130   :  { %7314 = vst [vmem:[#allocation63_spill] sm:$0xff] %v4480_v55  ;;  %v1206_v63 = vadd.f32 %v1205_v44, %v7318_v18  ;;  %v1283_v61 = vmul.f32 %v7320_v11, %v7319_v57  ;;  %v1252_v47 = vadd.f32 %v1251_v14, %v1228_v34  ;;  %v7322_v55 = vld [vmem:[#allocation190_spill] sm:$0xff]  ;;  %v7323_v10 = vld [vmem:[#allocation37_spill] sm:$0xff]  ;;  %v1286_v62 = vmul.f32 %v7278_v4, %v7324_v50  ;;  %v7327_v9 = vld [vmem:[#allocation175_spill] sm:$0xff] }
 0x131   :  { %v1267_v13 = vadd.f32 %v1266_v58, %v1229_v49  ;;  %v1285_v26 = vmul.f32 %v7323_v10, %v7322_v55  ;;  %v7326_v38 = vld [vmem:[#allocation41_spill] sm:$0xff]  ;;  %v1288_v44 = vmul.f32 %v7282_v42, %v7327_v9  ;;  %v7328_v57 = vld [vmem:[#allocation192_spill] sm:$0xff]  ;;  %v7334_v50 = vld [vmem:[#allocation50_spill] sm:$0xff] }
 0x132   :  { %v1207_v20 = vadd.f32 %v1206_v63, %v1191_v29  ;;  %v1287_v33 = vmul.f32 %v7326_v38, %v7325_v35  ;;  %v1253_v25 = vadd.f32 %v1252_v47, %v1230_v24  ;;  %v7329_v19 = vld [vmem:[#allocation45_spill] sm:$0xff]  ;;  %v7330_v34 = vld [vmem:[#allocation176_spill] sm:$0xff]  ;;  %v7335_v4 = vld [vmem:[#allocation194_spill] sm:$0xff]  ;;  %v4510_v38 = vadd.f32 %v1143_v41, %v1142_v48 }
 0x133   :  { %v1268_v18 = vadd.f32 %v1267_v13, %v1231_v53  ;;  %v1289_v12 = vmul.f32 %v7329_v19, %v7328_v57  ;;  %v1290_v49 = vmul.f32 %v7286_v40, %v7330_v34  ;;  %v7331_v58 = vld [vmem:[#allocation193_spill] sm:$0xff]  ;;  %v1293_v35 = vmul.f32 %v7156_v28, %v7335_v4  ;;  %v7337_v13 = vld [vmem:[#allocation178_spill] sm:$0xff]  ;;  %v7338_v9 = vld [vmem:[#allocation195_spill] sm:$0xff] }
 0x134   :  { %v1208_v14 = vrot.slane %v1207_v20, 4  ;;  %v7332_v29 = vld [vmem:[#allocation49_spill] sm:$0xff]  ;;  %7336 = vst [vmem:[#allocation27_spill] sm:$0xff] %v4510_v38  ;;  %v1254_v24 = vadd.f32 %v1253_v25, %v1232_v45  ;;  %v1294_v47 = vmul.f32 %v3833_v59, %v7337_v13  ;;  %v1295_v34 = vmul.f32 %v3837_v7, %v7338_v9  ;;  %v7339_v42 = vld [vmem:[#allocation179_spill] sm:$0xff]  ;;  %v7341_v41 = vld [vmem:[#allocation180_spill] sm:$0xff] }
 0x135   :  { %v1291_v63 = vmul.f32 %v7332_v29, %v7331_v58  ;;  %v7333_v55 = vld [vmem:[#allocation177_spill] sm:$0xff]  ;;  %v1269_v53 = vadd.f32 %v1268_v18, %v1233_v17  ;;  %v1315_v40 = vadd.f32 %v1285_v26, %v1283_v61  ;;  %v1330_v19 = vadd.f32 %v1286_v62, %v1284_v23  ;;  %v7344_v61 = vld [vmem:[#allocation198_spill] sm:$0xff] }
 0x136   :  { %v1292_v11 = vmul.f32 %v7334_v50, %v7333_v55  ;;  %v1209_v57 = vadd.f32 %v1208_v14, %v1207_v20  ;;  %v1255_v58 = vadd.f32 %v1254_v24, %v1234_v54  ;;  %v1296_v55 = vmul.f32 %v3724_v37, %v7339_v42  ;;  %v7340_v50 = vld [vmem:[#allocation196_spill] sm:$0xff]  ;;  %v7342_v17 = vld [vmem:[#allocation197_spill] sm:$0xff]  ;;  %v7345_v23 = vld [vmem:[#allocation182_spill] sm:$0xff] }
 0x137   :  { %v1270_v29 = vadd.f32 %v1269_v53, %v1235_v30  ;;  %v1297_v48 = vmul.f32 %v3728_v27, %v7340_v50  ;;  %v1298_v45 = vmul.f32 %v3732_v43, %v7341_v41  ;;  %v1299_v25 = vmul.f32 %v3853_v16, %v7342_v17  ;;  %v7343_v26 = vld [vmem:[#allocation181_spill] sm:$0xff]  ;;  %v7346_v17 = vld [vmem:[#allocation199_spill] sm:$0xff]  ;;  %v7365_v41 = vld [vmem:[#allocation90_spill] sm:$0xff] }
 0x138   :  { %v1316_v20 = vadd.f32 %v1315_v40, %v1287_v33  ;;  %v1331_v18 = vadd.f32 %v1330_v19, %v1288_v44  ;;  %v1256_v14 = vadd.f32 %v1255_v58, %v1236_v60  ;;  %v1300_v54 = vmul.f32 %v3859_v6, %v7343_v26  ;;  %v7347_v40 = vld [vmem:[#allocation183_spill] sm:$0xff]  ;;  %v7349_v44 = vld [vmem:[#allocation184_spill] sm:$0xff]  ;;  %v7366_v50 = vld [vmem:[#allocation38_spill] sm:$0xff] }
 0x139   :  { %v1271_v38 = vadd.f32 %v1270_v29, %v1237_v31  ;;  %v1301_v30 = vmul.f32 %v3865_v36, %v7344_v61  ;;  %v1210_v37 = vrot.slane %v1209_v57, 2  ;;  %v1302_v27 = vmul.f32 %v3875_v2, %v7345_v23  ;;  %v7348_v31 = vld [vmem:[#allocation200_spill] sm:$0xff]  ;;  %v7373_v4 = vld [vmem:[#allocation93_spill] sm:$0xff] }
 0x13a   :  { %v1317_v62 = vadd.f32 %v1316_v20, %v1289_v12  ;;  %v1332_v24 = vadd.f32 %v1331_v18, %v1290_v49  ;;  %v1257_v43 = vadd.f32 %v1256_v14, %v4454_v32  ;;  %v1303_v19 = vmul.f32 %v3881_v46, %v7346_v17  ;;  %v7350_v32 = vld [vmem:[#allocation201_spill] sm:$0xff]  ;;  %v7352_v14 = vld [vmem:[#allocation202_spill] sm:$0xff] }
 0x13b   :  { %v1272_v53 = vadd.f32 %v1271_v38, %v1239_v22  ;;  %v1304_v60 = vmul.f32 %v3887_v15, %v7347_v40  ;;  %v1305_v33 = vmul.f32 %v3895_v5, %v7348_v31  ;;  %v1306_v58 = vmul.f32 %v3901_v0, %v7349_v44  ;;  %v7351_v38 = vld [vmem:[#allocation185_spill] sm:$0xff] }
 0x13c   :  { %v1318_v29 = vadd.f32 %v1317_v62, %v1291_v63  ;;  %v1333_v61 = vadd.f32 %v1332_v24, %v1292_v11  ;;  %v1258_v12 = vadd.f32 %v1257_v43, %v4462_v52  ;;  %v1307_v22 = vmul.f32 %v3907_v1, %v7350_v32  ;;  %v7353_v52 = vld [vmem:[#allocation186_spill] sm:$0xff]  ;;  %v7354_v62 = vld [vmem:[#allocation25_spill] sm:$0xff]  ;;  %v7355_v24 = vld [vmem:[#allocation203_spill] sm:$0xff] }
 0x13d   :  { %v1273_v49 = vadd.f32 %v1272_v53, %v4466_v3  ;;  %v1308_v20 = vmul.f32 %v3915_v21, %v7351_v38  ;;  %v1211_v18 = vadd.f32 %v1210_v37, %v1209_v57  ;;  %v4547_v40 = vmul.f32 %v3921_v56, %v7352_v14  ;;  %v7356_v43 = vld [vmem:[#allocation26_spill] sm:$0xff]  ;;  %v7357_v32 = vld [vmem:[#allocation187_spill] sm:$0xff]  ;;  %v7358_v38 = vld [vmem:[#allocation17_spill] sm:$0xff] }
 0x13e   :  { %v1319_v31 = vadd.f32 %v1318_v29, %v1293_v35  ;;  %v1334_v17 = vadd.f32 %v1333_v61, %v1294_v47  ;;  %v1259_v63 = vadd.f32 %v1258_v12, %v4472_v39  ;;  %v1310_v3 = vmul.f32 %v7354_v62, %v7353_v52  ;;  %v7359_v37 = vld [vmem:[#allocation204_spill] sm:$0xff]  ;;  %v7361_v39 = vld [vmem:[#allocation63_spill] sm:$0xff] }
 0x13f   :  { %v1274_v11 = vadd.f32 %v1273_v49, %v4476_v51  ;;  %v4555_v53 = vmul.f32 %v7356_v43, %v7355_v24  ;;  %v4559_v57 = vmul.f32 %v7358_v38, %v7357_v32  ;;  %v7360_v14 = vld [vmem:[#allocation28_spill] sm:$0xff]  ;;  %v7363_v12 = vld [vmem:[#allocation31_spill] sm:$0xff]  ;;  %v7364_v24 = vld [vmem:[#allocation62_spill] sm:$0xff]  ;;  %v1212_v23 = vrot.slane %v1211_v18, 1 }
 0x140   :  { %v4563_v44 = vmul.f32 %v7360_v14, %v7359_v37  ;;  %v1320_v35 = vadd.f32 %v1319_v31, %v1295_v34  ;;  %v1335_v47 = vadd.f32 %v1334_v17, %v1296_v55  ;;  %v1260_v61 = vadd.f32 %v1259_v63, %v7361_v39  ;;  %v7362_v29 = vld [vmem:[#allocation188_spill] sm:$0xff]  ;;  %v7367_v34 = vld [vmem:[#allocation66_spill] sm:$0xff]  ;;  %v7368_v55 = vld [vmem:[#allocation41_spill] sm:$0xff] }
 0x141   :  { %v1275_v51 = vadd.f32 %v1274_v11, %v4484_v8  ;;  %v4569_v49 = vmul.f32 %v7363_v12, %v7362_v29  ;;  %v1352_v52 = vmul.f32 %v7323_v10, %v7364_v24  ;;  %v1353_v37 = vmul.f32 %v7366_v50, %v7365_v41  ;;  %v7369_v31 = vld [vmem:[#allocation92_spill] sm:$0xff]  ;;  %v7370_v63 = vld [vmem:[#allocation42_spill] sm:$0xff]  ;;  %v7371_v11 = vld [vmem:[#allocation67_spill] sm:$0xff] }
 0x142   :  { %v1321_v32 = vadd.f32 %v1320_v35, %v1297_v48  ;;  %v1336_v26 = vadd.f32 %v1335_v47, %v1298_v45  ;;  %v1354_v17 = vmul.f32 %v7368_v55, %v7367_v34  ;;  %v1355_v8 = vmul.f32 %v7370_v63, %v7369_v31  ;;  %v7372_v39 = vld [vmem:[#allocation45_spill] sm:$0xff]  ;;  %v7374_v10 = vld [vmem:[#allocation46_spill] sm:$0xff]  ;;  %v7375_v48 = vld [vmem:[#allocation68_spill] sm:$0xff] }
 0x143   :  { %v1276_v42 = vadd.f32 %v1275_v51, %v1260_v61  ;;  %v1356_v29 = vmul.f32 %v7372_v39, %v7371_v11  ;;  %v1357_v24 = vmul.f32 %v7374_v10, %v7373_v4  ;;  %v7376_v45 = vld [vmem:[#allocation49_spill] sm:$0xff]  ;;  %v7377_v50 = vld [vmem:[#allocation94_spill] sm:$0xff]  ;;  %v7380_v34 = vld [vmem:[#allocation95_spill] sm:$0xff]  ;;  %v4591_v31 = vadd.f32 %v1212_v23, %v1211_v18 }
 0x144   :  { %v1322_v9 = vadd.f32 %v1321_v32, %v1299_v25  ;;  %v1337_v13 = vadd.f32 %v1336_v26, %v1300_v54  ;;  %v1358_v35 = vmul.f32 %v7376_v45, %v7375_v48  ;;  %v7378_v61 = vld [vmem:[#allocation50_spill] sm:$0xff]  ;;  %v7379_v41 = vld [vmem:[#allocation69_spill] sm:$0xff]  ;;  %v1361_v63 = vmul.f32 %v3833_v59, %v7380_v34  ;;  %v7382_v54 = vld [vmem:[#allocation72_spill] sm:$0xff] }
 0x145   :  { %v1277_v47 = vrot.slane %v1276_v42, 4  ;;  %v1359_v51 = vmul.f32 %v7378_v61, %v7377_v50  ;;  %v1360_v55 = vmul.f32 %v7156_v28, %v7379_v41  ;;  %7381 = vst [vmem:[#allocation21_spill] sm:$0xff] %v4591_v31  ;;  %v1362_v32 = vmul.f32 %v3837_v7, %v7382_v54  ;;  %v4595_v10 = vld [vmem:[#allocation2 + $0x58] sm:$0xff]  ;;  %v7384_v45 = vld [vmem:[#allocation96_spill] sm:$0xff]  ;;  %v4599_v61 = vld [vmem:[#allocation2 + $0x60] sm:$0xff] }
 0x146   :  { %v1323_v25 = vadd.f32 %v1322_v9, %v1301_v30  ;;  %v1338_v26 = vadd.f32 %v1337_v13, %v1302_v27  ;;  %7383 = vst [vmem:[#allocation53_spill] sm:$0xff] %v4595_v10  ;;  %v1363_v48 = vmul.f32 %v4595_v10, %v7384_v45  ;;  %v7385_v50 = vld [vmem:[#allocation73_spill] sm:$0xff]  ;;  %v1384_v41 = vadd.f32 %v1354_v17, %v1352_v52  ;;  %v4603_v18 = vld [vmem:[#allocation2 + $0x68] sm:$0xff]  ;;  %v7388_v27 = vld [vmem:[#allocation98_spill] sm:$0xff] }
 0x147   :  { %v1278_v39 = vadd.f32 %v1277_v47, %v1276_v42  ;;  %v1364_v28 = vmul.f32 %v4599_v61, %v7385_v50  ;;  %v7386_v9 = vld [vmem:[#allocation97_spill] sm:$0xff]  ;;  %v1399_v7 = vadd.f32 %v1355_v8, %v1353_v37  ;;  %v7387_v42 = vld [vmem:[#allocation82_spill] sm:$0xff]  ;;  %v1367_v47 = vmul.f32 %v3859_v6, %v7388_v27  ;;  %v7389_v31 = vld [vmem:[#allocation83_spill] sm:$0xff] }
 0x148   :  { %v1324_v59 = vadd.f32 %v1323_v25, %v1303_v19  ;;  %v1339_v23 = vadd.f32 %v1338_v26, %v1304_v60  ;;  %v1365_v13 = vmul.f32 %v4603_v18, %v7386_v9  ;;  %v1366_v30 = vmul.f32 %v3853_v16, %v7387_v42  ;;  %v7390_v19 = vld [vmem:[#allocation99_spill] sm:$0xff]  ;;  %v7391_v26 = vld [vmem:[#allocation84_spill] sm:$0xff]  ;;  %v7393_v27 = vld [vmem:[#allocation85_spill] sm:$0xff] }
 0x149   :  { %v1368_v45 = vmul.f32 %v3865_v36, %v7389_v31  ;;  %v1385_v54 = vadd.f32 %v1384_v41, %v1356_v29  ;;  %v1369_v60 = vmul.f32 %v3875_v2, %v7390_v19  ;;  %v1400_v17 = vadd.f32 %v1399_v7, %v1357_v24  ;;  %v7392_v8 = vld [vmem:[#allocation100_spill] sm:$0xff]  ;;  %v7395_v2 = vld [vmem:[#allocation86_spill] sm:$0xff]  ;;  %v7404_v7 = vld [vmem:[#allocation13_spill] sm:$0xff] }
 0x14a   :  { %v1325_v50 = vadd.f32 %v1324_v59, %v1305_v33  ;;  %v1340_v52 = vadd.f32 %v1339_v23, %v1306_v58  ;;  %v1279_v25 = vrot.slane %v1278_v39, 2  ;;  %v1370_v37 = vmul.f32 %v3881_v46, %v7391_v26  ;;  %v7394_v33 = vld [vmem:[#allocation101_spill] sm:$0xff]  ;;  %v7396_v29 = vld [vmem:[#allocation102_spill] sm:$0xff]  ;;  %v4754_v26 = vld [vmem:[#allocation2 + $0xa0] sm:$0xff] }
 0x14b   :  { %v1371_v16 = vmul.f32 %v3887_v15, %v7392_v8  ;;  %v1386_v42 = vadd.f32 %v1385_v54, %v1358_v35  ;;  %v1372_v36 = vmul.f32 %v3895_v5, %v7393_v27  ;;  %v1401_v41 = vadd.f32 %v1400_v17, %v1359_v51  ;;  %v7397_v35 = vld [vmem:[#allocation87_spill] sm:$0xff]  ;;  %v7438_v8 = vld [vmem:[#allocation134_spill] sm:$0xff]  ;;  %v4765_v19 = vld [vmem:[#allocation2 + $0xb0] sm:$0xff] }
 0x14c   :  { %v1326_v9 = vadd.f32 %v1325_v50, %v1307_v22  ;;  %v1341_v6 = vadd.f32 %v1340_v52, %v1308_v20  ;;  %v4623_v58 = vmul.f32 %v3901_v0, %v7394_v33  ;;  %v4627_v24 = vmul.f32 %v3907_v1, %v7395_v2  ;;  %v7398_v0 = vld [vmem:[#allocation103_spill] sm:$0xff]  ;;  %v7399_v1 = vld [vmem:[#allocation88_spill] sm:$0xff]  ;;  %v7431_v2 = vld [vmem:[#allocation114_spill] sm:$0xff] }
 0x14d   :  { %v4631_v46 = vmul.f32 %v3915_v21, %v7396_v29  ;;  %v1387_v15 = vadd.f32 %v1386_v42, %v1360_v55  ;;  %v4636_v5 = vmul.f32 %v3921_v56, %v7397_v35  ;;  %v1402_v50 = vadd.f32 %v1401_v41, %v1361_v63  ;;  %v7401_v63 = vld [vmem:[#allocation89_spill] sm:$0xff]  ;;  %v7406_v52 = vld [vmem:[#allocation32_spill] sm:$0xff]  ;;  %v7430_v35 = vld [vmem:[#allocation130_spill] sm:$0xff] }
 0x14e   :  { %v1327_v22 = vadd.f32 %v1326_v9, %v4547_v40  ;;  %v1342_v20 = vadd.f32 %v1341_v6, %v1310_v3  ;;  %v1280_v51 = vadd.f32 %v1279_v25, %v1278_v39  ;;  %v4640_v54 = vmul.f32 %v7354_v62, %v7398_v0  ;;  %v7400_v3 = vld [vmem:[#allocation104_spill] sm:$0xff]  ;;  %v7402_v62 = vld [vmem:[#allocation105_spill] sm:$0xff]  ;;  %v4670_v6 = vld [vmem:[#allocation2] sm:$0xff] }
 0x14f   :  { %v4644_v59 = vmul.f32 %v7356_v43, %v7399_v1  ;;  %v1388_v21 = vadd.f32 %v1387_v15, %v1362_v32  ;;  %v4650_v23 = vmul.f32 %v7358_v38, %v7400_v3  ;;  %v1403_v56 = vadd.f32 %v1402_v50, %v1363_v48  ;;  %v7403_v43 = vld [vmem:[#allocation91_spill] sm:$0xff]  ;;  %v7405_v38 = vld [vmem:[#allocation106_spill] sm:$0xff]  ;;  %7407 = vst [vmem:[#allocation35_spill] sm:$0xff] %v4670_v6  ;;  %v4674_v15 = vld [vmem:[#allocation2 + $0x8] sm:$0xff] }
 0x150   :  { %v1328_v55 = vadd.f32 %v1327_v22, %v4555_v53  ;;  %v1343_v40 = vadd.f32 %v1342_v20, %v4559_v57  ;;  %v4654_v39 = vmul.f32 %v7360_v14, %v7401_v63  ;;  %v4658_v9 = vmul.f32 %v7363_v12, %v7402_v62  ;;  %v7408_v12 = vld [vmem:[#allocation107_spill] sm:$0xff]  ;;  %7409 = vst [vmem:[#allocation22_spill] sm:$0xff] %v4674_v15  ;;  %v7410_v22 = vld [vmem:[#allocation124_spill] sm:$0xff]  ;;  %v7427_v3 = vld [vmem:[#allocation129_spill] sm:$0xff] }
 0x151   :  { %v4662_v32 = vmul.f32 %v7404_v7, %v7403_v43  ;;  %v1389_v53 = vadd.f32 %v1388_v21, %v1364_v28  ;;  %v4668_v48 = vmul.f32 %v7406_v52, %v7405_v38  ;;  %v1404_v17 = vadd.f32 %v1403_v56, %v1365_v13  ;;  %v7412_v50 = vld [vmem:[#allocation108_spill] sm:$0xff]  ;;  %v4682_v13 = vld [vmem:[#allocation2 + $0x18] sm:$0xff]  ;;  %v4686_v56 = vld [vmem:[#allocation2 + $0x20] sm:$0xff] }
 0x152   :  { %v1329_v57 = vadd.f32 %v1328_v55, %v4563_v44  ;;  %v1344_v42 = vadd.f32 %v1343_v40, %v4569_v49  ;;  %v1281_v14 = vrot.slane %v1280_v51, 1  ;;  %v1421_v41 = vmul.f32 %v4670_v6, %v7408_v12  ;;  %v4678_v49 = vld [vmem:[#allocation2 + $0x10] sm:$0xff]  ;;  %7413 = vst [vmem:[#allocation14_spill] sm:$0xff] %v4682_v13  ;;  %7415 = vst [vmem:[#allocation15_spill] sm:$0xff] %v4686_v56  ;;  %v7416_v7 = vld [vmem:[#allocation110_spill] sm:$0xff] }
 0x153   :  { %v1390_v25 = vadd.f32 %v1389_v53, %v1366_v30  ;;  %v1422_v28 = vmul.f32 %v4674_v15, %v7410_v22  ;;  %v1405_v20 = vadd.f32 %v1404_v17, %v1367_v47  ;;  %7411 = vst [vmem:[#allocation23_spill] sm:$0xff] %v4678_v49  ;;  %v1423_v21 = vmul.f32 %v4678_v49, %v7412_v50  ;;  %v7414_v30 = vld [vmem:[#allocation126_spill] sm:$0xff]  ;;  %v4690_v52 = vld [vmem:[#allocation2 + $0x28] sm:$0xff]  ;;  %v7420_v17 = vld [vmem:[#allocation111_spill] sm:$0xff] }
 0x154   :  { %v1345_v44 = vadd.f32 %v1344_v42, %v1329_v57  ;;  %v1424_v55 = vmul.f32 %v4682_v13, %v7414_v30  ;;  %v1425_v53 = vmul.f32 %v4686_v56, %v7416_v7  ;;  %7417 = vst [vmem:[#allocation81_spill] sm:$0xff] %v4690_v52  ;;  %v7418_v57 = vld [vmem:[#allocation127_spill] sm:$0xff]  ;;  %v4694_v42 = vld [vmem:[#allocation2 + $0x30] sm:$0xff]  ;;  %v4698_v38 = vld [vmem:[#allocation2 + $0x38] sm:$0xff]  ;;  %v4706_v62 = vadd.f32 %v1281_v14, %v1280_v51 }
 0x155   :  { %v1391_v40 = vadd.f32 %v1390_v25, %v1368_v45  ;;  %v1426_v47 = vmul.f32 %v4690_v52, %v7418_v57  ;;  %7419 = vst [vmem:[#allocation58_spill] sm:$0xff] %v4694_v42  ;;  %v1427_v50 = vmul.f32 %v4694_v42, %v7420_v17  ;;  %v1406_v12 = vadd.f32 %v1405_v20, %v1369_v60  ;;  %v7422_v45 = vld [vmem:[#allocation128_spill] sm:$0xff]  ;;  %v4702_v30 = vld [vmem:[#allocation2 + $0x40] sm:$0xff]  ;;  %v4712_v1 = vld [vmem:[#allocation2 + $0x50] sm:$0xff] }
 0x156   :  { %v1346_v22 = vrot.slane %v1345_v44, 4  ;;  %7421 = vst [vmem:[#allocation37_spill] sm:$0xff] %v4698_v38  ;;  %v1428_v25 = vmul.f32 %v4698_v38, %v7422_v45  ;;  %7423 = vst [vmem:[#allocation25_spill] sm:$0xff] %v4702_v30  ;;  %v7424_v7 = vld [vmem:[#allocation112_spill] sm:$0xff]  ;;  %v7429_v60 = vld [vmem:[#allocation113_spill] sm:$0xff]  ;;  %v1432_v29 = vmul.f32 %v4595_v10, %v7430_v35  ;;  %v1433_v51 = vmul.f32 %v4599_v61, %v7431_v2 }
 0x157   :  { %v1429_v43 = vmul.f32 %v4702_v30, %v7424_v7  ;;  %7425 = vst [vmem:[#allocation26_spill] sm:$0xff] %v4706_v62  ;;  %v1392_v57 = vadd.f32 %v1391_v40, %v1370_v37  ;;  %v4708_v63 = vld [vmem:[#allocation2 + $0x48] sm:$0xff]  ;;  %7428 = vst [vmem:[#allocation28_spill] sm:$0xff] %v4712_v1  ;;  %v1431_v20 = vmul.f32 %v4712_v1, %v7429_v60  ;;  %v7432_v37 = vld [vmem:[#allocation131_spill] sm:$0xff] }
 0x158   :  { %7426 = vst [vmem:[#allocation17_spill] sm:$0xff] %v4708_v63  ;;  %v1430_v17 = vmul.f32 %v4708_v63, %v7427_v3  ;;  %v1347_v0 = vadd.f32 %v1346_v22, %v1345_v44  ;;  %v1407_v45 = vadd.f32 %v1406_v12, %v1371_v16  ;;  %v1434_v40 = vmul.f32 %v4603_v18, %v7432_v37  ;;  %v4723_v33 = vld [vmem:[#allocation2 + $0x70] sm:$0xff]  ;;  %v7433_v27 = vld [vmem:[#allocation115_spill] sm:$0xff]  ;;  %v4727_v16 = vld [vmem:[#allocation2 + $0x78] sm:$0xff] }
 0x159   :  { %v1393_v14 = vadd.f32 %v1392_v57, %v1372_v36  ;;  %v1453_v62 = vadd.f32 %v1423_v21, %v1421_v41  ;;  %v1468_v7 = vadd.f32 %v1424_v55, %v1422_v28  ;;  %v1435_v22 = vmul.f32 %v4723_v33, %v7433_v27  ;;  %v7434_v12 = vld [vmem:[#allocation132_spill] sm:$0xff]  ;;  %v4731_v35 = vld [vmem:[#allocation2 + $0x80] sm:$0xff]  ;;  %v4743_v2 = vld [vmem:[#allocation2 + $0x90] sm:$0xff] }
 0x15a   :  { %v1408_v3 = vadd.f32 %v1407_v45, %v4623_v58  ;;  %v1436_v44 = vmul.f32 %v4727_v16, %v7434_v12  ;;  %v7435_v36 = vld [vmem:[#allocation116_spill] sm:$0xff]  ;;  %v7436_v58 = vld [vmem:[#allocation133_spill] sm:$0xff]  ;;  %v1348_v27 = vrot.slane %v1347_v0, 2 }
 0x15b   :  { %v4735_v57 = vmul.f32 %v4731_v35, %v7435_v36  ;;  %v1394_v41 = vadd.f32 %v1393_v14, %v4627_v24  ;;  %v4738_v28 = vld [vmem:[#allocation2 + $0x88] sm:$0xff]  ;;  %v1454_v55 = vadd.f32 %v1453_v62, %v1425_v53  ;;  %v1469_v45 = vadd.f32 %v1468_v7, %v1426_v47  ;;  %v7437_v12 = vld [vmem:[#allocation117_spill] sm:$0xff]  ;;  %v4749_v36 = vld [vmem:[#allocation2 + $0x98] sm:$0xff] }
 0x15c   :  { %v1438_v21 = vmul.f32 %v4738_v28, %v7436_v58  ;;  %v1409_v37 = vadd.f32 %v1408_v3, %v4631_v46  ;;  %v4747_v60 = vmul.f32 %v4743_v2, %v7437_v12  ;;  %v1440_v24 = vmul.f32 %v4749_v36, %v7438_v8  ;;  %v7439_v62 = vld [vmem:[#allocation118_spill] sm:$0xff]  ;;  %v4761_v47 = vld [vmem:[#allocation2 + $0xa8] sm:$0xff]  ;;  %v7440_v12 = vld [vmem:[#allocation135_spill] sm:$0xff] }
 0x15d   :  { %v1395_v14 = vadd.f32 %v1394_v41, %v4636_v5  ;;  %v4758_v7 = vmul.f32 %v4754_v26, %v7439_v62  ;;  %v1455_v46 = vadd.f32 %v1454_v55, %v1427_v50  ;;  %v1470_v3 = vadd.f32 %v1469_v45, %v1428_v25  ;;  %v7441_v8 = vld [vmem:[#allocation119_spill] sm:$0xff]  ;;  %v4771_v41 = vld [vmem:[#allocation2 + $0xb8] sm:$0xff]  ;;  %v7442_v31 = vld [vmem:[#allocation136_spill] sm:$0xff] }
 0x15e   :  { %v1410_v53 = vadd.f32 %v1409_v37, %v4640_v54  ;;  %v1442_v58 = vmul.f32 %v4761_v47, %v7440_v12  ;;  %v4769_v5 = vmul.f32 %v4765_v19, %v7441_v8  ;;  %v4775_v62 = vmul.f32 %v4771_v41, %v7442_v31  ;;  %v4778_v54 = vld [vmem:[#allocation2 + $0xc0] sm:$0xff]  ;;  %v7444_v25 = vld [vmem:[#allocation120_spill] sm:$0xff]  ;;  %v7446_v4 = vld [vmem:[#allocation137_spill] sm:$0xff] }
 0x15f   :  { %v1396_v50 = vadd.f32 %v1395_v14, %v4644_v59  ;;  %7443 = vst [vmem:[#allocation63_spill] sm:$0xff] %v4778_v54  ;;  %v4782_v37 = vmul.f32 %v4778_v54, %v7444_v25  ;;  %v1456_v55 = vadd.f32 %v1455_v46, %v1429_v43  ;;  %v1471_v45 = vadd.f32 %v1470_v3, %v1430_v17  ;;  %v4785_v34 = vld [vmem:[#allocation2 + $0xc8] sm:$0xff]  ;;  %v4791_v31 = vld [vmem:[#allocation2 + $0xd0] sm:$0xff]  ;;  %v7447_v59 = vld [vmem:[#allocation122_spill] sm:$0xff] }
 0x160   :  { %v1349_v12 = vadd.f32 %v1348_v27, %v1347_v0  ;;  %v1411_v8 = vadd.f32 %v1410_v53, %v4650_v23  ;;  %7445 = vst [vmem:[#allocation31_spill] sm:$0xff] %v4785_v34  ;;  %v4789_v11 = vmul.f32 %v4785_v34, %v7446_v4  ;;  %v4795_v14 = vmul.f32 %v4791_v31, %v7447_v59  ;;  %v4798_v54 = vld [vmem:[#allocation2 + $0xd8] sm:$0xff]  ;;  %v4805_v46 = vld [vmem:[#allocation2 + $0xe0] sm:$0xff]  ;;  %v4811_v59 = vld [vmem:[#allocation2 + $0xe8] sm:$0xff] }
 0x161   :  { %v1397_v25 = vadd.f32 %v1396_v50, %v4654_v39  ;;  %7448 = vst [vmem:[#allocation38_spill] sm:$0xff] %v4798_v54  ;;  %v7449_v43 = vld [vmem:[#allocation138_spill] sm:$0xff]  ;;  %v1457_v0 = vadd.f32 %v1456_v55, %v1431_v20  ;;  %v1472_v23 = vadd.f32 %v1471_v45, %v1432_v29  ;;  %7450 = vst [vmem:[#allocation41_spill] sm:$0xff] %v4805_v46  ;;  %v7451_v3 = vld [vmem:[#allocation123_spill] sm:$0xff] }
 0x162   :  { %v4802_v27 = vmul.f32 %v4798_v54, %v7449_v43  ;;  %v1412_v17 = vadd.f32 %v1411_v8, %v4658_v9  ;;  %v4809_v53 = vmul.f32 %v4805_v46, %v7451_v3  ;;  %7453 = vst [vmem:[#allocation45_spill] sm:$0xff] %v4811_v59  ;;  %v7454_v4 = vld [vmem:[#allocation139_spill] sm:$0xff]  ;;  %v4817_v50 = vld [vmem:[#allocation2 + $0xf0] sm:$0xff]  ;;  %v4824_v29 = vld [vmem:[#allocation2 + $0xf8] sm:$0xff]  ;;  %v1350_v46 = vrot.slane %v1349_v12, 1 }
 0x163   :  { %v4815_v39 = vmul.f32 %v4811_v59, %v7454_v4  ;;  %7456 = vst [vmem:[#allocation49_spill] sm:$0xff] %v4817_v50  ;;  %v7457_v43 = vld [vmem:[#allocation125_spill] sm:$0xff]  ;;  %v1398_v8 = vadd.f32 %v1397_v25, %v4662_v32  ;;  %7459 = vst [vmem:[#allocation13_spill] sm:$0xff] %v4824_v29  ;;  %v7460_v9 = vld [vmem:[#allocation140_spill] sm:$0xff]  ;;  %v1458_v45 = vadd.f32 %v1457_v0, %v1433_v51 }
 0x164   :  { %7452 = vst [vmem:[#allocation42_spill] sm:$0xff] %v4809_v53  ;;  %v4821_v20 = vmul.f32 %v4817_v50, %v7457_v43  ;;  %v4828_v55 = vmul.f32 %v4824_v29, %v7460_v9  ;;  %v1473_v3 = vadd.f32 %v1472_v23, %v1434_v40  ;;  %v1413_v4 = vadd.f32 %v1412_v17, %v4668_v48  ;;  %v7462_v59 = vld [vmem:[#allocation16_spill] sm:$0xff]  ;;  %v7464_v32 = vld [vmem:[#allocation43_spill] sm:$0xff]  ;;  %v7466_v51 = vld [vmem:[#allocation29_spill] sm:$0xff] }
 0x165   :  { %7455 = vst [vmem:[#allocation46_spill] sm:$0xff] %v4815_v39  ;;  %v1490_v39 = vmul.f32 %v4670_v6, %v7462_v59  ;;  %v7463_v53 = vld [vmem:[#allocation40_spill] sm:$0xff]  ;;  %v1492_v25 = vmul.f32 %v4678_v49, %v7464_v32  ;;  %v1494_v40 = vmul.f32 %v4686_v56, %v7466_v51  ;;  %v7467_v0 = vld [vmem:[#allocation18_spill] sm:$0xff] }
 0x166   :  { %7458 = vst [vmem:[#allocation50_spill] sm:$0xff] %v4821_v20  ;;  %7461 = vst [vmem:[#allocation32_spill] sm:$0xff] %v4828_v55  ;;  %v1491_v43 = vmul.f32 %v4674_v15, %v7463_v53  ;;  %v1459_v20 = vadd.f32 %v1458_v45, %v1435_v22  ;;  %v1474_v50 = vadd.f32 %v1473_v3, %v1436_v44  ;;  %v7465_v54 = vld [vmem:[#allocation24_spill] sm:$0xff]  ;;  %v7469_v44 = vld [vmem:[#allocation19_spill] sm:$0xff] }
 0x167   :  { %v1493_v9 = vmul.f32 %v4682_v13, %v7465_v54  ;;  %v1414_v55 = vadd.f32 %v1413_v4, %v1398_v8  ;;  %v1495_v48 = vmul.f32 %v4690_v52, %v7467_v0  ;;  %v7468_v23 = vld [vmem:[#allocation44_spill] sm:$0xff]  ;;  %v1497_v3 = vmul.f32 %v4698_v38, %v7469_v44  ;;  %v7470_v53 = vld [vmem:[#allocation47_spill] sm:$0xff]  ;;  %v7472_v8 = vld [vmem:[#allocation33_spill] sm:$0xff] }
 0x168   :  { %v1496_v59 = vmul.f32 %v4694_v42, %v7468_v23  ;;  %v1460_v17 = vadd.f32 %v1459_v20, %v4735_v57  ;;  %v1475_v22 = vadd.f32 %v1474_v50, %v1438_v21  ;;  %v1498_v45 = vmul.f32 %v4702_v30, %v7470_v53  ;;  %v7473_v51 = vld [vmem:[#allocation20_spill] sm:$0xff]  ;;  %v7475_v50 = vld [vmem:[#allocation51_spill] sm:$0xff] }
 0x169   :  { %v4850_v54 = vadd.f32 %v1350_v46, %v1349_v12  ;;  %v1415_v4 = vrot.slane %v1414_v55, 4  ;;  %v1499_v32 = vmul.f32 %v4708_v63, %v7472_v8  ;;  %v1500_v0 = vmul.f32 %v4712_v1, %v7473_v51  ;;  %v7474_v57 = vld [vmem:[#allocation48_spill] sm:$0xff]  ;;  %v7477_v30 = vld [vmem:[#allocation55_spill] sm:$0xff] }
 0x16a   :  { %v1461_v23 = vadd.f32 %v1460_v17, %v4747_v60  ;;  %v1476_v42 = vadd.f32 %v1475_v22, %v1440_v24  ;;  %v1501_v21 = vmul.f32 %v4595_v10, %v7474_v57  ;;  %v1502_v20 = vmul.f32 %v4599_v61, %v7475_v50  ;;  %v7476_v53 = vld [vmem:[#allocation52_spill] sm:$0xff]  ;;  %v7479_v17 = vld [vmem:[#allocation59_spill] sm:$0xff] }
 0x16b   :  { %7471 = vst [vmem:[#allocation16_spill] sm:$0xff] %v4850_v54  ;;  %v1416_v44 = vadd.f32 %v1415_v4, %v1414_v55  ;;  %v1503_v12 = vmul.f32 %v4603_v18, %v7476_v53  ;;  %v1522_v46 = vadd.f32 %v1492_v25, %v1490_v39  ;;  %v1537_v54 = vadd.f32 %v1493_v9, %v1491_v43  ;;  %v7478_v60 = vld [vmem:[#allocation56_spill] sm:$0xff]  ;;  %v7483_v25 = vld [vmem:[#allocation70_spill] sm:$0xff] }
 0x16c   :  { %v1462_v8 = vadd.f32 %v1461_v23, %v4758_v7  ;;  %v1477_v63 = vadd.f32 %v1476_v42, %v1442_v58  ;;  %v1504_v51 = vmul.f32 %v4723_v33, %v7477_v30  ;;  %v1505_v24 = vmul.f32 %v4727_v16, %v7478_v60  ;;  %v7480_v57 = vld [vmem:[#allocation60_spill] sm:$0xff]  ;;  %v7482_v58 = vld [vmem:[#allocation65_spill] sm:$0xff] }
 0x16d   :  { %v1506_v22 = vmul.f32 %v4731_v35, %v7479_v17  ;;  %v1507_v55 = vmul.f32 %v4738_v28, %v7480_v57  ;;  %v1523_v4 = vadd.f32 %v1522_v46, %v1494_v40  ;;  %v1538_v50 = vadd.f32 %v1537_v54, %v1495_v48  ;;  %v7481_v7 = vld [vmem:[#allocation64_spill] sm:$0xff]  ;;  %v7484_v48 = vld [vmem:[#allocation71_spill] sm:$0xff] }
 0x16e   :  { %v1463_v39 = vadd.f32 %v1462_v8, %v4769_v5  ;;  %v1478_v43 = vadd.f32 %v1477_v63, %v4775_v62  ;;  %v1508_v42 = vmul.f32 %v4743_v2, %v7481_v7  ;;  %v1509_v30 = vmul.f32 %v4749_v36, %v7482_v58  ;;  %v7485_v63 = vld [vmem:[#allocation74_spill] sm:$0xff]  ;;  %v7486_v54 = vld [vmem:[#allocation75_spill] sm:$0xff]  ;;  %v7487_v8 = vld [vmem:[#allocation76_spill] sm:$0xff] }
 0x16f   :  { %v1417_v9 = vrot.slane %v1416_v44, 2  ;;  %v1510_v23 = vmul.f32 %v4754_v26, %v7483_v25  ;;  %v1524_v53 = vadd.f32 %v1523_v4, %v1496_v59  ;;  %v1539_v60 = vadd.f32 %v1538_v50, %v1497_v3  ;;  %v7488_v57 = vld [vmem:[#allocation63_spill] sm:$0xff]  ;;  %v7490_v50 = vld [vmem:[#allocation78_spill] sm:$0xff] }
 0x170   :  { %v1464_v17 = vadd.f32 %v1463_v39, %v4782_v37  ;;  %v1479_v40 = vadd.f32 %v1478_v43, %v4789_v11  ;;  %v1511_v5 = vmul.f32 %v4761_v47, %v7484_v48  ;;  %v1512_v62 = vmul.f32 %v4765_v19, %v7485_v63  ;;  %v7489_v11 = vld [vmem:[#allocation77_spill] sm:$0xff]  ;;  %v7491_v25 = vld [vmem:[#allocation79_spill] sm:$0xff]  ;;  %v7492_v48 = vld [vmem:[#allocation38_spill] sm:$0xff] }
 0x171   :  { %v1513_v46 = vmul.f32 %v4771_v41, %v7486_v54  ;;  %v4890_v7 = vmul.f32 %v7488_v57, %v7487_v8  ;;  %v1525_v58 = vadd.f32 %v1524_v53, %v1498_v45  ;;  %v1540_v59 = vadd.f32 %v1539_v60, %v1499_v32  ;;  %v7493_v45 = vld [vmem:[#allocation42_spill] sm:$0xff]  ;;  %v7495_v60 = vld [vmem:[#allocation80_spill] sm:$0xff] }
 0x172   :  { %v1465_v3 = vadd.f32 %v1464_v17, %v4795_v14  ;;  %v1480_v37 = vadd.f32 %v1479_v40, %v4802_v27  ;;  %v1515_v4 = vmul.f32 %v4785_v34, %v7489_v11  ;;  %v4898_v39 = vmul.f32 %v4791_v31, %v7490_v50  ;;  %v7494_v53 = vld [vmem:[#allocation46_spill] sm:$0xff]  ;;  %v7496_v27 = vld [vmem:[#allocation41_spill] sm:$0xff] }
 0x173   :  { %v1418_v43 = vadd.f32 %v1417_v9, %v1416_v44  ;;  %v4902_v63 = vmul.f32 %v7492_v48, %v7491_v25  ;;  %v1526_v54 = vadd.f32 %v1525_v58, %v1500_v0  ;;  %v1541_v8 = vadd.f32 %v1540_v59, %v1501_v21  ;;  %v7497_v40 = vld [vmem:[#allocation34_spill] sm:$0xff]  ;;  %v7498_v11 = vld [vmem:[#allocation45_spill] sm:$0xff] }
 0x174   :  { %v1466_v32 = vadd.f32 %v1465_v3, %v7493_v45  ;;  %v1481_v14 = vadd.f32 %v1480_v37, %v7494_v53  ;;  %v4908_v17 = vmul.f32 %v7496_v27, %v7495_v60  ;;  %v4912_v34 = vmul.f32 %v7498_v11, %v7497_v40  ;;  %v7499_v50 = vld [vmem:[#allocation54_spill] sm:$0xff]  ;;  %v7500_v44 = vld [vmem:[#allocation49_spill] sm:$0xff]  ;;  %v7504_v37 = vld [vmem:[#allocation32_spill] sm:$0xff] }
 0x175   :  { %v4916_v9 = vmul.f32 %v7500_v44, %v7499_v50  ;;  %v7502_v25 = vld [vmem:[#allocation57_spill] sm:$0xff]  ;;  %v1527_v21 = vadd.f32 %v1526_v54, %v1502_v20  ;;  %v1542_v58 = vadd.f32 %v1541_v8, %v1503_v12  ;;  %v7503_v59 = vld [vmem:[#allocation50_spill] sm:$0xff]  ;;  %v1419_v11 = vrot.slane %v1418_v43, 1  ;;  %v7509_v12 = vld [vmem:[#allocation159_spill] sm:$0xff] }
 0x176   :  { %v4920_v0 = vmul.f32 %v4824_v29, %v7502_v25  ;;  %v1467_v3 = vadd.f32 %v1466_v32, %v7503_v59  ;;  %v1482_v45 = vadd.f32 %v1481_v14, %v7504_v37  ;;  %v7505_v53 = vld [vmem:[#allocation153_spill] sm:$0xff]  ;;  %v7508_v29 = vld [vmem:[#allocation142_spill] sm:$0xff]  ;;  %v1563_v54 = vmul.f32 %v4686_v56, %v7509_v12  ;;  %v7510_v8 = vld [vmem:[#allocation143_spill] sm:$0xff] }
 0x177   :  { %7501 = vst [vmem:[#allocation40_spill] sm:$0xff] %v4916_v9  ;;  %v1559_v60 = vmul.f32 %v4670_v6, %v7505_v53  ;;  %v7506_v27 = vld [vmem:[#allocation141_spill] sm:$0xff]  ;;  %v1528_v48 = vadd.f32 %v1527_v21, %v1504_v51  ;;  %v1543_v50 = vadd.f32 %v1542_v58, %v1505_v24  ;;  %v7507_v9 = vld [vmem:[#allocation158_spill] sm:$0xff]  ;;  %v1562_v20 = vmul.f32 %v4682_v13, %v7508_v29  ;;  %v7511_v37 = vld [vmem:[#allocation160_spill] sm:$0xff] }
 0x178   :  { %v1560_v40 = vmul.f32 %v4674_v15, %v7506_v27  ;;  %v1561_v44 = vmul.f32 %v4678_v49, %v7507_v9  ;;  %v1483_v25 = vadd.f32 %v1482_v45, %v1467_v3  ;;  %v1564_v32 = vmul.f32 %v4690_v52, %v7510_v8  ;;  %v7512_v27 = vld [vmem:[#allocation58_spill] sm:$0xff]  ;;  %v7513_v51 = vld [vmem:[#allocation144_spill] sm:$0xff]  ;;  %v7514_v58 = vld [vmem:[#allocation161_spill] sm:$0xff] }
 0x179   :  { %v1529_v14 = vadd.f32 %v1528_v48, %v1506_v22  ;;  %v1544_v59 = vadd.f32 %v1543_v50, %v1507_v55  ;;  %v1565_v53 = vmul.f32 %v7512_v27, %v7511_v37  ;;  %v1566_v24 = vmul.f32 %v4698_v38, %v7513_v51  ;;  %v7515_v3 = vld [vmem:[#allocation25_spill] sm:$0xff]  ;;  %v7518_v49 = vld [vmem:[#allocation162_spill] sm:$0xff]  ;;  %v7521_v8 = vld [vmem:[#allocation163_spill] sm:$0xff] }
 0x17a   :  { %v1484_v21 = vrot.slane %v1483_v25, 4  ;;  %v1567_v45 = vmul.f32 %v7515_v3, %v7514_v58  ;;  %v7516_v9 = vld [vmem:[#allocation145_spill] sm:$0xff]  ;;  %v1569_v12 = vmul.f32 %v4712_v1, %v7518_v49  ;;  %v4946_v56 = vadd.f32 %v1419_v11, %v1418_v43  ;;  %v7520_v48 = vld [vmem:[#allocation146_spill] sm:$0xff]  ;;  %v7522_v52 = vld [vmem:[#allocation147_spill] sm:$0xff] }
 0x17b   :  { %v7517_v29 = vld [vmem:[#allocation17_spill] sm:$0xff]  ;;  %v1530_v22 = vadd.f32 %v1529_v14, %v1508_v42  ;;  %v1545_v55 = vadd.f32 %v1544_v59, %v1509_v30  ;;  %v1570_v50 = vmul.f32 %v4595_v10, %v7520_v48  ;;  %v1571_v51 = vmul.f32 %v4599_v61, %v7521_v8  ;;  %v7524_v11 = vld [vmem:[#allocation148_spill] sm:$0xff] }
 0x17c   :  { %v1568_v13 = vmul.f32 %v7517_v29, %v7516_v9  ;;  %7519 = vst [vmem:[#allocation43_spill] sm:$0xff] %v4946_v56  ;;  %v1485_v37 = vadd.f32 %v1484_v21, %v1483_v25  ;;  %v1591_v38 = vadd.f32 %v1561_v44, %v1559_v60  ;;  %v1606_v27 = vadd.f32 %v1562_v20, %v1560_v40  ;;  %v7523_v29 = vld [vmem:[#allocation164_spill] sm:$0xff]  ;;  %v7525_v30 = vld [vmem:[#allocation165_spill] sm:$0xff]  ;;  %v7528_v20 = vld [vmem:[#allocation150_spill] sm:$0xff] }
 0x17d   :  { %v1531_v58 = vadd.f32 %v1530_v22, %v1510_v23  ;;  %v1546_v3 = vadd.f32 %v1545_v55, %v1511_v5  ;;  %v1572_v9 = vmul.f32 %v4603_v18, %v7522_v52  ;;  %v1573_v43 = vmul.f32 %v4723_v33, %v7523_v29  ;;  %v7526_v44 = vld [vmem:[#allocation149_spill] sm:$0xff]  ;;  %v7527_v5 = vld [vmem:[#allocation166_spill] sm:$0xff] }
 0x17e   :  { %v1574_v42 = vmul.f32 %v4727_v16, %v7524_v11  ;;  %v1575_v14 = vmul.f32 %v4731_v35, %v7525_v30  ;;  %v1592_v25 = vadd.f32 %v1591_v38, %v1563_v54  ;;  %v1607_v59 = vadd.f32 %v1606_v27, %v1564_v32  ;;  %v7529_v30 = vld [vmem:[#allocation167_spill] sm:$0xff]  ;;  %v7531_v27 = vld [vmem:[#allocation168_spill] sm:$0xff]  ;;  %v7551_v48 = vld [vmem:[#allocation173_spill] sm:$0xff] }
 0x17f   :  { %v1532_v21 = vadd.f32 %v1531_v58, %v1512_v62  ;;  %v1547_v56 = vadd.f32 %v1546_v3, %v1513_v46  ;;  %v1576_v23 = vmul.f32 %v4738_v28, %v7526_v44  ;;  %v1577_v60 = vmul.f32 %v4743_v2, %v7527_v5  ;;  %v7530_v62 = vld [vmem:[#allocation151_spill] sm:$0xff]  ;;  %v7532_v32 = vld [vmem:[#allocation152_spill] sm:$0xff] }
 0x180   :  { %v1486_v40 = vrot.slane %v1485_v37, 2  ;;  %v1578_v22 = vmul.f32 %v4749_v36, %v7528_v20  ;;  %v1593_v55 = vadd.f32 %v1592_v25, %v1565_v53  ;;  %v1608_v29 = vadd.f32 %v1607_v59, %v1566_v24  ;;  %v7535_v25 = vld [vmem:[#allocation31_spill] sm:$0xff] }
 0x181   :  { %v1533_v11 = vadd.f32 %v1532_v21, %v4890_v7  ;;  %v1548_v52 = vadd.f32 %v1547_v56, %v1515_v4  ;;  %v1579_v38 = vmul.f32 %v4754_v26, %v7529_v30  ;;  %v1580_v46 = vmul.f32 %v4761_v47, %v7530_v62  ;;  %v7533_v7 = vld [vmem:[#allocation169_spill] sm:$0xff]  ;;  %v7534_v4 = vld [vmem:[#allocation154_spill] sm:$0xff] }
 0x182   :  { %v1581_v54 = vmul.f32 %v4765_v19, %v7531_v27  ;;  %v1582_v58 = vmul.f32 %v4771_v41, %v7532_v32  ;;  %v1594_v3 = vadd.f32 %v1593_v55, %v1567_v45  ;;  %v1609_v5 = vadd.f32 %v1608_v29, %v1568_v13  ;;  %v7536_v62 = vld [vmem:[#allocation170_spill] sm:$0xff]  ;;  %v7537_v29 = vld [vmem:[#allocation155_spill] sm:$0xff] }
 0x183   :  { %v1534_v53 = vadd.f32 %v1533_v11, %v4898_v39  ;;  %v1549_v24 = vadd.f32 %v1548_v52, %v4902_v63  ;;  %v1583_v56 = vmul.f32 %v7488_v57, %v7533_v7  ;;  %v1584_v59 = vmul.f32 %v7535_v25, %v7534_v4  ;;  %v7538_v39 = vld [vmem:[#allocation38_spill] sm:$0xff]  ;;  %v7539_v63 = vld [vmem:[#allocation171_spill] sm:$0xff]  ;;  %v7540_v11 = vld [vmem:[#allocation41_spill] sm:$0xff] }
 0x184   :  { %v1487_v21 = vadd.f32 %v1486_v40, %v1485_v37  ;;  %v4983_v30 = vmul.f32 %v4791_v31, %v7536_v62  ;;  %v1595_v27 = vadd.f32 %v1594_v3, %v1569_v12  ;;  %v1610_v20 = vadd.f32 %v1609_v5, %v1570_v50  ;;  %v7541_v7 = vld [vmem:[#allocation156_spill] sm:$0xff]  ;;  %v7542_v4 = vld [vmem:[#allocation45_spill] sm:$0xff] }
 0x185   :  { %v1535_v45 = vadd.f32 %v1534_v53, %v4908_v17  ;;  %v1550_v13 = vadd.f32 %v1549_v24, %v4912_v34  ;;  %v1586_v52 = vmul.f32 %v7538_v39, %v7537_v29  ;;  %v4991_v55 = vmul.f32 %v7540_v11, %v7539_v63  ;;  %v7543_v40 = vld [vmem:[#allocation172_spill] sm:$0xff]  ;;  %v7544_v62 = vld [vmem:[#allocation49_spill] sm:$0xff] }
 0x186   :  { %v4995_v37 = vmul.f32 %v7542_v4, %v7541_v7  ;;  %v4999_v32 = vmul.f32 %v7544_v62, %v7543_v40  ;;  %v1596_v12 = vadd.f32 %v1595_v27, %v1571_v51  ;;  %v1611_v50 = vadd.f32 %v1610_v20, %v1572_v9  ;;  %v7546_v17 = vld [vmem:[#allocation40_spill] sm:$0xff]  ;;  %v7547_v3 = vld [vmem:[#allocation157_spill] sm:$0xff]  ;;  %v7552_v51 = vld [vmem:[#allocation190_spill] sm:$0xff] }
 0x187   :  { %v1536_v5 = vadd.f32 %v1535_v45, %v7546_v17  ;;  %v1551_v34 = vadd.f32 %v1550_v13, %v4920_v0  ;;  %v7548_v53 = vld [vmem:[#allocation13_spill] sm:$0xff]  ;;  %v1488_v44 = vrot.slane %v1487_v21, 1  ;;  %v1629_v40 = vmul.f32 %v4674_v15, %v7551_v48  ;;  %v7553_v9 = vld [vmem:[#allocation23_spill] sm:$0xff]  ;;  %v7554_v27 = vld [vmem:[#allocation174_spill] sm:$0xff] }
 0x188   :  { %7545 = vst [vmem:[#allocation24_spill] sm:$0xff] %v4999_v32  ;;  %v5005_v24 = vmul.f32 %v7548_v53, %v7547_v3  ;;  %v7550_v63 = vld [vmem:[#allocation189_spill] sm:$0xff]  ;;  %v1597_v7 = vadd.f32 %v1596_v12, %v1573_v43  ;;  %v1612_v8 = vadd.f32 %v1611_v50, %v1574_v42  ;;  %v1630_v20 = vmul.f32 %v7553_v9, %v7552_v51  ;;  %v7555_v45 = vld [vmem:[#allocation14_spill] sm:$0xff]  ;;  %v7556_v13 = vld [vmem:[#allocation191_spill] sm:$0xff] }
 0x189   :  { %v1628_v29 = vmul.f32 %v4670_v6, %v7550_v63  ;;  %v1552_v49 = vadd.f32 %v1551_v34, %v1536_v5  ;;  %v1631_v0 = vmul.f32 %v7555_v45, %v7554_v27  ;;  %v7557_v17 = vld [vmem:[#allocation15_spill] sm:$0xff]  ;;  %v7559_v63 = vld [vmem:[#allocation81_spill] sm:$0xff]  ;;  %v7560_v43 = vld [vmem:[#allocation192_spill] sm:$0xff]  ;;  %v5027_v4 = vadd.f32 %v1488_v44, %v1487_v21 }
 0x18a   :  { %7549 = vst [vmem:[#allocation29_spill] sm:$0xff] %v5005_v24  ;;  %v1632_v3 = vmul.f32 %v7557_v17, %v7556_v13  ;;  %v1598_v53 = vadd.f32 %v1597_v7, %v1575_v14  ;;  %v1613_v24 = vadd.f32 %v1612_v8, %v1576_v23  ;;  %v7558_v32 = vld [vmem:[#allocation175_spill] sm:$0xff]  ;;  %v7561_v42 = vld [vmem:[#allocation58_spill] sm:$0xff]  ;;  %v7562_v48 = vld [vmem:[#allocation176_spill] sm:$0xff] }
 0x18b   :  { %v1633_v6 = vmul.f32 %v7559_v63, %v7558_v32  ;;  %v1634_v12 = vmul.f32 %v7561_v42, %v7560_v43  ;;  %v1553_v50 = vrot.slane %v1552_v49, 4  ;;  %v7563_v5 = vld [vmem:[#allocation37_spill] sm:$0xff]  ;;  %7568 = vst [vmem:[#allocation18_spill] sm:$0xff] %v5027_v4  ;;  %v7569_v23 = vld [vmem:[#allocation194_spill] sm:$0xff]  ;;  %v7571_v42 = vld [vmem:[#allocation195_spill] sm:$0xff]  ;;  %v1675_v44 = vadd.f32 %v1631_v0, %v1629_v40 }
 0x18c   :  { %v1635_v34 = vmul.f32 %v7563_v5, %v7562_v48  ;;  %v7564_v15 = vld [vmem:[#allocation193_spill] sm:$0xff]  ;;  %v1599_v14 = vadd.f32 %v1598_v53, %v1577_v60  ;;  %v1614_v8 = vadd.f32 %v1613_v24, %v1578_v22  ;;  %v1638_v7 = vmul.f32 %v4712_v1, %v7569_v23  ;;  %v7570_v13 = vld [vmem:[#allocation178_spill] sm:$0xff]  ;;  %v7573_v21 = vld [vmem:[#allocation196_spill] sm:$0xff] }
 0x18d   :  { %v7565_v51 = vld [vmem:[#allocation25_spill] sm:$0xff]  ;;  %v1554_v32 = vadd.f32 %v1553_v50, %v1552_v49  ;;  %v1639_v43 = vmul.f32 %v4595_v10, %v7570_v13  ;;  %v1640_v48 = vmul.f32 %v4599_v61, %v7571_v42  ;;  %v1660_v5 = vadd.f32 %v1630_v20, %v1628_v29  ;;  %v7574_v22 = vld [vmem:[#allocation180_spill] sm:$0xff]  ;;  %v7577_v20 = vld [vmem:[#allocation198_spill] sm:$0xff] }
 0x18e   :  { %v1636_v9 = vmul.f32 %v7565_v51, %v7564_v15  ;;  %v7566_v62 = vld [vmem:[#allocation177_spill] sm:$0xff]  ;;  %v1600_v63 = vadd.f32 %v1599_v14, %v1579_v38  ;;  %v1615_v15 = vadd.f32 %v1614_v8, %v1580_v46  ;;  %v7572_v51 = vld [vmem:[#allocation179_spill] sm:$0xff]  ;;  %v1642_v60 = vmul.f32 %v4723_v33, %v7573_v21  ;;  %v7578_v0 = vld [vmem:[#allocation182_spill] sm:$0xff] }
 0x18f   :  { %v7567_v27 = vld [vmem:[#allocation17_spill] sm:$0xff]  ;;  %v1643_v53 = vmul.f32 %v4727_v16, %v7574_v22  ;;  %v1661_v50 = vadd.f32 %v1660_v5, %v1632_v3  ;;  %v1676_v46 = vadd.f32 %v1675_v44, %v1633_v6  ;;  %v1555_v29 = vrot.slane %v1554_v32, 2  ;;  %v7602_v23 = vld [vmem:[#allocation14_spill] sm:$0xff] }
 0x190   :  { %v1637_v45 = vmul.f32 %v7567_v27, %v7566_v62  ;;  %v1641_v62 = vmul.f32 %v4603_v18, %v7572_v51  ;;  %v7575_v49 = vld [vmem:[#allocation197_spill] sm:$0xff]  ;;  %v1601_v4 = vadd.f32 %v1600_v63, %v1581_v54  ;;  %v1616_v13 = vadd.f32 %v1615_v15, %v1582_v58  ;;  %v7579_v51 = vld [vmem:[#allocation199_spill] sm:$0xff]  ;;  %v7581_v58 = vld [vmem:[#allocation200_spill] sm:$0xff] }
 0x191   :  { %v1644_v24 = vmul.f32 %v4731_v35, %v7575_v49  ;;  %v7576_v42 = vld [vmem:[#allocation181_spill] sm:$0xff]  ;;  %v1646_v40 = vmul.f32 %v4743_v2, %v7577_v20  ;;  %v1647_v14 = vmul.f32 %v4749_v36, %v7578_v0  ;;  %v1662_v8 = vadd.f32 %v1661_v50, %v1634_v12  ;;  %v7580_v54 = vld [vmem:[#allocation183_spill] sm:$0xff]  ;;  %v7582_v63 = vld [vmem:[#allocation184_spill] sm:$0xff] }
 0x192   :  { %v1645_v38 = vmul.f32 %v4738_v28, %v7576_v42  ;;  %v1602_v21 = vadd.f32 %v1601_v4, %v1583_v56  ;;  %v1617_v22 = vadd.f32 %v1616_v13, %v1584_v59  ;;  %v1648_v49 = vmul.f32 %v4754_v26, %v7579_v51  ;;  %v7583_v12 = vld [vmem:[#allocation201_spill] sm:$0xff]  ;;  %v7585_v50 = vld [vmem:[#allocation202_spill] sm:$0xff]  ;;  %v7600_v51 = vld [vmem:[#allocation23_spill] sm:$0xff] }
 0x193   :  { %v1677_v3 = vadd.f32 %v1676_v46, %v1635_v34  ;;  %v1649_v15 = vmul.f32 %v4761_v47, %v7580_v54  ;;  %v1650_v6 = vmul.f32 %v4765_v19, %v7581_v58  ;;  %v1651_v5 = vmul.f32 %v4771_v41, %v7582_v63  ;;  %v7584_v13 = vld [vmem:[#allocation185_spill] sm:$0xff]  ;;  %v7601_v42 = vld [vmem:[#allocation90_spill] sm:$0xff] }
 0x194   :  { %v1663_v44 = vadd.f32 %v1662_v8, %v1636_v9  ;;  %v1603_v20 = vadd.f32 %v1602_v21, %v4983_v30  ;;  %v1618_v0 = vadd.f32 %v1617_v22, %v1586_v52  ;;  %v1652_v56 = vmul.f32 %v7488_v57, %v7583_v12  ;;  %v7586_v9 = vld [vmem:[#allocation186_spill] sm:$0xff]  ;;  %v7587_v21 = vld [vmem:[#allocation203_spill] sm:$0xff]  ;;  %v7589_v22 = vld [vmem:[#allocation45_spill] sm:$0xff] }
 0x195   :  { %v1678_v4 = vadd.f32 %v1677_v3, %v1637_v45  ;;  %v1556_v59 = vadd.f32 %v1555_v29, %v1554_v32  ;;  %v1653_v34 = vmul.f32 %v7535_v25, %v7584_v13  ;;  %v1654_v46 = vmul.f32 %v4791_v31, %v7585_v50  ;;  %v7588_v32 = vld [vmem:[#allocation187_spill] sm:$0xff]  ;;  %v7591_v8 = vld [vmem:[#allocation204_spill] sm:$0xff]  ;;  %v7592_v3 = vld [vmem:[#allocation49_spill] sm:$0xff] }
 0x196   :  { %v1664_v54 = vadd.f32 %v1663_v44, %v1638_v7  ;;  %v1604_v58 = vadd.f32 %v1603_v20, %v4991_v55  ;;  %v1619_v63 = vadd.f32 %v1618_v0, %v4995_v37  ;;  %v5068_v30 = vmul.f32 %v7538_v39, %v7586_v9  ;;  %v7594_v20 = vld [vmem:[#allocation24_spill] sm:$0xff]  ;;  %v7595_v0 = vld [vmem:[#allocation29_spill] sm:$0xff]  ;;  %v7599_v12 = vld [vmem:[#allocation62_spill] sm:$0xff] }
 0x197   :  { %v1679_v52 = vadd.f32 %v1678_v4, %v1639_v43  ;;  %v5072_v45 = vmul.f32 %v7540_v11, %v7587_v21  ;;  %v5076_v29 = vmul.f32 %v7589_v22, %v7588_v32  ;;  %v5080_v7 = vmul.f32 %v7592_v3, %v7591_v8  ;;  %v7596_v9 = vld [vmem:[#allocation188_spill] sm:$0xff]  ;;  %v7597_v50 = vld [vmem:[#allocation13_spill] sm:$0xff] }
 0x198   :  { %v1665_v55 = vadd.f32 %v1664_v54, %v1640_v48  ;;  %v1605_v37 = vadd.f32 %v1604_v58, %v7594_v20  ;;  %v1620_v44 = vadd.f32 %v1619_v63, %v7595_v0  ;;  %v5086_v43 = vmul.f32 %v7597_v50, %v7596_v9  ;;  %v7603_v48 = vld [vmem:[#allocation66_spill] sm:$0xff]  ;;  %v7604_v58 = vld [vmem:[#allocation92_spill] sm:$0xff]  ;;  %v7605_v63 = vld [vmem:[#allocation81_spill] sm:$0xff] }
 0x199   :  { %7590 = vst [vmem:[#allocation44_spill] sm:$0xff] %v5076_v29  ;;  %7593 = vst [vmem:[#allocation19_spill] sm:$0xff] %v5080_v7  ;;  %v1680_v4 = vadd.f32 %v1679_v52, %v1641_v62  ;;  %v1557_v21 = vrot.slane %v1556_v59, 1  ;;  %v1697_v32 = vmul.f32 %v7600_v51, %v7599_v12  ;;  %v1698_v29 = vmul.f32 %v7602_v23, %v7601_v42  ;;  %v7606_v9 = vld [vmem:[#allocation67_spill] sm:$0xff]  ;;  %v7608_v52 = vld [vmem:[#allocation93_spill] sm:$0xff] }
 0x19a   :  { %7598 = vst [vmem:[#allocation47_spill] sm:$0xff] %v5086_v43  ;;  %v1666_v13 = vadd.f32 %v1665_v55, %v1642_v60  ;;  %v1621_v8 = vadd.f32 %v1620_v44, %v1605_v37  ;;  %v1699_v54 = vmul.f32 %v7557_v17, %v7603_v48  ;;  %v1700_v20 = vmul.f32 %v7605_v63, %v7604_v58  ;;  %v7607_v43 = vld [vmem:[#allocation58_spill] sm:$0xff]  ;;  %v7609_v60 = vld [vmem:[#allocation37_spill] sm:$0xff]  ;;  %v7610_v50 = vld [vmem:[#allocation68_spill] sm:$0xff] }
 0x19b   :  { %v1681_v7 = vadd.f32 %v1680_v4, %v1643_v53  ;;  %v1701_v62 = vmul.f32 %v7607_v43, %v7606_v9  ;;  %v1702_v55 = vmul.f32 %v7609_v60, %v7608_v52  ;;  %v7611_v12 = vld [vmem:[#allocation25_spill] sm:$0xff]  ;;  %v7612_v37 = vld [vmem:[#allocation94_spill] sm:$0xff]  ;;  %v5106_v48 = vadd.f32 %v1557_v21, %v1556_v59  ;;  %v7616_v58 = vld [vmem:[#allocation72_spill] sm:$0xff] }
 0x19c   :  { %v1667_v0 = vadd.f32 %v1666_v13, %v1644_v24  ;;  %v1703_v51 = vmul.f32 %v7611_v12, %v7610_v50  ;;  %v1622_v3 = vrot.slane %v1621_v8, 4  ;;  %v1704_v53 = vmul.f32 %v7567_v27, %v7612_v37  ;;  %v7613_v44 = vld [vmem:[#allocation69_spill] sm:$0xff]  ;;  %v7615_v13 = vld [vmem:[#allocation95_spill] sm:$0xff]  ;;  %v7617_v50 = vld [vmem:[#allocation96_spill] sm:$0xff] }
 0x19d   :  { %v1682_v42 = vadd.f32 %v1681_v7, %v1645_v38  ;;  %v1705_v4 = vmul.f32 %v4712_v1, %v7613_v44  ;;  %7614 = vst [vmem:[#allocation33_spill] sm:$0xff] %v5106_v48  ;;  %v1706_v9 = vmul.f32 %v4595_v10, %v7615_v13  ;;  %v1707_v52 = vmul.f32 %v4599_v61, %v7616_v58  ;;  %v7618_v7 = vld [vmem:[#allocation73_spill] sm:$0xff]  ;;  %v7620_v48 = vld [vmem:[#allocation82_spill] sm:$0xff] }
 0x19e   :  { %v1668_v24 = vadd.f32 %v1667_v0, %v1646_v40  ;;  %v1623_v60 = vadd.f32 %v1622_v3, %v1621_v8  ;;  %v1708_v38 = vmul.f32 %v4603_v18, %v7617_v50  ;;  %v1709_v37 = vmul.f32 %v4723_v33, %v7618_v7  ;;  %v7619_v12 = vld [vmem:[#allocation97_spill] sm:$0xff]  ;;  %v7621_v44 = vld [vmem:[#allocation98_spill] sm:$0xff]  ;;  %v7623_v50 = vld [vmem:[#allocation99_spill] sm:$0xff] }
 0x19f   :  { %v1683_v43 = vadd.f32 %v1682_v42, %v1647_v14  ;;  %v1710_v59 = vmul.f32 %v4727_v16, %v7619_v12  ;;  %v1729_v21 = vadd.f32 %v1699_v54, %v1697_v32  ;;  %v1744_v40 = vadd.f32 %v1700_v20, %v1698_v29  ;;  %v7622_v42 = vld [vmem:[#allocation83_spill] sm:$0xff]  ;;  %v7624_v32 = vld [vmem:[#allocation84_spill] sm:$0xff]  ;;  %v7626_v20 = vld [vmem:[#allocation85_spill] sm:$0xff] }
 0x1a0   :  { %v1669_v27 = vadd.f32 %v1668_v24, %v1648_v49  ;;  %v1711_v13 = vmul.f32 %v4731_v35, %v7620_v48  ;;  %v1712_v8 = vmul.f32 %v4738_v28, %v7621_v44  ;;  %v1713_v14 = vmul.f32 %v4743_v2, %v7622_v42  ;;  %v7625_v29 = vld [vmem:[#allocation100_spill] sm:$0xff] }
 0x1a1   :  { %v1684_v0 = vadd.f32 %v1683_v43, %v1649_v15  ;;  %v1714_v7 = vmul.f32 %v4749_v36, %v7623_v50  ;;  %v1730_v49 = vadd.f32 %v1729_v21, %v1701_v62  ;;  %v1745_v24 = vadd.f32 %v1744_v40, %v1702_v55  ;;  %v7628_v62 = vld [vmem:[#allocation86_spill] sm:$0xff] }
 0x1a2   :  { %v1670_v3 = vadd.f32 %v1669_v27, %v1650_v6  ;;  %v1624_v58 = vrot.slane %v1623_v60, 2  ;;  %v1715_v15 = vmul.f32 %v4754_v26, %v7624_v32  ;;  %v1716_v43 = vmul.f32 %v4761_v47, %v7625_v29  ;;  %v7627_v6 = vld [vmem:[#allocation101_spill] sm:$0xff]  ;;  %v7649_v32 = vld [vmem:[#allocation23_spill] sm:$0xff] }
 0x1a3   :  { %v1685_v12 = vadd.f32 %v1684_v0, %v1651_v5  ;;  %v1717_v44 = vmul.f32 %v4765_v19, %v7626_v20  ;;  %v1731_v48 = vadd.f32 %v1730_v49, %v1703_v51  ;;  %v1746_v42 = vadd.f32 %v1745_v24, %v1704_v53  ;;  %v7629_v5 = vld [vmem:[#allocation102_spill] sm:$0xff]  ;;  %v7630_v0 = vld [vmem:[#allocation87_spill] sm:$0xff]  ;;  %v7632_v53 = vld [vmem:[#allocation88_spill] sm:$0xff] }
 0x1a4   :  { %v1671_v54 = vadd.f32 %v1670_v3, %v1652_v56  ;;  %v1718_v50 = vmul.f32 %v4771_v41, %v7627_v6  ;;  %v1719_v55 = vmul.f32 %v7488_v57, %v7628_v62  ;;  %v1720_v21 = vmul.f32 %v7535_v25, %v7629_v5  ;;  %v7633_v5 = vld [vmem:[#allocation104_spill] sm:$0xff]  ;;  %v7645_v6 = vld [vmem:[#allocation22_spill] sm:$0xff] }
 0x1a5   :  { %v1686_v27 = vadd.f32 %v1685_v12, %v1653_v34  ;;  %v5140_v29 = vmul.f32 %v4791_v31, %v7630_v0  ;;  %v1732_v56 = vadd.f32 %v1731_v48, %v1705_v4  ;;  %v1747_v3 = vadd.f32 %v1746_v42, %v1706_v9  ;;  %v7631_v12 = vld [vmem:[#allocation103_spill] sm:$0xff]  ;;  %v7634_v48 = vld [vmem:[#allocation44_spill] sm:$0xff]  ;;  %v7637_v4 = vld [vmem:[#allocation105_spill] sm:$0xff] }
 0x1a6   :  { %v1672_v40 = vadd.f32 %v1671_v54, %v1654_v46  ;;  %v1625_v20 = vadd.f32 %v1624_v58, %v1623_v60  ;;  %v1722_v34 = vmul.f32 %v7538_v39, %v7631_v12  ;;  %v5147_v49 = vmul.f32 %v7540_v11, %v7632_v53  ;;  %v7635_v58 = vld [vmem:[#allocation89_spill] sm:$0xff]  ;;  %v7640_v53 = vld [vmem:[#allocation91_spill] sm:$0xff] }
 0x1a7   :  { %v1687_v51 = vadd.f32 %v1686_v27, %v5068_v30  ;;  %v5152_v46 = vmul.f32 %v7589_v22, %v7633_v5  ;;  %v1733_v54 = vadd.f32 %v1732_v56, %v1707_v52  ;;  %v1748_v0 = vadd.f32 %v1747_v3, %v1708_v38  ;;  %v7636_v60 = vld [vmem:[#allocation49_spill] sm:$0xff]  ;;  %v7641_v12 = vld [vmem:[#allocation35_spill] sm:$0xff]  ;;  %v7644_v5 = vld [vmem:[#allocation106_spill] sm:$0xff] }
 0x1a8   :  { %v1673_v24 = vadd.f32 %v1672_v40, %v5072_v45  ;;  %v5157_v30 = vmul.f32 %v7636_v60, %v7635_v58  ;;  %v7638_v42 = vld [vmem:[#allocation13_spill] sm:$0xff]  ;;  %v5165_v62 = vmul.f32 %v7641_v12, %v7640_v53  ;;  %v7643_v45 = vld [vmem:[#allocation19_spill] sm:$0xff]  ;;  %v5170_v52 = vmul.f32 %v7645_v6, %v7644_v5 }
 0x1a9   :  { %v1688_v9 = vadd.f32 %v1687_v51, %v7634_v48  ;;  %v5161_v27 = vmul.f32 %v7638_v42, %v7637_v4  ;;  %v1734_v38 = vadd.f32 %v1733_v54, %v1709_v37  ;;  %v1749_v56 = vadd.f32 %v1748_v0, %v1710_v59  ;;  %v7647_v51 = vld [vmem:[#allocation47_spill] sm:$0xff]  ;;  %v7650_v4 = vld [vmem:[#allocation124_spill] sm:$0xff]  ;;  %v7653_v37 = vld [vmem:[#allocation110_spill] sm:$0xff] }
 0x1aa   :  { %7642 = vst [vmem:[#allocation48_spill] sm:$0xff] %v5165_v62  ;;  %v1674_v40 = vadd.f32 %v1673_v24, %v7643_v45  ;;  %7646 = vst [vmem:[#allocation51_spill] sm:$0xff] %v5170_v52  ;;  %v1626_v3 = vrot.slane %v1625_v20, 1  ;;  %v7648_v58 = vld [vmem:[#allocation107_spill] sm:$0xff]  ;;  %v1767_v42 = vmul.f32 %v7602_v23, %v7650_v4  ;;  %v7651_v62 = vld [vmem:[#allocation108_spill] sm:$0xff] }
 0x1ab   :  { %7639 = vst [vmem:[#allocation20_spill] sm:$0xff] %v5161_v27  ;;  %v1689_v48 = vadd.f32 %v1688_v9, %v7647_v51  ;;  %v1766_v60 = vmul.f32 %v7649_v32, %v7648_v58  ;;  %v1735_v27 = vadd.f32 %v1734_v38, %v1711_v13  ;;  %v1750_v53 = vadd.f32 %v1749_v56, %v1712_v8  ;;  %v7652_v45 = vld [vmem:[#allocation126_spill] sm:$0xff]  ;;  %v7655_v54 = vld [vmem:[#allocation127_spill] sm:$0xff]  ;;  %v7656_v9 = vld [vmem:[#allocation37_spill] sm:$0xff] }
 0x1ac   :  { %v1768_v24 = vmul.f32 %v7557_v17, %v7651_v62  ;;  %v1769_v5 = vmul.f32 %v7605_v63, %v7652_v45  ;;  %v7654_v59 = vld [vmem:[#allocation58_spill] sm:$0xff]  ;;  %v1771_v51 = vmul.f32 %v7656_v9, %v7655_v54  ;;  %v7657_v6 = vld [vmem:[#allocation111_spill] sm:$0xff]  ;;  %v7658_v58 = vld [vmem:[#allocation25_spill] sm:$0xff]  ;;  %v5191_v17 = vadd.f32 %v1626_v3, %v1625_v20 }
 0x1ad   :  { %v1690_v52 = vadd.f32 %v1689_v48, %v1674_v40  ;;  %v1770_v0 = vmul.f32 %v7654_v59, %v7653_v37  ;;  %v1772_v32 = vmul.f32 %v7658_v58, %v7657_v6  ;;  %v1736_v12 = vadd.f32 %v1735_v27, %v1713_v14  ;;  %v7659_v13 = vld [vmem:[#allocation128_spill] sm:$0xff]  ;;  %v7660_v8 = vld [vmem:[#allocation17_spill] sm:$0xff]  ;;  %v7665_v6 = vld [vmem:[#allocation130_spill] sm:$0xff] }
 0x1ae   :  { %v1751_v4 = vadd.f32 %v1750_v53, %v1714_v7  ;;  %v1773_v38 = vmul.f32 %v7660_v8, %v7659_v13  ;;  %v7661_v56 = vld [vmem:[#allocation112_spill] sm:$0xff]  ;;  %7662 = vst [vmem:[#allocation52_spill] sm:$0xff] %v5191_v17  ;;  %v7663_v48 = vld [vmem:[#allocation129_spill] sm:$0xff]  ;;  %v1777_v7 = vmul.f32 %v4603_v18, %v7665_v6  ;;  %v7666_v14 = vld [vmem:[#allocation114_spill] sm:$0xff]  ;;  %v1798_v3 = vadd.f32 %v1768_v24, %v1766_v60 }
 0x1af   :  { %v1774_v62 = vmul.f32 %v4712_v1, %v7661_v56  ;;  %v1691_v40 = vrot.slane %v1690_v52, 4  ;;  %v1775_v37 = vmul.f32 %v4595_v10, %v7663_v48  ;;  %v7664_v45 = vld [vmem:[#allocation113_spill] sm:$0xff]  ;;  %v1737_v9 = vadd.f32 %v1736_v12, %v1715_v15  ;;  %v7667_v13 = vld [vmem:[#allocation131_spill] sm:$0xff]  ;;  %v7674_v24 = vld [vmem:[#allocation118_spill] sm:$0xff] }
 0x1b0   :  { %v1776_v54 = vmul.f32 %v4599_v61, %v7664_v45  ;;  %v1752_v59 = vadd.f32 %v1751_v4, %v1716_v43  ;;  %v1778_v53 = vmul.f32 %v4723_v33, %v7666_v14  ;;  %v1779_v20 = vmul.f32 %v4727_v16, %v7667_v13  ;;  %v7668_v48 = vld [vmem:[#allocation115_spill] sm:$0xff]  ;;  %v7669_v45 = vld [vmem:[#allocation132_spill] sm:$0xff]  ;;  %v7671_v4 = vld [vmem:[#allocation133_spill] sm:$0xff] }
 0x1b1   :  { %v1692_v27 = vadd.f32 %v1691_v40, %v1690_v52  ;;  %v1813_v17 = vadd.f32 %v1769_v5, %v1767_v42  ;;  %v1738_v56 = vadd.f32 %v1737_v9, %v1717_v44  ;;  %v1780_v10 = vmul.f32 %v4731_v35, %v7668_v48  ;;  %v7670_v43 = vld [vmem:[#allocation116_spill] sm:$0xff]  ;;  %v7672_v60 = vld [vmem:[#allocation117_spill] sm:$0xff] }
 0x1b2   :  { %v1753_v1 = vadd.f32 %v1752_v59, %v1718_v50  ;;  %v1781_v15 = vmul.f32 %v4738_v28, %v7669_v45  ;;  %v1782_v12 = vmul.f32 %v4743_v2, %v7670_v43  ;;  %v1783_v14 = vmul.f32 %v4749_v36, %v7671_v4  ;;  %v7673_v50 = vld [vmem:[#allocation134_spill] sm:$0xff] }
 0x1b3   :  { %v1799_v52 = vadd.f32 %v1798_v3, %v1770_v0  ;;  %v1814_v40 = vadd.f32 %v1813_v17, %v1771_v51  ;;  %v1739_v6 = vadd.f32 %v1738_v56, %v1719_v55  ;;  %v1784_v44 = vmul.f32 %v4754_v26, %v7672_v60  ;;  %v7675_v0 = vld [vmem:[#allocation135_spill] sm:$0xff]  ;;  %v7678_v56 = vld [vmem:[#allocation120_spill] sm:$0xff] }
 0x1b4   :  { %v1754_v13 = vadd.f32 %v1753_v1, %v1720_v21  ;;  %v1785_v5 = vmul.f32 %v4761_v47, %v7673_v50  ;;  %v1693_v42 = vrot.slane %v1692_v27, 2  ;;  %v5217_v59 = vmul.f32 %v4765_v19, %v7674_v24  ;;  %v7676_v1 = vld [vmem:[#allocation119_spill] sm:$0xff]  ;;  %v7677_v21 = vld [vmem:[#allocation136_spill] sm:$0xff]  ;;  %v7691_v50 = vld [vmem:[#allocation22_spill] sm:$0xff] }
 0x1b5   :  { %v1800_v9 = vadd.f32 %v1799_v52, %v1772_v32  ;;  %v1815_v43 = vadd.f32 %v1814_v40, %v1773_v38  ;;  %v1740_v45 = vadd.f32 %v1739_v6, %v5140_v29  ;;  %v5222_v17 = vmul.f32 %v4771_v41, %v7675_v0  ;;  %v7680_v52 = vld [vmem:[#allocation122_spill] sm:$0xff]  ;;  %v5274_v60 = vld [vmem:[#allocation5 + $0x8] sm:$0xff] }
 0x1b6   :  { %v1755_v4 = vadd.f32 %v1754_v13, %v1722_v34  ;;  %v5226_v55 = vmul.f32 %v7488_v57, %v7676_v1  ;;  %v5230_v51 = vmul.f32 %v7535_v25, %v7677_v21  ;;  %v5234_v3 = vmul.f32 %v4791_v31, %v7678_v56  ;;  %v7679_v34 = vld [vmem:[#allocation137_spill] sm:$0xff]  ;;  %v7681_v1 = vld [vmem:[#allocation138_spill] sm:$0xff]  ;;  %7696 = vst [vmem:[#allocation59_spill] sm:$0xff] %v5274_v60 }
 0x1b7   :  { %v1801_v32 = vadd.f32 %v1800_v9, %v1774_v62  ;;  %v1816_v38 = vadd.f32 %v1815_v43, %v1775_v37  ;;  %v1741_v29 = vadd.f32 %v1740_v45, %v5147_v49  ;;  %v5240_v13 = vmul.f32 %v7538_v39, %v7679_v34  ;;  %v7682_v49 = vld [vmem:[#allocation20_spill] sm:$0xff]  ;;  %v7684_v43 = vld [vmem:[#allocation49_spill] sm:$0xff]  ;;  %v7685_v9 = vld [vmem:[#allocation139_spill] sm:$0xff] }
 0x1b8   :  { %v1756_v6 = vadd.f32 %v1755_v4, %v5152_v46  ;;  %v5244_v40 = vmul.f32 %v7540_v11, %v7680_v52  ;;  %v1694_v21 = vadd.f32 %v1693_v42, %v1692_v27  ;;  %v5248_v0 = vmul.f32 %v7589_v22, %v7681_v1  ;;  %v7683_v46 = vld [vmem:[#allocation123_spill] sm:$0xff]  ;;  %v7686_v34 = vld [vmem:[#allocation13_spill] sm:$0xff]  ;;  %v7690_v1 = vld [vmem:[#allocation140_spill] sm:$0xff] }
 0x1b9   :  { %v1802_v56 = vadd.f32 %v1801_v32, %v1776_v54  ;;  %v1817_v62 = vadd.f32 %v1816_v38, %v1777_v7  ;;  %v1742_v37 = vadd.f32 %v1741_v29, %v5157_v30  ;;  %v5254_v4 = vmul.f32 %v7684_v43, %v7683_v46  ;;  %v7687_v52 = vld [vmem:[#allocation125_spill] sm:$0xff]  ;;  %v7688_v27 = vld [vmem:[#allocation35_spill] sm:$0xff]  ;;  %v7692_v32 = vld [vmem:[#allocation48_spill] sm:$0xff] }
 0x1ba   :  { %v1757_v45 = vadd.f32 %v1756_v6, %v7682_v49  ;;  %v5258_v24 = vmul.f32 %v7686_v34, %v7685_v9  ;;  %v5262_v42 = vmul.f32 %v7688_v27, %v7687_v52  ;;  %v5266_v54 = vmul.f32 %v7691_v50, %v7690_v1  ;;  %v7693_v29 = vld [vmem:[#allocation51_spill] sm:$0xff]  ;;  %v5278_v50 = vld [vmem:[#allocation5 + $0x10] sm:$0xff] }
 0x1bb   :  { %v1803_v7 = vadd.f32 %v1802_v56, %v1778_v53  ;;  %v1818_v30 = vadd.f32 %v1817_v62, %v1779_v20  ;;  %v1743_v38 = vadd.f32 %v1742_v37, %v7692_v32  ;;  %v5270_v49 = vld [vmem:[#allocation5] sm:$0xff]  ;;  %v1836_v52 = vmul.f32 %v5274_v60, %v7602_v23  ;;  %7697 = vst [vmem:[#allocation60_spill] sm:$0xff] %v5278_v50  ;;  %v5282_v62 = vld [vmem:[#allocation5 + $0x18] sm:$0xff]  ;;  %v5290_v60 = vld [vmem:[#allocation5 + $0x28] sm:$0xff] }
 0x1bc   :  { %7689 = vst [vmem:[#allocation55_spill] sm:$0xff] %v5262_v42  ;;  %v1758_v6 = vadd.f32 %v1757_v45, %v7693_v29  ;;  %7694 = vst [vmem:[#allocation56_spill] sm:$0xff] %v5270_v49  ;;  %v7695_v46 = vld [vmem:[#allocation23_spill] sm:$0xff]  ;;  %v1695_v48 = vrot.slane %v1694_v21, 1  ;;  %v1838_v37 = vmul.f32 %v5282_v62, %v7605_v63  ;;  %v7701_v32 = vld [vmem:[#allocation58_spill] sm:$0xff] }
 0x1bd   :  { %v1835_v9 = vmul.f32 %v5270_v49, %v7695_v46  ;;  %v1804_v42 = vadd.f32 %v1803_v7, %v1780_v10  ;;  %v1819_v1 = vadd.f32 %v1818_v30, %v1781_v15  ;;  %v7698_v53 = vld [vmem:[#allocation15_spill] sm:$0xff]  ;;  %7699 = vst [vmem:[#allocation64_spill] sm:$0xff] %v5282_v62  ;;  %7702 = vst [vmem:[#allocation70_spill] sm:$0xff] %v5290_v60  ;;  %v7703_v10 = vld [vmem:[#allocation37_spill] sm:$0xff] }
 0x1be   :  { %v1837_v20 = vmul.f32 %v5278_v50, %v7698_v53  ;;  %v1759_v56 = vadd.f32 %v1758_v6, %v1743_v38  ;;  %v5286_v45 = vld [vmem:[#allocation5 + $0x20] sm:$0xff]  ;;  %v1840_v15 = vmul.f32 %v5290_v60, %v7703_v10  ;;  %v5294_v49 = vld [vmem:[#allocation5 + $0x30] sm:$0xff]  ;;  %v5298_v6 = vld [vmem:[#allocation5 + $0x38] sm:$0xff]  ;;  %v1882_v10 = vadd.f32 %v1838_v37, %v1836_v52 }
 0x1bf   :  { %7700 = vst [vmem:[#allocation65_spill] sm:$0xff] %v5286_v45  ;;  %v1839_v29 = vmul.f32 %v5286_v45, %v7701_v32  ;;  %v1805_v7 = vadd.f32 %v1804_v42, %v1782_v12  ;;  %v1820_v30 = vadd.f32 %v1819_v1, %v1783_v14  ;;  %7704 = vst [vmem:[#allocation71_spill] sm:$0xff] %v5294_v49  ;;  %v5302_v63 = vld [vmem:[#allocation5 + $0x40] sm:$0xff]  ;;  %v7707_v45 = vld [vmem:[#allocation28_spill] sm:$0xff] }
 0x1c0   :  { %v1841_v38 = vmul.f32 %v5294_v49, %v7658_v58  ;;  %7705 = vst [vmem:[#allocation74_spill] sm:$0xff] %v5298_v6  ;;  %v1842_v62 = vmul.f32 %v5298_v6, %v7660_v8  ;;  %v1760_v50 = vrot.slane %v1759_v56, 4  ;;  %7706 = vst [vmem:[#allocation75_spill] sm:$0xff] %v5302_v63  ;;  %v1843_v32 = vmul.f32 %v5302_v63, %v7707_v45  ;;  %v5306_v53 = vld [vmem:[#allocation5 + $0x48] sm:$0xff]  ;;  %v7709_v12 = vld [vmem:[#allocation53_spill] sm:$0xff] }
 0x1c1   :  { %7708 = vst [vmem:[#allocation76_spill] sm:$0xff] %v5306_v53  ;;  %v1844_v14 = vmul.f32 %v5306_v53, %v7709_v12  ;;  %v5310_v1 = vld [vmem:[#allocation5 + $0x50] sm:$0xff]  ;;  %v5314_v49 = vadd.f32 %v1695_v48, %v1694_v21  ;;  %v1806_v60 = vadd.f32 %v1805_v7, %v1784_v44  ;;  %v1821_v6 = vadd.f32 %v1820_v30, %v1785_v5  ;;  %v5316_v8 = vld [vmem:[#allocation5 + $0x58] sm:$0xff]  ;;  %v5320_v45 = vld [vmem:[#allocation5 + $0x60] sm:$0xff] }
 0x1c2   :  { %7710 = vst [vmem:[#allocation63_spill] sm:$0xff] %v5310_v1  ;;  %v1845_v42 = vmul.f32 %v5310_v1, %v4599_v61  ;;  %7712 = vst [vmem:[#allocation78_spill] sm:$0xff] %v5316_v8  ;;  %v1846_v58 = vmul.f32 %v5316_v8, %v4603_v18  ;;  %v1761_v63 = vadd.f32 %v1760_v50, %v1759_v56  ;;  %v5326_v48 = vld [vmem:[#allocation5 + $0x68] sm:$0xff]  ;;  %v5330_v5 = vld [vmem:[#allocation5 + $0x70] sm:$0xff] }
 0x1c3   :  { %7711 = vst [vmem:[#allocation77_spill] sm:$0xff] %v5314_v49  ;;  %7713 = vst [vmem:[#allocation79_spill] sm:$0xff] %v5320_v45  ;;  %v1847_v12 = vmul.f32 %v5320_v45, %v4723_v33  ;;  %v1867_v53 = vadd.f32 %v1837_v20, %v1835_v9  ;;  %v1807_v23 = vadd.f32 %v1806_v60, %v5217_v59  ;;  %v5334_v50 = vld [vmem:[#allocation5 + $0x78] sm:$0xff]  ;;  %v5338_v52 = vld [vmem:[#allocation5 + $0x80] sm:$0xff] }
 0x1c4   :  { %v1822_v61 = vadd.f32 %v1821_v6, %v5222_v17  ;;  %7714 = vst [vmem:[#allocation42_spill] sm:$0xff] %v5326_v48  ;;  %v1848_v44 = vmul.f32 %v5326_v48, %v4727_v16  ;;  %7715 = vst [vmem:[#allocation46_spill] sm:$0xff] %v5330_v5  ;;  %v1849_v18 = vmul.f32 %v5330_v5, %v4731_v35  ;;  %v5344_v56 = vld [vmem:[#allocation5 + $0x88] sm:$0xff]  ;;  %v5348_v7 = vld [vmem:[#allocation5 + $0x90] sm:$0xff]  ;;  %v1762_v6 = vrot.slane %v1761_v63, 2 }
 0x1c5   :  { %7716 = vst [vmem:[#allocation80_spill] sm:$0xff] %v5334_v50  ;;  %v1850_v21 = vmul.f32 %v5334_v50, %v4738_v28  ;;  %7717 = vst [vmem:[#allocation34_spill] sm:$0xff] %v5338_v52  ;;  %v1851_v60 = vmul.f32 %v5338_v52, %v4743_v2  ;;  %v1868_v59 = vadd.f32 %v1867_v53, %v1839_v29  ;;  %v5354_v49 = vld [vmem:[#allocation5 + $0x98] sm:$0xff]  ;;  %v7742_v5 = vld [vmem:[#allocation159_spill] sm:$0xff] }
 0x1c6   :  { %v1883_v17 = vadd.f32 %v1882_v10, %v1840_v15  ;;  %v1808_v9 = vadd.f32 %v1807_v23, %v5226_v55  ;;  %v1823_v20 = vadd.f32 %v1822_v61, %v5230_v51  ;;  %7718 = vst [vmem:[#allocation54_spill] sm:$0xff] %v5344_v56  ;;  %v1852_v37 = vmul.f32 %v5344_v56, %v4749_v36  ;;  %v5360_v10 = vld [vmem:[#allocation5 + $0xa0] sm:$0xff]  ;;  %v5366_v61 = vld [vmem:[#allocation5 + $0xa8] sm:$0xff]  ;;  %v5372_v56 = vld [vmem:[#allocation5 + $0xb0] sm:$0xff] }
 0x1c7   :  { %7719 = vst [vmem:[#allocation57_spill] sm:$0xff] %v5348_v7  ;;  %v5352_v30 = vmul.f32 %v5348_v7, %v4754_v26  ;;  %7720 = vst [vmem:[#allocation50_spill] sm:$0xff] %v5354_v49  ;;  %v1854_v53 = vmul.f32 %v5354_v49, %v4761_v47  ;;  %v1869_v23 = vadd.f32 %v1868_v59, %v1841_v38  ;;  %v5398_v49 = vld [vmem:[#allocation5 + $0xd0] sm:$0xff]  ;;  %v7743_v48 = vld [vmem:[#allocation58_spill] sm:$0xff] }
 0x1c8   :  { %v1884_v55 = vadd.f32 %v1883_v17, %v1842_v62  ;;  %v1809_v51 = vadd.f32 %v1808_v9, %v5234_v3  ;;  %v1824_v29 = vadd.f32 %v1823_v20, %v5240_v13  ;;  %7721 = vst [vmem:[#allocation32_spill] sm:$0xff] %v5360_v10  ;;  %v5364_v15 = vmul.f32 %v5360_v10, %v4765_v19  ;;  %v5378_v3 = vld [vmem:[#allocation5 + $0xb8] sm:$0xff]  ;;  %v5386_v20 = vld [vmem:[#allocation5 + $0xc0] sm:$0xff] }
 0x1c9   :  { %7722 = vst [vmem:[#allocation31_spill] sm:$0xff] %v5366_v61  ;;  %v5370_v7 = vmul.f32 %v5366_v61, %v4771_v41  ;;  %7723 = vst [vmem:[#allocation38_spill] sm:$0xff] %v5372_v56  ;;  %v5376_v62 = vmul.f32 %v5372_v56, %v7488_v57  ;;  %v5382_v13 = vmul.f32 %v5378_v3, %v7535_v25  ;;  %v5392_v56 = vld [vmem:[#allocation5 + $0xc8] sm:$0xff]  ;;  %v7744_v8 = vld [vmem:[#allocation143_spill] sm:$0xff] }
 0x1ca   :  { %7724 = vst [vmem:[#allocation41_spill] sm:$0xff] %v5378_v3  ;;  %v1870_v38 = vadd.f32 %v1869_v23, %v1843_v32  ;;  %v1885_v59 = vadd.f32 %v1884_v55, %v1844_v14  ;;  %v1810_v17 = vadd.f32 %v1809_v51, %v5244_v40  ;;  %v1825_v9 = vadd.f32 %v1824_v29, %v5248_v0  ;;  %v5406_v55 = vld [vmem:[#allocation5 + $0xd8] sm:$0xff]  ;;  %v5412_v29 = vld [vmem:[#allocation5 + $0xe0] sm:$0xff] }
 0x1cb   :  { %7725 = vst [vmem:[#allocation40_spill] sm:$0xff] %v5386_v20  ;;  %v5390_v61 = vmul.f32 %v5386_v20, %v4791_v31  ;;  %7726 = vst [vmem:[#allocation45_spill] sm:$0xff] %v5392_v56  ;;  %v5396_v10 = vmul.f32 %v5392_v56, %v7538_v39  ;;  %v1763_v3 = vadd.f32 %v1762_v6, %v1761_v63  ;;  %v5418_v6 = vld [vmem:[#allocation5 + $0xe8] sm:$0xff]  ;;  %v5456_v1 = vld [vmem:[#allocation2 + $0x58] sm:$0xff] }
 0x1cc   :  { %7727 = vst [vmem:[#allocation24_spill] sm:$0xff] %v5398_v49  ;;  %v5402_v40 = vmul.f32 %v5398_v49, %v7540_v11  ;;  %v1871_v0 = vadd.f32 %v1870_v38, %v1845_v42  ;;  %v1886_v32 = vadd.f32 %v1885_v59, %v1846_v58  ;;  %v1811_v14 = vadd.f32 %v1810_v17, %v5254_v4  ;;  %v5424_v4 = vld [vmem:[#allocation5 + $0xf0] sm:$0xff]  ;;  %v7732_v59 = vld [vmem:[#allocation55_spill] sm:$0xff] }
 0x1cd   :  { %v1826_v23 = vadd.f32 %v1825_v9, %v5258_v24  ;;  %7728 = vst [vmem:[#allocation29_spill] sm:$0xff] %v5406_v55  ;;  %v5410_v51 = vmul.f32 %v5406_v55, %v7589_v22  ;;  %7729 = vst [vmem:[#allocation44_spill] sm:$0xff] %v5412_v29  ;;  %v5416_v63 = vmul.f32 %v5412_v29, %v7684_v43  ;;  %v5432_v29 = vld [vmem:[#allocation5 + $0xf8] sm:$0xff]  ;;  %v1764_v20 = vrot.slane %v1763_v3, 1 }
 0x1ce   :  { %7730 = vst [vmem:[#allocation19_spill] sm:$0xff] %v5418_v6  ;;  %v5422_v58 = vmul.f32 %v5418_v6, %v7686_v34  ;;  %7731 = vst [vmem:[#allocation47_spill] sm:$0xff] %v5424_v4  ;;  %v5428_v24 = vmul.f32 %v5424_v4, %v7688_v27  ;;  %v1872_v42 = vadd.f32 %v1871_v0, %v1847_v12  ;;  %v7734_v55 = vld [vmem:[#allocation22_spill] sm:$0xff]  ;;  %v7735_v6 = vld [vmem:[#allocation153_spill] sm:$0xff] }
 0x1cf   :  { %v1887_v38 = vadd.f32 %v1886_v32, %v1848_v44  ;;  %v1812_v17 = vadd.f32 %v1811_v14, %v7732_v59  ;;  %v1827_v9 = vadd.f32 %v1826_v23, %v5266_v54  ;;  %7733 = vst [vmem:[#allocation20_spill] sm:$0xff] %v5432_v29  ;;  %v5436_v49 = vmul.f32 %v5432_v29, %v7734_v55  ;;  %v7736_v27 = vld [vmem:[#allocation141_spill] sm:$0xff]  ;;  %v7737_v4 = vld [vmem:[#allocation14_spill] sm:$0xff]  ;;  %v7739_v32 = vld [vmem:[#allocation15_spill] sm:$0xff] }
 0x1d0   :  { %v1904_v56 = vmul.f32 %v7695_v46, %v7735_v6  ;;  %v1873_v52 = vadd.f32 %v1872_v42, %v1849_v18  ;;  %v1905_v12 = vmul.f32 %v7737_v4, %v7736_v27  ;;  %v7738_v0 = vld [vmem:[#allocation158_spill] sm:$0xff]  ;;  %v7741_v23 = vld [vmem:[#allocation81_spill] sm:$0xff]  ;;  %v1908_v55 = vmul.f32 %v7743_v48, %v7742_v5  ;;  %v7746_v18 = vld [vmem:[#allocation160_spill] sm:$0xff]  ;;  %7752 = vst [vmem:[#allocation49_spill] sm:$0xff] %v5456_v1 }
 0x1d1   :  { %v1888_v50 = vadd.f32 %v1887_v38, %v1850_v21  ;;  %v1828_v44 = vadd.f32 %v1827_v9, %v1812_v17  ;;  %v1906_v14 = vmul.f32 %v7739_v32, %v7738_v0  ;;  %v7740_v54 = vld [vmem:[#allocation142_spill] sm:$0xff]  ;;  %v7745_v46 = vld [vmem:[#allocation37_spill] sm:$0xff]  ;;  %v7748_v4 = vld [vmem:[#allocation144_spill] sm:$0xff] }
 0x1d2   :  { %v1907_v59 = vmul.f32 %v7741_v23, %v7740_v54  ;;  %v1874_v29 = vadd.f32 %v1873_v52, %v1851_v60  ;;  %v1909_v6 = vmul.f32 %v7745_v46, %v7744_v8  ;;  %v7747_v21 = vld [vmem:[#allocation25_spill] sm:$0xff]  ;;  %v7751_v32 = vld [vmem:[#allocation28_spill] sm:$0xff]  ;;  %v5460_v52 = vadd.f32 %v1764_v20, %v1763_v3  ;;  %v7756_v46 = vld [vmem:[#allocation162_spill] sm:$0xff] }
 0x1d3   :  { %v1889_v45 = vadd.f32 %v1888_v50, %v1852_v37  ;;  %v1910_v42 = vmul.f32 %v7747_v21, %v7746_v18  ;;  %v1829_v38 = vrot.slane %v1828_v44, 4  ;;  %v7749_v17 = vld [vmem:[#allocation17_spill] sm:$0xff]  ;;  %v5463_v37 = vld [vmem:[#allocation2 + $0x60] sm:$0xff]  ;;  %v5660_v54 = vld [vmem:[#allocation2 + $0xd8] sm:$0xff] }
 0x1d4   :  { %v1911_v9 = vmul.f32 %v7749_v17, %v7748_v4  ;;  %v7750_v27 = vld [vmem:[#allocation161_spill] sm:$0xff]  ;;  %7754 = vst [vmem:[#allocation13_spill] sm:$0xff] %v5460_v52  ;;  %v1875_v50 = vadd.f32 %v1874_v29, %v5352_v30  ;;  %7755 = vst [vmem:[#allocation35_spill] sm:$0xff] %v5463_v37  ;;  %v1914_v21 = vmul.f32 %v5463_v37, %v7756_v46  ;;  %v5467_v17 = vld [vmem:[#allocation2 + $0x68] sm:$0xff] }
 0x1d5   :  { %v1912_v0 = vmul.f32 %v7751_v32, %v7750_v27  ;;  %v7753_v23 = vld [vmem:[#allocation145_spill] sm:$0xff]  ;;  %v1890_v60 = vadd.f32 %v1889_v45, %v1854_v53  ;;  %v1830_v18 = vadd.f32 %v1829_v38, %v1828_v44  ;;  %7757 = vst [vmem:[#allocation48_spill] sm:$0xff] %v5467_v17  ;;  %v7758_v4 = vld [vmem:[#allocation146_spill] sm:$0xff]  ;;  %v7759_v27 = vld [vmem:[#allocation163_spill] sm:$0xff]  ;;  %v1951_v20 = vadd.f32 %v1907_v59, %v1905_v12 }
 0x1d6   :  { %v1913_v48 = vmul.f32 %v5456_v1, %v7753_v23  ;;  %v1915_v32 = vmul.f32 %v5467_v17, %v7758_v4  ;;  %v1916_v8 = vmul.f32 %v4723_v33, %v7759_v27  ;;  %v1936_v23 = vadd.f32 %v1906_v14, %v1904_v56  ;;  %v7760_v45 = vld [vmem:[#allocation147_spill] sm:$0xff]  ;;  %v7761_v29 = vld [vmem:[#allocation164_spill] sm:$0xff]  ;;  %v7763_v46 = vld [vmem:[#allocation165_spill] sm:$0xff] }
 0x1d7   :  { %v1876_v3 = vadd.f32 %v1875_v50, %v5364_v15  ;;  %v1891_v30 = vadd.f32 %v1890_v60, %v5370_v7  ;;  %v1917_v53 = vmul.f32 %v4727_v16, %v7760_v45  ;;  %v1918_v44 = vmul.f32 %v4731_v35, %v7761_v29  ;;  %v7762_v38 = vld [vmem:[#allocation148_spill] sm:$0xff]  ;;  %v7764_v15 = vld [vmem:[#allocation149_spill] sm:$0xff]  ;;  %v7765_v12 = vld [vmem:[#allocation166_spill] sm:$0xff] }
 0x1d8   :  { %v1919_v52 = vmul.f32 %v4738_v28, %v7762_v38  ;;  %v1920_v4 = vmul.f32 %v4743_v2, %v7763_v46  ;;  %v1937_v5 = vadd.f32 %v1936_v23, %v1908_v55  ;;  %v1921_v7 = vmul.f32 %v4749_v36, %v7764_v15  ;;  %v7766_v35 = vld [vmem:[#allocation150_spill] sm:$0xff]  ;;  %v7767_v55 = vld [vmem:[#allocation167_spill] sm:$0xff]  ;;  %v5624_v38 = vld [vmem:[#allocation2 + $0xa8] sm:$0xff] }
 0x1d9   :  { %v1877_v33 = vadd.f32 %v1876_v3, %v5376_v62  ;;  %v1892_v56 = vadd.f32 %v1891_v30, %v5382_v13  ;;  %v1952_v14 = vadd.f32 %v1951_v20, %v1909_v6  ;;  %v1831_v16 = vrot.slane %v1830_v18, 2  ;;  %v7768_v23 = vld [vmem:[#allocation151_spill] sm:$0xff]  ;;  %v7769_v6 = vld [vmem:[#allocation168_spill] sm:$0xff]  ;;  %v7772_v30 = vld [vmem:[#allocation154_spill] sm:$0xff] }
 0x1da   :  { %v1922_v59 = vmul.f32 %v4754_v26, %v7765_v12  ;;  %v1923_v50 = vmul.f32 %v4761_v47, %v7766_v35  ;;  %v1938_v28 = vadd.f32 %v1937_v5, %v1910_v42  ;;  %v1924_v62 = vmul.f32 %v4765_v19, %v7767_v55  ;;  %v7770_v26 = vld [vmem:[#allocation152_spill] sm:$0xff]  ;;  %v7771_v42 = vld [vmem:[#allocation169_spill] sm:$0xff]  ;;  %v7803_v35 = vld [vmem:[#allocation195_spill] sm:$0xff] }
 0x1db   :  { %v1878_v60 = vadd.f32 %v1877_v33, %v5390_v61  ;;  %v1893_v2 = vadd.f32 %v1892_v56, %v5396_v10  ;;  %v1953_v13 = vadd.f32 %v1952_v14, %v1911_v9  ;;  %v5497_v36 = vmul.f32 %v4771_v41, %v7768_v23  ;;  %v7802_v23 = vld [vmem:[#allocation178_spill] sm:$0xff]  ;;  %v5620_v15 = vld [vmem:[#allocation2 + $0xa0] sm:$0xff]  ;;  %v5629_v29 = vld [vmem:[#allocation2 + $0xb0] sm:$0xff] }
 0x1dc   :  { %v5501_v3 = vmul.f32 %v7488_v57, %v7769_v6  ;;  %v5505_v47 = vmul.f32 %v7535_v25, %v7770_v26  ;;  %v1939_v5 = vadd.f32 %v1938_v28, %v1912_v0  ;;  %v5511_v19 = vmul.f32 %v4791_v31, %v7771_v42  ;;  %v7773_v57 = vld [vmem:[#allocation170_spill] sm:$0xff]  ;;  %v7780_v28 = vld [vmem:[#allocation157_spill] sm:$0xff]  ;;  %v5640_v45 = vld [vmem:[#allocation2 + $0xc0] sm:$0xff] }
 0x1dd   :  { %v1879_v61 = vadd.f32 %v1878_v60, %v5402_v40  ;;  %v1894_v10 = vadd.f32 %v1893_v2, %v5410_v51  ;;  %v1954_v9 = vadd.f32 %v1953_v13, %v1913_v48  ;;  %v1832_v41 = vadd.f32 %v1831_v16, %v1830_v18  ;;  %v7774_v51 = vld [vmem:[#allocation155_spill] sm:$0xff]  ;;  %v5549_v13 = vld [vmem:[#allocation2 + $0x10] sm:$0xff]  ;;  %v7801_v6 = vld [vmem:[#allocation194_spill] sm:$0xff] }
 0x1de   :  { %v5515_v20 = vmul.f32 %v7538_v39, %v7772_v30  ;;  %v5519_v33 = vmul.f32 %v7540_v11, %v7773_v57  ;;  %v1940_v25 = vadd.f32 %v1939_v5, %v1914_v21  ;;  %v5525_v56 = vmul.f32 %v7589_v22, %v7774_v51  ;;  %v7775_v48 = vld [vmem:[#allocation171_spill] sm:$0xff]  ;;  %v7776_v39 = vld [vmem:[#allocation156_spill] sm:$0xff]  ;;  %7781 = vst [vmem:[#allocation53_spill] sm:$0xff] %v5549_v13  ;;  %v7782_v5 = vld [vmem:[#allocation189_spill] sm:$0xff] }
 0x1df   :  { %v1880_v0 = vadd.f32 %v1879_v61, %v5416_v63  ;;  %v1895_v40 = vadd.f32 %v1894_v10, %v5422_v58  ;;  %v1955_v31 = vadd.f32 %v1954_v9, %v1915_v32  ;;  %v5529_v18 = vmul.f32 %v7684_v43, %v7775_v48  ;;  %v5535_v11 = vld [vmem:[#allocation2] sm:$0xff]  ;;  %v7778_v21 = vld [vmem:[#allocation172_spill] sm:$0xff]  ;;  %v5553_v10 = vld [vmem:[#allocation2 + $0x18] sm:$0xff] }
 0x1e0   :  { %v5533_v14 = vmul.f32 %v7686_v34, %v7776_v39  ;;  %7777 = vst [vmem:[#allocation51_spill] sm:$0xff] %v5535_v11  ;;  %v5539_v63 = vmul.f32 %v5535_v11, %v7778_v21  ;;  %v1941_v58 = vadd.f32 %v1940_v25, %v1916_v8  ;;  %v5543_v32 = vld [vmem:[#allocation2 + $0x8] sm:$0xff]  ;;  %v1833_v34 = vrot.slane %v1832_v41, 1  ;;  %7783 = vst [vmem:[#allocation55_spill] sm:$0xff] %v5553_v10  ;;  %v7784_v8 = vld [vmem:[#allocation173_spill] sm:$0xff] }
 0x1e1   :  { %v1881_v16 = vadd.f32 %v1880_v0, %v5428_v24  ;;  %v1896_v22 = vadd.f32 %v1895_v40, %v5436_v49  ;;  %7779 = vst [vmem:[#allocation23_spill] sm:$0xff] %v5543_v32  ;;  %v5547_v43 = vmul.f32 %v5543_v32, %v7780_v28  ;;  %v1956_v60 = vadd.f32 %v1955_v31, %v1917_v53  ;;  %v5557_v25 = vld [vmem:[#allocation2 + $0x20] sm:$0xff]  ;;  %v7786_v0 = vld [vmem:[#allocation190_spill] sm:$0xff]  ;;  %v5561_v53 = vld [vmem:[#allocation2 + $0x28] sm:$0xff] }
 0x1e2   :  { %v1942_v2 = vadd.f32 %v1941_v58, %v1918_v44  ;;  %v1973_v61 = vmul.f32 %v5549_v13, %v7782_v5  ;;  %v1974_v24 = vmul.f32 %v5553_v10, %v7784_v8  ;;  %7785 = vst [vmem:[#allocation22_spill] sm:$0xff] %v5557_v25  ;;  %v1975_v40 = vmul.f32 %v5557_v25, %v7786_v0  ;;  %v7788_v44 = vld [vmem:[#allocation174_spill] sm:$0xff]  ;;  %v5565_v28 = vld [vmem:[#allocation2 + $0x30] sm:$0xff]  ;;  %v7790_v5 = vld [vmem:[#allocation191_spill] sm:$0xff] }
 0x1e3   :  { %v1897_v49 = vadd.f32 %v1896_v22, %v1881_v16  ;;  %v1957_v9 = vadd.f32 %v1956_v60, %v1919_v52  ;;  %7787 = vst [vmem:[#allocation14_spill] sm:$0xff] %v5561_v53  ;;  %v1976_v31 = vmul.f32 %v5561_v53, %v7788_v44  ;;  %7789 = vst [vmem:[#allocation15_spill] sm:$0xff] %v5565_v28  ;;  %v5569_v39 = vld [vmem:[#allocation2 + $0x38] sm:$0xff]  ;;  %v7792_v16 = vld [vmem:[#allocation175_spill] sm:$0xff] }
 0x1e4   :  { %v1943_v58 = vadd.f32 %v1942_v2, %v1920_v4  ;;  %v1977_v21 = vmul.f32 %v5565_v28, %v7790_v5  ;;  %7791 = vst [vmem:[#allocation81_spill] sm:$0xff] %v5569_v39  ;;  %v1978_v52 = vmul.f32 %v5569_v39, %v7792_v16  ;;  %v5573_v22 = vld [vmem:[#allocation2 + $0x40] sm:$0xff]  ;;  %v7794_v60 = vld [vmem:[#allocation192_spill] sm:$0xff]  ;;  %v5581_v44 = vld [vmem:[#allocation2 + $0x50] sm:$0xff]  ;;  %v5585_v30 = vadd.f32 %v1833_v34, %v1832_v41 }
 0x1e5   :  { %7793 = vst [vmem:[#allocation58_spill] sm:$0xff] %v5573_v22  ;;  %v1979_v0 = vmul.f32 %v5573_v22, %v7794_v60  ;;  %v1898_v8 = vrot.slane %v1897_v49, 4  ;;  %v1958_v48 = vadd.f32 %v1957_v9, %v1921_v7  ;;  %v5577_v51 = vld [vmem:[#allocation2 + $0x48] sm:$0xff]  ;;  %7797 = vst [vmem:[#allocation25_spill] sm:$0xff] %v5581_v44  ;;  %v7798_v5 = vld [vmem:[#allocation193_spill] sm:$0xff]  ;;  %v1983_v60 = vmul.f32 %v5463_v37, %v7801_v6 }
 0x1e6   :  { %7795 = vst [vmem:[#allocation37_spill] sm:$0xff] %v5577_v51  ;;  %v7796_v4 = vld [vmem:[#allocation176_spill] sm:$0xff]  ;;  %v1981_v57 = vmul.f32 %v5581_v44, %v7798_v5  ;;  %7799 = vst [vmem:[#allocation17_spill] sm:$0xff] %v5585_v30  ;;  %v1944_v16 = vadd.f32 %v1943_v58, %v1922_v59  ;;  %v7800_v42 = vld [vmem:[#allocation177_spill] sm:$0xff]  ;;  %v1984_v55 = vmul.f32 %v5467_v17, %v7802_v23 }
 0x1e7   :  { %v1980_v2 = vmul.f32 %v5577_v51, %v7796_v4  ;;  %v1982_v26 = vmul.f32 %v5456_v1, %v7800_v42  ;;  %v1899_v7 = vadd.f32 %v1898_v8, %v1897_v49  ;;  %v1959_v9 = vadd.f32 %v1958_v48, %v1923_v50  ;;  %v5593_v4 = vld [vmem:[#allocation2 + $0x70] sm:$0xff]  ;;  %v5597_v41 = vld [vmem:[#allocation2 + $0x78] sm:$0xff]  ;;  %v7804_v59 = vld [vmem:[#allocation179_spill] sm:$0xff] }
 0x1e8   :  { %v1985_v12 = vmul.f32 %v5593_v4, %v7803_v35  ;;  %v1945_v5 = vadd.f32 %v1944_v16, %v1924_v62  ;;  %v1986_v34 = vmul.f32 %v5597_v41, %v7804_v59  ;;  %v2005_v58 = vadd.f32 %v1975_v40, %v1973_v61  ;;  %v5602_v8 = vld [vmem:[#allocation2 + $0x80] sm:$0xff]  ;;  %v7805_v50 = vld [vmem:[#allocation196_spill] sm:$0xff]  ;;  %v5610_v62 = vld [vmem:[#allocation2 + $0x90] sm:$0xff] }
 0x1e9   :  { %v2020_v30 = vadd.f32 %v1976_v31, %v1974_v24  ;;  %v1960_v6 = vadd.f32 %v1959_v9, %v5497_v36  ;;  %v1987_v48 = vmul.f32 %v5602_v8, %v7805_v50  ;;  %v5606_v49 = vld [vmem:[#allocation2 + $0x88] sm:$0xff]  ;;  %v7807_v16 = vld [vmem:[#allocation197_spill] sm:$0xff]  ;;  %v5615_v24 = vld [vmem:[#allocation2 + $0x98] sm:$0xff]  ;;  %v1900_v50 = vrot.slane %v1899_v7, 2 }
 0x1ea   :  { %v7806_v23 = vld [vmem:[#allocation180_spill] sm:$0xff]  ;;  %v1989_v42 = vmul.f32 %v5610_v62, %v7807_v16  ;;  %v1946_v61 = vadd.f32 %v1945_v5, %v5501_v3  ;;  %v7808_v36 = vld [vmem:[#allocation181_spill] sm:$0xff]  ;;  %v2006_v31 = vadd.f32 %v2005_v58, %v1977_v21  ;;  %v7810_v16 = vld [vmem:[#allocation182_spill] sm:$0xff] }
 0x1eb   :  { %v1988_v35 = vmul.f32 %v5606_v49, %v7806_v23  ;;  %v1990_v40 = vmul.f32 %v5615_v24, %v7808_v36  ;;  %v2021_v9 = vadd.f32 %v2020_v30, %v1978_v52  ;;  %v1961_v59 = vadd.f32 %v1960_v6, %v5505_v47  ;;  %v7809_v23 = vld [vmem:[#allocation198_spill] sm:$0xff]  ;;  %v7811_v36 = vld [vmem:[#allocation199_spill] sm:$0xff]  ;;  %v7814_v27 = vld [vmem:[#allocation184_spill] sm:$0xff] }
 0x1ec   :  { %v1991_v46 = vmul.f32 %v5620_v15, %v7809_v23  ;;  %v1992_v3 = vmul.f32 %v5624_v38, %v7810_v16  ;;  %v1947_v5 = vadd.f32 %v1946_v61, %v5511_v19  ;;  %v5633_v30 = vmul.f32 %v5629_v29, %v7811_v36  ;;  %v5636_v52 = vld [vmem:[#allocation2 + $0xb8] sm:$0xff]  ;;  %v7812_v58 = vld [vmem:[#allocation183_spill] sm:$0xff]  ;;  %v7813_v16 = vld [vmem:[#allocation200_spill] sm:$0xff] }
 0x1ed   :  { %v2007_v21 = vadd.f32 %v2006_v31, %v1979_v0  ;;  %v2022_v6 = vadd.f32 %v2021_v9, %v1980_v2  ;;  %v1962_v47 = vadd.f32 %v1961_v59, %v5515_v20  ;;  %v1994_v23 = vmul.f32 %v5636_v52, %v7812_v58  ;;  %v5646_v61 = vld [vmem:[#allocation2 + $0xc8] sm:$0xff]  ;;  %v5653_v20 = vld [vmem:[#allocation2 + $0xd0] sm:$0xff] }
 0x1ee   :  { %v5644_v19 = vmul.f32 %v5640_v45, %v7813_v16  ;;  %v5650_v36 = vmul.f32 %v5646_v61, %v7814_v27  ;;  %v1948_v0 = vadd.f32 %v1947_v5, %v5519_v33  ;;  %7815 = vst [vmem:[#allocation28_spill] sm:$0xff] %v5653_v20  ;;  %v7816_v2 = vld [vmem:[#allocation201_spill] sm:$0xff]  ;;  %v1901_v58 = vadd.f32 %v1900_v50, %v1899_v7  ;;  %v5666_v27 = vld [vmem:[#allocation2 + $0xe0] sm:$0xff]  ;;  %v7819_v33 = vld [vmem:[#allocation202_spill] sm:$0xff] }
 0x1ef   :  { %v5657_v59 = vmul.f32 %v5653_v20, %v7816_v2  ;;  %v2008_v31 = vadd.f32 %v2007_v21, %v1981_v57  ;;  %v2023_v9 = vadd.f32 %v2022_v6, %v1982_v26  ;;  %v1963_v16 = vadd.f32 %v1962_v47, %v5525_v56  ;;  %v7817_v10 = vld [vmem:[#allocation185_spill] sm:$0xff]  ;;  %7818 = vst [vmem:[#allocation205_spill] sm:$0xff] %v5666_v27  ;;  %v5673_v20 = vld [vmem:[#allocation2 + $0xe8] sm:$0xff]  ;;  %v7821_v26 = vld [vmem:[#allocation186_spill] sm:$0xff] }
 0x1f0   :  { %v5664_v13 = vmul.f32 %v5660_v54, %v7817_v10  ;;  %v5670_v5 = vmul.f32 %v5666_v27, %v7819_v33  ;;  %v1949_v2 = vadd.f32 %v1948_v0, %v5529_v18  ;;  %7820 = vst [vmem:[#allocation206_spill] sm:$0xff] %v5673_v20  ;;  %v5677_v57 = vmul.f32 %v5673_v20, %v7821_v26  ;;  %v5680_v21 = vld [vmem:[#allocation2 + $0xf0] sm:$0xff]  ;;  %v7823_v6 = vld [vmem:[#allocation203_spill] sm:$0xff]  ;;  %v5686_v33 = vld [vmem:[#allocation2 + $0xf8] sm:$0xff] }
 0x1f1   :  { %v2009_v56 = vadd.f32 %v2008_v31, %v1983_v60  ;;  %v2024_v7 = vadd.f32 %v2023_v9, %v1984_v55  ;;  %v1964_v50 = vadd.f32 %v1963_v16, %v5533_v14  ;;  %7822 = vst [vmem:[#allocation207_spill] sm:$0xff] %v5680_v21  ;;  %v5684_v47 = vmul.f32 %v5680_v21, %v7823_v6  ;;  %v7826_v10 = vld [vmem:[#allocation187_spill] sm:$0xff]  ;;  %v7828_v0 = vld [vmem:[#allocation204_spill] sm:$0xff] }
 0x1f2   :  { %7825 = vst [vmem:[#allocation209_spill] sm:$0xff] %v5686_v33  ;;  %v5690_v18 = vmul.f32 %v5686_v33, %v7826_v10  ;;  %v5694_v26 = vmul.f32 %v5535_v11, %v7828_v0  ;;  %v1950_v55 = vadd.f32 %v1949_v2, %v5539_v63  ;;  %v7830_v60 = vld [vmem:[#allocation188_spill] sm:$0xff]  ;;  %v1902_v9 = vrot.slane %v1901_v58, 1  ;;  %v7833_v10 = vld [vmem:[#allocation90_spill] sm:$0xff] }
 0x1f3   :  { %7824 = vst [vmem:[#allocation208_spill] sm:$0xff] %v5684_v47  ;;  %v5699_v14 = vmul.f32 %v5543_v32, %v7830_v60  ;;  %v2010_v16 = vadd.f32 %v2009_v56, %v1985_v12  ;;  %v2025_v31 = vadd.f32 %v2024_v7, %v1986_v34  ;;  %v1965_v6 = vadd.f32 %v1964_v50, %v5547_v43  ;;  %v7832_v47 = vld [vmem:[#allocation62_spill] sm:$0xff]  ;;  %v7835_v2 = vld [vmem:[#allocation92_spill] sm:$0xff]  ;;  %v7836_v12 = vld [vmem:[#allocation67_spill] sm:$0xff] }
 0x1f4   :  { %7827 = vst [vmem:[#allocation210_spill] sm:$0xff] %v5690_v18  ;;  %7829 = vst [vmem:[#allocation211_spill] sm:$0xff] %v5694_v26  ;;  %v2042_v21 = vmul.f32 %v5557_v25, %v7832_v47  ;;  %v2043_v18 = vmul.f32 %v5561_v53, %v7833_v10  ;;  %v7834_v26 = vld [vmem:[#allocation66_spill] sm:$0xff]  ;;  %v2045_v60 = vmul.f32 %v5569_v39, %v7835_v2  ;;  %v7837_v56 = vld [vmem:[#allocation93_spill] sm:$0xff] }
 0x1f5   :  { %7831 = vst [vmem:[#allocation212_spill] sm:$0xff] %v5699_v14  ;;  %v2011_v33 = vadd.f32 %v2010_v16, %v1987_v48  ;;  %v2026_v0 = vadd.f32 %v2025_v31, %v1988_v35  ;;  %v2044_v63 = vmul.f32 %v5565_v28, %v7834_v26  ;;  %v1966_v14 = vadd.f32 %v1965_v6, %v1950_v55  ;;  %v7838_v7 = vld [vmem:[#allocation68_spill] sm:$0xff]  ;;  %v7839_v48 = vld [vmem:[#allocation94_spill] sm:$0xff]  ;;  %v7840_v16 = vld [vmem:[#allocation69_spill] sm:$0xff] }
 0x1f6   :  { %v2046_v34 = vmul.f32 %v5573_v22, %v7836_v12  ;;  %v2047_v43 = vmul.f32 %v5577_v51, %v7837_v56  ;;  %v2048_v50 = vmul.f32 %v5581_v44, %v7838_v7  ;;  %v2049_v35 = vmul.f32 %v5456_v1, %v7839_v48  ;;  %v7842_v55 = vld [vmem:[#allocation95_spill] sm:$0xff]  ;;  %v7843_v12 = vld [vmem:[#allocation72_spill] sm:$0xff]  ;;  %v7846_v48 = vld [vmem:[#allocation97_spill] sm:$0xff] }
 0x1f7   :  { %v2012_v47 = vadd.f32 %v2011_v33, %v1989_v42  ;;  %v2027_v10 = vadd.f32 %v2026_v0, %v1990_v40  ;;  %v2050_v26 = vmul.f32 %v5463_v37, %v7840_v16  ;;  %v5720_v31 = vadd.f32 %v1902_v9, %v1901_v58  ;;  %v7844_v7 = vld [vmem:[#allocation96_spill] sm:$0xff]  ;;  %v7845_v40 = vld [vmem:[#allocation73_spill] sm:$0xff] }
 0x1f8   :  { %v1967_v6 = vrot.slane %v1966_v14, 4  ;;  %v2051_v2 = vmul.f32 %v5467_v17, %v7842_v55  ;;  %v2052_v56 = vmul.f32 %v5593_v4, %v7843_v12  ;;  %v2053_v42 = vmul.f32 %v5597_v41, %v7844_v7  ;;  %v7847_v17 = vld [vmem:[#allocation82_spill] sm:$0xff]  ;;  %v7850_v7 = vld [vmem:[#allocation99_spill] sm:$0xff] }
 0x1f9   :  { %7841 = vst [vmem:[#allocation62_spill] sm:$0xff] %v5720_v31  ;;  %v2013_v51 = vadd.f32 %v2012_v47, %v1991_v46  ;;  %v2028_v22 = vadd.f32 %v2027_v10, %v1992_v3  ;;  %v2054_v33 = vmul.f32 %v5602_v8, %v7845_v40  ;;  %v2055_v58 = vmul.f32 %v5606_v49, %v7846_v48  ;;  %v7848_v46 = vld [vmem:[#allocation98_spill] sm:$0xff]  ;;  %v7849_v47 = vld [vmem:[#allocation83_spill] sm:$0xff] }
 0x1fa   :  { %v1968_v0 = vadd.f32 %v1967_v6, %v1966_v14  ;;  %v2074_v9 = vadd.f32 %v2044_v63, %v2042_v21  ;;  %v2089_v16 = vadd.f32 %v2045_v60, %v2043_v18  ;;  %v2056_v12 = vmul.f32 %v5610_v62, %v7847_v17  ;;  %v7853_v60 = vld [vmem:[#allocation85_spill] sm:$0xff] }
 0x1fb   :  { %v2014_v31 = vadd.f32 %v2013_v51, %v5633_v30  ;;  %v2029_v55 = vadd.f32 %v2028_v22, %v1994_v23  ;;  %v2057_v3 = vmul.f32 %v5615_v24, %v7848_v46  ;;  %v2058_v10 = vmul.f32 %v5620_v15, %v7849_v47  ;;  %v7851_v51 = vld [vmem:[#allocation84_spill] sm:$0xff] }
 0x1fc   :  { %v2059_v14 = vmul.f32 %v5624_v38, %v7850_v7  ;;  %v2075_v6 = vadd.f32 %v2074_v9, %v2046_v34  ;;  %v2090_v40 = vadd.f32 %v2089_v16, %v2047_v43  ;;  %v2060_v23 = vmul.f32 %v5629_v29, %v7851_v51  ;;  %v7852_v22 = vld [vmem:[#allocation100_spill] sm:$0xff]  ;;  %v7854_v43 = vld [vmem:[#allocation101_spill] sm:$0xff]  ;;  %v7857_v16 = vld [vmem:[#allocation102_spill] sm:$0xff] }
 0x1fd   :  { %v2015_v21 = vadd.f32 %v2014_v31, %v5644_v19  ;;  %v2030_v18 = vadd.f32 %v2029_v55, %v5650_v36  ;;  %v2061_v17 = vmul.f32 %v5636_v52, %v7852_v22  ;;  %v1969_v30 = vrot.slane %v1968_v0, 2  ;;  %v7855_v36 = vld [vmem:[#allocation86_spill] sm:$0xff]  ;;  %v7856_v31 = vld [vmem:[#allocation28_spill] sm:$0xff]  ;;  %v7858_v7 = vld [vmem:[#allocation87_spill] sm:$0xff] }
 0x1fe   :  { %v2062_v63 = vmul.f32 %v5640_v45, %v7853_v60  ;;  %v2076_v48 = vadd.f32 %v2075_v6, %v2048_v50  ;;  %v2091_v46 = vadd.f32 %v2090_v40, %v2049_v35  ;;  %v2063_v19 = vmul.f32 %v5646_v61, %v7854_v43  ;;  %v7860_v40 = vld [vmem:[#allocation88_spill] sm:$0xff] }
 0x1ff   :  { %v2016_v47 = vadd.f32 %v2015_v21, %v5657_v59  ;;  %v2031_v34 = vadd.f32 %v2030_v18, %v5664_v13  ;;  %v2064_v9 = vmul.f32 %v7856_v31, %v7855_v36  ;;  %v2065_v55 = vmul.f32 %v5660_v54, %v7857_v16  ;;  %v7859_v13 = vld [vmem:[#allocation103_spill] sm:$0xff]  ;;  %v7862_v43 = vld [vmem:[#allocation104_spill] sm:$0xff]  ;;  %v7863_v36 = vld [vmem:[#allocation209_spill] sm:$0xff] }
 0x200   :  { %v5759_v51 = vmul.f32 %v5666_v27, %v7858_v7  ;;  %v2077_v22 = vadd.f32 %v2076_v48, %v2050_v26  ;;  %v2092_v50 = vadd.f32 %v2091_v46, %v2051_v2  ;;  %v2067_v6 = vmul.f32 %v5673_v20, %v7859_v13  ;;  %v7861_v21 = vld [vmem:[#allocation207_spill] sm:$0xff]  ;;  %v7864_v26 = vld [vmem:[#allocation208_spill] sm:$0xff]  ;;  %v7865_v48 = vld [vmem:[#allocation210_spill] sm:$0xff] }
 0x201   :  { %v2017_v35 = vadd.f32 %v2016_v47, %v5670_v5  ;;  %v2032_v59 = vadd.f32 %v2031_v34, %v5677_v57  ;;  %v5767_v18 = vmul.f32 %v7861_v21, %v7860_v40  ;;  %v1970_v60 = vadd.f32 %v1969_v30, %v1968_v0  ;;  %v7866_v46 = vld [vmem:[#allocation89_spill] sm:$0xff]  ;;  %v7868_v13 = vld [vmem:[#allocation91_spill] sm:$0xff]  ;;  %v7871_v40 = vld [vmem:[#allocation106_spill] sm:$0xff] }
 0x202   :  { %v5771_v16 = vmul.f32 %v7863_v36, %v7862_v43  ;;  %v2078_v7 = vadd.f32 %v2077_v22, %v2052_v56  ;;  %v2093_v27 = vadd.f32 %v2092_v50, %v2053_v42  ;;  %v5777_v57 = vmul.f32 %v5535_v11, %v7866_v46  ;;  %v7867_v47 = vld [vmem:[#allocation105_spill] sm:$0xff]  ;;  %v7872_v43 = vld [vmem:[#allocation55_spill] sm:$0xff]  ;;  %v7876_v11 = vld [vmem:[#allocation124_spill] sm:$0xff] }
 0x203   :  { %v2018_v2 = vadd.f32 %v2017_v35, %v7864_v26  ;;  %v2033_v5 = vadd.f32 %v2032_v59, %v7865_v48  ;;  %v5781_v34 = vmul.f32 %v5543_v32, %v7867_v47  ;;  %v7869_v0 = vld [vmem:[#allocation53_spill] sm:$0xff]  ;;  %v5789_v56 = vmul.f32 %v7872_v43, %v7871_v40  ;;  %v7873_v50 = vld [vmem:[#allocation211_spill] sm:$0xff]  ;;  %v7874_v59 = vld [vmem:[#allocation212_spill] sm:$0xff] }
 0x204   :  { %v5785_v30 = vmul.f32 %v7869_v0, %v7868_v13  ;;  %v2079_v42 = vadd.f32 %v2078_v7, %v2054_v33  ;;  %v2094_v22 = vadd.f32 %v2093_v27, %v2055_v58  ;;  %v7875_v48 = vld [vmem:[#allocation107_spill] sm:$0xff]  ;;  %v2112_v47 = vmul.f32 %v5561_v53, %v7876_v11  ;;  %v7878_v43 = vld [vmem:[#allocation126_spill] sm:$0xff] }
 0x205   :  { %v2019_v35 = vadd.f32 %v2018_v2, %v7873_v50  ;;  %v2034_v26 = vadd.f32 %v2033_v5, %v7874_v59  ;;  %v2111_v46 = vmul.f32 %v5557_v25, %v7875_v48  ;;  %v1971_v32 = vrot.slane %v1970_v60, 1  ;;  %v7879_v33 = vld [vmem:[#allocation110_spill] sm:$0xff]  ;;  %v7881_v2 = vld [vmem:[#allocation127_spill] sm:$0xff]  ;;  %v7882_v5 = vld [vmem:[#allocation37_spill] sm:$0xff] }
 0x206   :  { %7870 = vst [vmem:[#allocation90_spill] sm:$0xff] %v5785_v30  ;;  %v2080_v36 = vadd.f32 %v2079_v42, %v2056_v12  ;;  %v2095_v13 = vadd.f32 %v2094_v22, %v2057_v3  ;;  %v7877_v30 = vld [vmem:[#allocation108_spill] sm:$0xff]  ;;  %v2114_v27 = vmul.f32 %v5569_v39, %v7878_v43  ;;  %v7880_v58 = vld [vmem:[#allocation58_spill] sm:$0xff]  ;;  %v2116_v50 = vmul.f32 %v7882_v5, %v7881_v2  ;;  %v7883_v25 = vld [vmem:[#allocation111_spill] sm:$0xff] }
 0x207   :  { %v2113_v0 = vmul.f32 %v5565_v28, %v7877_v30  ;;  %v2035_v40 = vadd.f32 %v2034_v26, %v2019_v35  ;;  %v2115_v7 = vmul.f32 %v7880_v58, %v7879_v33  ;;  %v2117_v11 = vmul.f32 %v5581_v44, %v7883_v25  ;;  %v7884_v12 = vld [vmem:[#allocation128_spill] sm:$0xff]  ;;  %v7886_v35 = vld [vmem:[#allocation129_spill] sm:$0xff]  ;;  %v7891_v2 = vld [vmem:[#allocation114_spill] sm:$0xff] }
 0x208   :  { %v2081_v59 = vadd.f32 %v2080_v36, %v2058_v10  ;;  %v2096_v48 = vadd.f32 %v2095_v13, %v2059_v14  ;;  %v2118_v3 = vmul.f32 %v5456_v1, %v7884_v12  ;;  %v7885_v30 = vld [vmem:[#allocation112_spill] sm:$0xff]  ;;  %v7888_v39 = vld [vmem:[#allocation113_spill] sm:$0xff]  ;;  %v5815_v58 = vadd.f32 %v1971_v32, %v1970_v60  ;;  %v7890_v36 = vld [vmem:[#allocation130_spill] sm:$0xff] }
 0x209   :  { %v2036_v42 = vrot.slane %v2035_v40, 4  ;;  %v2119_v22 = vmul.f32 %v5463_v37, %v7885_v30  ;;  %v7887_v43 = vld [vmem:[#allocation48_spill] sm:$0xff]  ;;  %v2121_v33 = vmul.f32 %v5593_v4, %v7888_v39  ;;  %v2122_v25 = vmul.f32 %v5597_v41, %v7890_v36  ;;  %v7892_v5 = vld [vmem:[#allocation131_spill] sm:$0xff] }
 0x20a   :  { %v2120_v26 = vmul.f32 %v7887_v43, %v7886_v35  ;;  %7889 = vst [vmem:[#allocation66_spill] sm:$0xff] %v5815_v58  ;;  %v2082_v10 = vadd.f32 %v2081_v59, %v2060_v23  ;;  %v2097_v14 = vadd.f32 %v2096_v48, %v2061_v17  ;;  %v2123_v12 = vmul.f32 %v5602_v8, %v7891_v2  ;;  %v7893_v43 = vld [vmem:[#allocation115_spill] sm:$0xff]  ;;  %v7894_v32 = vld [vmem:[#allocation132_spill] sm:$0xff]  ;;  %v7899_v2 = vld [vmem:[#allocation118_spill] sm:$0xff] }
 0x20b   :  { %v2037_v13 = vadd.f32 %v2036_v42, %v2035_v40  ;;  %v2143_v1 = vadd.f32 %v2113_v0, %v2111_v46  ;;  %v2158_v44 = vadd.f32 %v2114_v27, %v2112_v47  ;;  %v2124_v35 = vmul.f32 %v5606_v49, %v7892_v5  ;;  %v7895_v17 = vld [vmem:[#allocation116_spill] sm:$0xff]  ;;  %v7896_v0 = vld [vmem:[#allocation133_spill] sm:$0xff]  ;;  %v7898_v27 = vld [vmem:[#allocation134_spill] sm:$0xff] }
 0x20c   :  { %v2083_v30 = vadd.f32 %v2082_v10, %v2062_v63  ;;  %v2098_v37 = vadd.f32 %v2097_v14, %v2063_v19  ;;  %v2125_v39 = vmul.f32 %v5610_v62, %v7893_v43  ;;  %v2126_v23 = vmul.f32 %v5615_v24, %v7894_v32  ;;  %v7897_v19 = vld [vmem:[#allocation117_spill] sm:$0xff]  ;;  %v7922_v58 = vld [vmem:[#allocation59_spill] sm:$0xff] }
 0x20d   :  { %v2127_v60 = vmul.f32 %v5620_v15, %v7895_v17  ;;  %v2144_v40 = vadd.f32 %v2143_v1, %v2115_v7  ;;  %v2159_v59 = vadd.f32 %v2158_v44, %v2116_v50  ;;  %v2128_v63 = vmul.f32 %v5624_v38, %v7896_v0  ;;  %v7900_v44 = vld [vmem:[#allocation135_spill] sm:$0xff]  ;;  %v7902_v7 = vld [vmem:[#allocation136_spill] sm:$0xff] }
 0x20e   :  { %v2084_v48 = vadd.f32 %v2083_v30, %v2064_v9  ;;  %v2099_v42 = vadd.f32 %v2098_v37, %v2065_v55  ;;  %v2129_v46 = vmul.f32 %v5629_v29, %v7897_v19  ;;  %v2038_v47 = vrot.slane %v2037_v13, 2  ;;  %v7901_v9 = vld [vmem:[#allocation119_spill] sm:$0xff] }
 0x20f   :  { %v2130_v5 = vmul.f32 %v5636_v52, %v7898_v27  ;;  %v2145_v43 = vadd.f32 %v2144_v40, %v2117_v11  ;;  %v2160_v10 = vadd.f32 %v2159_v59, %v2118_v3  ;;  %v2131_v1 = vmul.f32 %v5640_v45, %v7899_v2  ;;  %v7905_v40 = vld [vmem:[#allocation137_spill] sm:$0xff]  ;;  %v7911_v2 = vld [vmem:[#allocation139_spill] sm:$0xff] }
 0x210   :  { %v2085_v14 = vadd.f32 %v2084_v48, %v5759_v51  ;;  %v2100_v36 = vadd.f32 %v2099_v42, %v2067_v6  ;;  %v2132_v37 = vmul.f32 %v5646_v61, %v7900_v44  ;;  %v2133_v55 = vmul.f32 %v7856_v31, %v7901_v9  ;;  %v7903_v51 = vld [vmem:[#allocation120_spill] sm:$0xff]  ;;  %v7904_v6 = vld [vmem:[#allocation205_spill] sm:$0xff]  ;;  %v7906_v42 = vld [vmem:[#allocation122_spill] sm:$0xff] }
 0x211   :  { %v2134_v50 = vmul.f32 %v5660_v54, %v7902_v7  ;;  %v2146_v30 = vadd.f32 %v2145_v43, %v2119_v22  ;;  %v2161_v32 = vadd.f32 %v2160_v10, %v2120_v26  ;;  %v2135_v17 = vmul.f32 %v7904_v6, %v7903_v51  ;;  %v7908_v43 = vld [vmem:[#allocation209_spill] sm:$0xff]  ;;  %v7909_v10 = vld [vmem:[#allocation123_spill] sm:$0xff]  ;;  %v7920_v51 = vld [vmem:[#allocation56_spill] sm:$0xff] }
 0x212   :  { %v2086_v11 = vadd.f32 %v2085_v14, %v5767_v18  ;;  %v2101_v3 = vadd.f32 %v2100_v36, %v5771_v16  ;;  %v2136_v59 = vmul.f32 %v5673_v20, %v7905_v40  ;;  %v2039_v48 = vadd.f32 %v2038_v47, %v2037_v13  ;;  %v7907_v18 = vld [vmem:[#allocation138_spill] sm:$0xff]  ;;  %v7910_v14 = vld [vmem:[#allocation51_spill] sm:$0xff]  ;;  %v7913_v47 = vld [vmem:[#allocation125_spill] sm:$0xff] }
 0x213   :  { %v5852_v0 = vmul.f32 %v7861_v21, %v7906_v42  ;;  %v2147_v19 = vadd.f32 %v2146_v30, %v2121_v33  ;;  %v2162_v27 = vadd.f32 %v2161_v32, %v2122_v25  ;;  %v2138_v16 = vmul.f32 %v7908_v43, %v7907_v18  ;;  %v7912_v44 = vld [vmem:[#allocation23_spill] sm:$0xff]  ;;  %v7914_v9 = vld [vmem:[#allocation53_spill] sm:$0xff]  ;;  %v7917_v32 = vld [vmem:[#allocation140_spill] sm:$0xff] }
 0x214   :  { %v2087_v22 = vadd.f32 %v2086_v11, %v5777_v57  ;;  %v2102_v26 = vadd.f32 %v2101_v3, %v5781_v34  ;;  %v5860_v36 = vmul.f32 %v7910_v14, %v7909_v10  ;;  %v5864_v13 = vmul.f32 %v7912_v44, %v7911_v2  ;;  %v7916_v57 = vld [vmem:[#allocation90_spill] sm:$0xff]  ;;  %v7918_v11 = vld [vmem:[#allocation55_spill] sm:$0xff] }
 0x215   :  { %v5868_v7 = vmul.f32 %v7914_v9, %v7913_v47  ;;  %v2148_v33 = vadd.f32 %v2147_v19, %v2123_v12  ;;  %v2163_v25 = vadd.f32 %v2162_v27, %v2124_v35  ;;  %v5874_v3 = vmul.f32 %v7918_v11, %v7917_v32  ;;  %v7921_v40 = vld [vmem:[#allocation22_spill] sm:$0xff]  ;;  %v7923_v12 = vld [vmem:[#allocation60_spill] sm:$0xff]  ;;  %v7925_v27 = vld [vmem:[#allocation81_spill] sm:$0xff] }
 0x216   :  { %v2088_v30 = vadd.f32 %v2087_v22, %v7916_v57  ;;  %v2103_v34 = vadd.f32 %v2102_v26, %v5789_v56  ;;  %v2180_v42 = vmul.f32 %v7921_v40, %v7920_v51  ;;  %v2040_v18 = vrot.slane %v2039_v48, 1  ;;  %v7924_v19 = vld [vmem:[#allocation64_spill] sm:$0xff]  ;;  %v7926_v22 = vld [vmem:[#allocation65_spill] sm:$0xff]  ;;  %v7927_v26 = vld [vmem:[#allocation58_spill] sm:$0xff] }
 0x217   :  { %7915 = vst [vmem:[#allocation92_spill] sm:$0xff] %v5868_v7  ;;  %7919 = vst [vmem:[#allocation67_spill] sm:$0xff] %v5874_v3  ;;  %v2149_v10 = vadd.f32 %v2148_v33, %v2125_v39  ;;  %v2164_v2 = vadd.f32 %v2163_v25, %v2126_v23  ;;  %v2181_v47 = vmul.f32 %v5561_v53, %v7922_v58  ;;  %v7928_v3 = vld [vmem:[#allocation70_spill] sm:$0xff]  ;;  %v7929_v51 = vld [vmem:[#allocation37_spill] sm:$0xff] }
 0x218   :  { %v2104_v7 = vadd.f32 %v2103_v34, %v2088_v30  ;;  %v2182_v35 = vmul.f32 %v5565_v28, %v7923_v12  ;;  %v2183_v56 = vmul.f32 %v7925_v27, %v7924_v19  ;;  %v2184_v57 = vmul.f32 %v7927_v26, %v7926_v22  ;;  %v7930_v39 = vld [vmem:[#allocation71_spill] sm:$0xff]  ;;  %v7931_v23 = vld [vmem:[#allocation25_spill] sm:$0xff]  ;;  %v7932_v58 = vld [vmem:[#allocation74_spill] sm:$0xff] }
 0x219   :  { %v2150_v32 = vadd.f32 %v2149_v10, %v2127_v60  ;;  %v2165_v11 = vadd.f32 %v2164_v2, %v2128_v63  ;;  %v2185_v40 = vmul.f32 %v7929_v51, %v7928_v3  ;;  %v2186_v33 = vmul.f32 %v7931_v23, %v7930_v39  ;;  %v7933_v30 = vld [vmem:[#allocation49_spill] sm:$0xff]  ;;  %v7934_v53 = vld [vmem:[#allocation75_spill] sm:$0xff]  ;;  %v7936_v9 = vld [vmem:[#allocation76_spill] sm:$0xff] }
 0x21a   :  { %v2105_v25 = vrot.slane %v2104_v7, 4  ;;  %v2187_v34 = vmul.f32 %v7933_v30, %v7932_v58  ;;  %v7935_v12 = vld [vmem:[#allocation35_spill] sm:$0xff]  ;;  %v7937_v19 = vld [vmem:[#allocation48_spill] sm:$0xff]  ;;  %v5896_v44 = vadd.f32 %v2040_v18, %v2039_v48  ;;  %v7940_v22 = vld [vmem:[#allocation78_spill] sm:$0xff]  ;;  %v2212_v30 = vadd.f32 %v2182_v35, %v2180_v42 }
 0x21b   :  { %v2188_v28 = vmul.f32 %v7935_v12, %v7934_v53  ;;  %v2189_v27 = vmul.f32 %v7937_v19, %v7936_v9  ;;  %v2151_v60 = vadd.f32 %v2150_v32, %v2129_v46  ;;  %v2166_v63 = vadd.f32 %v2165_v11, %v2130_v5  ;;  %v7939_v10 = vld [vmem:[#allocation63_spill] sm:$0xff]  ;;  %v7942_v12 = vld [vmem:[#allocation42_spill] sm:$0xff]  ;;  %v7944_v5 = vld [vmem:[#allocation80_spill] sm:$0xff] }
 0x21c   :  { %7938 = vst [vmem:[#allocation93_spill] sm:$0xff] %v5896_v44  ;;  %v2190_v3 = vmul.f32 %v5593_v4, %v7939_v10  ;;  %v2106_v2 = vadd.f32 %v2105_v25, %v2104_v7  ;;  %v2191_v39 = vmul.f32 %v5597_v41, %v7940_v22  ;;  %v7941_v23 = vld [vmem:[#allocation79_spill] sm:$0xff]  ;;  %v2193_v9 = vmul.f32 %v5606_v49, %v7942_v12  ;;  %v7943_v18 = vld [vmem:[#allocation46_spill] sm:$0xff]  ;;  %v7947_v35 = vld [vmem:[#allocation57_spill] sm:$0xff] }
 0x21d   :  { %v2192_v58 = vmul.f32 %v5602_v8, %v7941_v23  ;;  %v2152_v51 = vadd.f32 %v2151_v60, %v2131_v1  ;;  %v2167_v53 = vadd.f32 %v2166_v63, %v2132_v37  ;;  %v2227_v48 = vadd.f32 %v2183_v56, %v2181_v47  ;;  %v7945_v7 = vld [vmem:[#allocation34_spill] sm:$0xff] }
 0x21e   :  { %v2194_v46 = vmul.f32 %v5610_v62, %v7943_v18  ;;  %v2195_v11 = vmul.f32 %v5615_v24, %v7944_v5  ;;  %v2196_v32 = vmul.f32 %v5620_v15, %v7945_v7  ;;  %v2213_v25 = vadd.f32 %v2212_v30, %v2184_v57  ;;  %v7946_v23 = vld [vmem:[#allocation54_spill] sm:$0xff]  ;;  %v7949_v5 = vld [vmem:[#allocation32_spill] sm:$0xff]  ;;  %v7952_v30 = vld [vmem:[#allocation41_spill] sm:$0xff] }
 0x21f   :  { %v2153_v10 = vadd.f32 %v2152_v51, %v2133_v55  ;;  %v2168_v22 = vadd.f32 %v2167_v53, %v2134_v50  ;;  %v2197_v1 = vmul.f32 %v5624_v38, %v7946_v23  ;;  %v2228_v37 = vadd.f32 %v2227_v48, %v2185_v40  ;;  %v7948_v56 = vld [vmem:[#allocation50_spill] sm:$0xff]  ;;  %v7950_v55 = vld [vmem:[#allocation31_spill] sm:$0xff] }
 0x220   :  { %v2107_v42 = vrot.slane %v2106_v2, 2  ;;  %v2198_v47 = vmul.f32 %v5629_v29, %v7947_v35  ;;  %v2199_v12 = vmul.f32 %v5636_v52, %v7948_v56  ;;  %v2214_v60 = vadd.f32 %v2213_v25, %v2186_v33  ;;  %v7951_v51 = vld [vmem:[#allocation38_spill] sm:$0xff]  ;;  %v7953_v33 = vld [vmem:[#allocation40_spill] sm:$0xff] }
 0x221   :  { %v2154_v63 = vadd.f32 %v2153_v10, %v2135_v17  ;;  %v2169_v18 = vadd.f32 %v2168_v22, %v2136_v59  ;;  %v2200_v7 = vmul.f32 %v5640_v45, %v7949_v5  ;;  %v2229_v57 = vadd.f32 %v2228_v37, %v2187_v34  ;;  %v7954_v10 = vld [vmem:[#allocation45_spill] sm:$0xff]  ;;  %v7955_v22 = vld [vmem:[#allocation24_spill] sm:$0xff]  ;;  %v7974_v44 = vld [vmem:[#allocation14_spill] sm:$0xff] }
 0x222   :  { %v2201_v50 = vmul.f32 %v5646_v61, %v7950_v55  ;;  %v2202_v40 = vmul.f32 %v7856_v31, %v7951_v51  ;;  %v2203_v53 = vmul.f32 %v5660_v54, %v7952_v30  ;;  %v2215_v48 = vadd.f32 %v2214_v60, %v2188_v28  ;;  %v7964_v55 = vld [vmem:[#allocation53_spill] sm:$0xff]  ;;  %v7966_v51 = vld [vmem:[#allocation92_spill] sm:$0xff]  ;;  %v7967_v30 = vld [vmem:[#allocation67_spill] sm:$0xff] }
 0x223   :  { %v2155_v23 = vadd.f32 %v2154_v63, %v5852_v0  ;;  %v2170_v35 = vadd.f32 %v2169_v18, %v2138_v16  ;;  %v2204_v17 = vmul.f32 %v7904_v6, %v7953_v33  ;;  %v2230_v59 = vadd.f32 %v2229_v57, %v2189_v27  ;;  %v7956_v0 = vld [vmem:[#allocation29_spill] sm:$0xff]  ;;  %v7958_v27 = vld [vmem:[#allocation44_spill] sm:$0xff]  ;;  %v7961_v63 = vld [vmem:[#allocation23_spill] sm:$0xff] }
 0x224   :  { %v2108_v25 = vadd.f32 %v2107_v42, %v2106_v2  ;;  %v5931_v34 = vmul.f32 %v5673_v20, %v7954_v10  ;;  %v5935_v37 = vmul.f32 %v7861_v21, %v7955_v22  ;;  %v2216_v56 = vadd.f32 %v2215_v48, %v2190_v3  ;;  %v7960_v42 = vld [vmem:[#allocation19_spill] sm:$0xff]  ;;  %v7971_v22 = vld [vmem:[#allocation153_spill] sm:$0xff] }
 0x225   :  { %v2156_v5 = vadd.f32 %v2155_v23, %v5860_v36  ;;  %v2171_v28 = vadd.f32 %v2170_v35, %v5864_v13  ;;  %v5941_v16 = vmul.f32 %v7908_v43, %v7956_v0  ;;  %v2231_v60 = vadd.f32 %v2230_v59, %v2191_v39  ;;  %v7963_v57 = vld [vmem:[#allocation47_spill] sm:$0xff]  ;;  %v7968_v23 = vld [vmem:[#allocation20_spill] sm:$0xff]  ;;  %v7972_v0 = vld [vmem:[#allocation22_spill] sm:$0xff] }
 0x226   :  { %v5945_v2 = vmul.f32 %v7910_v14, %v7958_v27  ;;  %v5949_v18 = vmul.f32 %v7961_v63, %v7960_v42  ;;  %v5953_v3 = vmul.f32 %v7964_v55, %v7963_v57  ;;  %v2217_v36 = vadd.f32 %v2216_v56, %v2192_v58  ;;  %v7969_v35 = vld [vmem:[#allocation55_spill] sm:$0xff]  ;;  %v7973_v42 = vld [vmem:[#allocation141_spill] sm:$0xff]  ;;  %v7975_v58 = vld [vmem:[#allocation158_spill] sm:$0xff] }
 0x227   :  { %7957 = vst [vmem:[#allocation68_spill] sm:$0xff] %v5941_v16  ;;  %v2157_v13 = vadd.f32 %v2156_v5, %v7966_v51  ;;  %v2172_v48 = vadd.f32 %v2171_v28, %v7967_v30  ;;  %v5959_v39 = vmul.f32 %v7969_v35, %v7968_v23  ;;  %v2232_v33 = vadd.f32 %v2231_v60, %v2193_v9  ;;  %v7976_v56 = vld [vmem:[#allocation15_spill] sm:$0xff]  ;;  %v7977_v51 = vld [vmem:[#allocation142_spill] sm:$0xff]  ;;  %v7978_v28 = vld [vmem:[#allocation81_spill] sm:$0xff] }
 0x228   :  { %7959 = vst [vmem:[#allocation94_spill] sm:$0xff] %v5945_v2  ;;  %7962 = vst [vmem:[#allocation69_spill] sm:$0xff] %v5949_v18  ;;  %v2109_v59 = vrot.slane %v2108_v25, 1  ;;  %v2218_v10 = vadd.f32 %v2217_v36, %v2194_v46  ;;  %v2249_v27 = vmul.f32 %v7972_v0, %v7971_v22  ;;  %v2250_v18 = vmul.f32 %v7974_v44, %v7973_v42  ;;  %v7979_v23 = vld [vmem:[#allocation159_spill] sm:$0xff]  ;;  %v7981_v46 = vld [vmem:[#allocation37_spill] sm:$0xff] }
 0x229   :  { %7965 = vst [vmem:[#allocation95_spill] sm:$0xff] %v5953_v3  ;;  %7970 = vst [vmem:[#allocation72_spill] sm:$0xff] %v5959_v39  ;;  %v2173_v57 = vadd.f32 %v2172_v48, %v2157_v13  ;;  %v2233_v3 = vadd.f32 %v2232_v33, %v2195_v11  ;;  %v2251_v5 = vmul.f32 %v7976_v56, %v7975_v58  ;;  %v7980_v60 = vld [vmem:[#allocation143_spill] sm:$0xff]  ;;  %v7982_v39 = vld [vmem:[#allocation160_spill] sm:$0xff] }
 0x22a   :  { %v2252_v30 = vmul.f32 %v7978_v28, %v7977_v51  ;;  %v2219_v2 = vadd.f32 %v2218_v10, %v2196_v32  ;;  %v2253_v9 = vmul.f32 %v7927_v26, %v7979_v23  ;;  %v2254_v36 = vmul.f32 %v7981_v46, %v7980_v60  ;;  %v7983_v22 = vld [vmem:[#allocation25_spill] sm:$0xff]  ;;  %v7984_v13 = vld [vmem:[#allocation144_spill] sm:$0xff]  ;;  %v7987_v58 = vld [vmem:[#allocation35_spill] sm:$0xff] }
 0x22b   :  { %v2255_v16 = vmul.f32 %v7983_v22, %v7982_v39  ;;  %v2174_v0 = vrot.slane %v2173_v57, 4  ;;  %v2234_v42 = vadd.f32 %v2233_v3, %v2197_v1  ;;  %v7985_v11 = vld [vmem:[#allocation49_spill] sm:$0xff]  ;;  %v5979_v44 = vadd.f32 %v2109_v59, %v2108_v25  ;;  %v7990_v23 = vld [vmem:[#allocation162_spill] sm:$0xff]  ;;  %v7992_v3 = vld [vmem:[#allocation163_spill] sm:$0xff] }
 0x22c   :  { %v2256_v48 = vmul.f32 %v7985_v11, %v7984_v13  ;;  %v7986_v33 = vld [vmem:[#allocation161_spill] sm:$0xff]  ;;  %v2220_v32 = vadd.f32 %v2219_v2, %v2198_v47  ;;  %v2259_v60 = vmul.f32 %v5593_v4, %v7990_v23  ;;  %v7991_v39 = vld [vmem:[#allocation146_spill] sm:$0xff]  ;;  %v2261_v13 = vmul.f32 %v5602_v8, %v7992_v3  ;;  %v7993_v22 = vld [vmem:[#allocation147_spill] sm:$0xff] }
 0x22d   :  { %v2257_v56 = vmul.f32 %v7987_v58, %v7986_v33  ;;  %7988 = vst [vmem:[#allocation96_spill] sm:$0xff] %v5979_v44  ;;  %v7989_v10 = vld [vmem:[#allocation145_spill] sm:$0xff]  ;;  %v2175_v46 = vadd.f32 %v2174_v0, %v2173_v57  ;;  %v2235_v26 = vadd.f32 %v2234_v42, %v2199_v12  ;;  %v2260_v1 = vmul.f32 %v5597_v41, %v7991_v39  ;;  %v7995_v23 = vld [vmem:[#allocation148_spill] sm:$0xff] }
 0x22e   :  { %v2258_v51 = vmul.f32 %v7937_v19, %v7989_v10  ;;  %v2221_v11 = vadd.f32 %v2220_v32, %v2200_v7  ;;  %v2262_v25 = vmul.f32 %v5606_v49, %v7993_v22  ;;  %v2281_v59 = vadd.f32 %v2251_v5, %v2249_v27  ;;  %v7994_v10 = vld [vmem:[#allocation164_spill] sm:$0xff]  ;;  %v7996_v57 = vld [vmem:[#allocation165_spill] sm:$0xff]  ;;  %v7998_v27 = vld [vmem:[#allocation166_spill] sm:$0xff] }
 0x22f   :  { %v2296_v47 = vadd.f32 %v2252_v30, %v2250_v18  ;;  %v2176_v2 = vrot.slane %v2175_v46, 2  ;;  %v2236_v33 = vadd.f32 %v2235_v26, %v2201_v50  ;;  %v2263_v44 = vmul.f32 %v5610_v62, %v7994_v10  ;;  %v7997_v32 = vld [vmem:[#allocation149_spill] sm:$0xff]  ;;  %v7999_v26 = vld [vmem:[#allocation150_spill] sm:$0xff]  ;;  %v8000_v30 = vld [vmem:[#allocation167_spill] sm:$0xff] }
 0x230   :  { %v2264_v12 = vmul.f32 %v5615_v24, %v7995_v23  ;;  %v2222_v0 = vadd.f32 %v2221_v11, %v2202_v40  ;;  %v2265_v42 = vmul.f32 %v5620_v15, %v7996_v57  ;;  %v2282_v39 = vadd.f32 %v2281_v59, %v2253_v9  ;;  %v8001_v57 = vld [vmem:[#allocation151_spill] sm:$0xff]  ;;  %v8003_v59 = vld [vmem:[#allocation152_spill] sm:$0xff] }
 0x231   :  { %v2297_v3 = vadd.f32 %v2296_v47, %v2254_v36  ;;  %v2237_v7 = vadd.f32 %v2236_v33, %v2203_v53  ;;  %v2266_v22 = vmul.f32 %v5624_v38, %v7997_v32  ;;  %v2267_v18 = vmul.f32 %v5629_v29, %v7998_v27  ;;  %v8002_v53 = vld [vmem:[#allocation168_spill] sm:$0xff]  ;;  %v8004_v33 = vld [vmem:[#allocation169_spill] sm:$0xff] }
 0x232   :  { %v2268_v50 = vmul.f32 %v5636_v52, %v7999_v26  ;;  %v2223_v5 = vadd.f32 %v2222_v0, %v2204_v17  ;;  %v2269_v10 = vmul.f32 %v5640_v45, %v8000_v30  ;;  %v2283_v40 = vadd.f32 %v2282_v39, %v2255_v16  ;;  %v8005_v17 = vld [vmem:[#allocation154_spill] sm:$0xff]  ;;  %v8008_v26 = vld [vmem:[#allocation171_spill] sm:$0xff] }
 0x233   :  { %v2298_v11 = vadd.f32 %v2297_v3, %v2256_v48  ;;  %v2177_v23 = vadd.f32 %v2176_v2, %v2175_v46  ;;  %v2270_v9 = vmul.f32 %v5646_v61, %v8001_v57  ;;  %v2271_v36 = vmul.f32 %v7856_v31, %v8002_v53  ;;  %v8006_v2 = vld [vmem:[#allocation170_spill] sm:$0xff]  ;;  %v8007_v3 = vld [vmem:[#allocation155_spill] sm:$0xff]  ;;  %v8009_v53 = vld [vmem:[#allocation156_spill] sm:$0xff] }
 0x234   :  { %v2272_v47 = vmul.f32 %v5660_v54, %v8003_v59  ;;  %v6013_v32 = vmul.f32 %v7904_v6, %v8004_v33  ;;  %v6017_v0 = vmul.f32 %v5673_v20, %v8005_v17  ;;  %v2284_v16 = vadd.f32 %v2283_v40, %v2257_v56  ;;  %v8010_v40 = vld [vmem:[#allocation172_spill] sm:$0xff]  ;;  %v8011_v59 = vld [vmem:[#allocation157_spill] sm:$0xff] }
 0x235   :  { %v2299_v48 = vadd.f32 %v2298_v11, %v2258_v51  ;;  %v2238_v46 = vadd.f32 %v2237_v7, %v5931_v34  ;;  %v6022_v39 = vmul.f32 %v7861_v21, %v8006_v2  ;;  %v6026_v27 = vmul.f32 %v7908_v43, %v8007_v3  ;;  %v8012_v17 = vld [vmem:[#allocation189_spill] sm:$0xff]  ;;  %v8013_v2 = vld [vmem:[#allocation22_spill] sm:$0xff] }
 0x236   :  { %v6030_v30 = vmul.f32 %v7910_v14, %v8008_v26  ;;  %v2224_v57 = vadd.f32 %v2223_v5, %v5935_v37  ;;  %v6035_v56 = vmul.f32 %v7961_v63, %v8009_v53  ;;  %v2285_v51 = vadd.f32 %v2284_v16, %v2259_v60  ;;  %v8014_v5 = vld [vmem:[#allocation173_spill] sm:$0xff]  ;;  %v8015_v14 = vld [vmem:[#allocation14_spill] sm:$0xff]  ;;  %v8017_v60 = vld [vmem:[#allocation15_spill] sm:$0xff] }
 0x237   :  { %v2300_v34 = vadd.f32 %v2299_v48, %v2260_v1  ;;  %v2178_v7 = vrot.slane %v2177_v23, 1  ;;  %v6039_v11 = vmul.f32 %v7964_v55, %v8010_v40  ;;  %v6043_v33 = vmul.f32 %v7969_v35, %v8011_v59  ;;  %v8016_v63 = vld [vmem:[#allocation190_spill] sm:$0xff]  ;;  %v8018_v16 = vld [vmem:[#allocation68_spill] sm:$0xff]  ;;  %v8020_v55 = vld [vmem:[#allocation191_spill] sm:$0xff] }
 0x238   :  { %v2318_v3 = vmul.f32 %v8013_v2, %v8012_v17  ;;  %v2286_v26 = vadd.f32 %v2285_v51, %v2261_v13  ;;  %v2319_v53 = vmul.f32 %v8015_v14, %v8014_v5  ;;  %v2320_v1 = vmul.f32 %v8017_v60, %v8016_v63  ;;  %v8019_v43 = vld [vmem:[#allocation174_spill] sm:$0xff]  ;;  %v8022_v35 = vld [vmem:[#allocation175_spill] sm:$0xff]  ;;  %v8023_v20 = vld [vmem:[#allocation37_spill] sm:$0xff] }
 0x239   :  { %v2301_v37 = vadd.f32 %v2300_v34, %v2262_v25  ;;  %v2239_v48 = vadd.f32 %v2238_v46, %v8018_v16  ;;  %v2321_v40 = vmul.f32 %v7978_v28, %v8019_v43  ;;  %v8021_v21 = vld [vmem:[#allocation58_spill] sm:$0xff]  ;;  %v2323_v6 = vmul.f32 %v8023_v20, %v8022_v35  ;;  %v8025_v34 = vld [vmem:[#allocation192_spill] sm:$0xff]  ;;  %v8026_v14 = vld [vmem:[#allocation25_spill] sm:$0xff] }
 0x23a   :  { %v2322_v59 = vmul.f32 %v8021_v21, %v8020_v55  ;;  %v8024_v17 = vld [vmem:[#allocation94_spill] sm:$0xff]  ;;  %v2287_v25 = vadd.f32 %v2286_v26, %v2263_v44  ;;  %v2324_v2 = vmul.f32 %v8026_v14, %v8025_v34  ;;  %v6061_v5 = vadd.f32 %v2178_v7, %v2177_v23  ;;  %v8027_v63 = vld [vmem:[#allocation176_spill] sm:$0xff]  ;;  %v8028_v46 = vld [vmem:[#allocation49_spill] sm:$0xff] }
 0x23b   :  { %v2225_v13 = vadd.f32 %v2224_v57, %v8024_v17  ;;  %v2302_v51 = vadd.f32 %v2301_v37, %v2264_v12  ;;  %v2325_v60 = vmul.f32 %v8028_v46, %v8027_v63  ;;  %v8029_v16 = vld [vmem:[#allocation193_spill] sm:$0xff]  ;;  %v8031_v35 = vld [vmem:[#allocation194_spill] sm:$0xff]  ;;  %v8034_v7 = vld [vmem:[#allocation195_spill] sm:$0xff]  ;;  %v2365_v46 = vadd.f32 %v2321_v40, %v2319_v53 }
 0x23c   :  { %v2326_v43 = vmul.f32 %v7987_v58, %v8029_v16  ;;  %v8030_v28 = vld [vmem:[#allocation177_spill] sm:$0xff]  ;;  %v2288_v55 = vadd.f32 %v2287_v25, %v2265_v42  ;;  %v2328_v44 = vmul.f32 %v5593_v4, %v8031_v35  ;;  %v8032_v12 = vld [vmem:[#allocation178_spill] sm:$0xff]  ;;  %v2330_v37 = vmul.f32 %v5602_v8, %v8034_v7  ;;  %v8035_v17 = vld [vmem:[#allocation179_spill] sm:$0xff] }
 0x23d   :  { %v2327_v21 = vmul.f32 %v7937_v19, %v8030_v28  ;;  %v2303_v20 = vadd.f32 %v2302_v51, %v2266_v22  ;;  %v2329_v57 = vmul.f32 %v5597_v41, %v8032_v12  ;;  %v8033_v26 = vld [vmem:[#allocation69_spill] sm:$0xff]  ;;  %v2331_v34 = vmul.f32 %v5606_v49, %v8035_v17  ;;  %v8036_v58 = vld [vmem:[#allocation196_spill] sm:$0xff]  ;;  %v8037_v19 = vld [vmem:[#allocation95_spill] sm:$0xff] }
 0x23e   :  { %v2240_v23 = vadd.f32 %v2239_v48, %v8033_v26  ;;  %v2332_v14 = vmul.f32 %v5610_v62, %v8036_v58  ;;  %v2226_v42 = vadd.f32 %v2225_v13, %v8037_v19  ;;  %v2289_v22 = vadd.f32 %v2288_v55, %v2267_v18  ;;  %v8038_v51 = vld [vmem:[#allocation180_spill] sm:$0xff]  ;;  %v8039_v63 = vld [vmem:[#allocation197_spill] sm:$0xff]  ;;  %v8042_v12 = vld [vmem:[#allocation11_spill] sm:$0xff] }
 0x23f   :  { %v2304_v25 = vadd.f32 %v2303_v20, %v2268_v50  ;;  %v2333_v4 = vmul.f32 %v5615_v24, %v8038_v51  ;;  %v2334_v41 = vmul.f32 %v5620_v15, %v8039_v63  ;;  %v2350_v48 = vadd.f32 %v2320_v1, %v2318_v3  ;;  %v8040_v16 = vld [vmem:[#allocation121_spill] sm:$0xff]  ;;  %v8043_v18 = vld [vmem:[#allocation72_spill] sm:$0xff]  ;;  %v8050_v58 = vld [vmem:[#allocation198_spill] sm:$0xff] }
 0x240   :  { %v8041_v8 = vld [vmem:[#allocation109_spill] sm:$0xff]  ;;  %v2290_v49 = vadd.f32 %v2289_v22, %v2269_v10  ;;  %v2241_v50 = vadd.f32 %v2240_v23, %v8043_v18  ;;  %v2366_v55 = vadd.f32 %v2365_v46, %v2323_v6  ;;  %v8044_v24 = vld [vmem:[#allocation12_spill] sm:$0xff]  ;;  %v8047_v6 = vld [vmem:[#allocation39_spill] sm:$0xff]  ;;  %v2336_v19 = vmul.f32 %v5629_v29, %v8050_v58 }
 0x241   :  { %v2387_v28 = vsel %vm468_vm2, %v8041_v8, %v8040_v16  ;;  %v2305_v35 = vadd.f32 %v2304_v25, %v2270_v9  ;;  %v2351_v13 = vadd.f32 %v2350_v48, %v2322_v59  ;;  %v8045_v53 = vld [vmem:[#allocation181_spill] sm:$0xff]  ;;  %v8046_v40 = vld [vmem:[#allocation36_spill] sm:$0xff]  ;;  %v8053_v63 = vld [vmem:[#allocation26_spill] sm:$0xff] }
 0x242   :  { %v2388_v62 = vsel %vm581_vm3, %v2387_v28, %v8042_v12  ;;  %v2291_v15 = vadd.f32 %v2290_v49, %v2271_v36  ;;  %v2335_v1 = vmul.f32 %v5624_v38, %v8045_v53  ;;  %v2367_v9 = vadd.f32 %v2366_v55, %v2325_v60  ;;  %v8048_v17 = vld [vmem:[#allocation21_spill] sm:$0xff]  ;;  %v8049_v36 = vld [vmem:[#allocation27_spill] sm:$0xff]  ;;  %v8051_v60 = vld [vmem:[#allocation30_spill] sm:$0xff] }
 0x243   :  { %v2390_v20 = vsel %vm2389_vm4, %v2388_v62, %v8044_v24  ;;  %v2306_v3 = vadd.f32 %v2305_v35, %v2272_v47  ;;  %v2352_v10 = vadd.f32 %v2351_v13, %v2324_v2  ;;  %v2397_v47 = vsel %vm468_vm2, %v8049_v36, %v8048_v17  ;;  %v8054_v46 = vld [vmem:[#allocation182_spill] sm:$0xff]  ;;  %v8057_v35 = vld [vmem:[#allocation13_spill] sm:$0xff]  ;;  %v8068_v36 = vld [vmem:[#allocation96_spill] sm:$0xff] }
 0x244   :  { %v2392_v26 = vsel %vm2391_vm5, %v2390_v20, %v8046_v40  ;;  %v2292_v7 = vadd.f32 %v2291_v15, %v6013_v32  ;;  %v2368_v2 = vadd.f32 %v2367_v9, %v2327_v21  ;;  %v2398_v48 = vsel %vm581_vm3, %v2397_v47, %v8053_v63  ;;  %v8058_v12 = vld [vmem:[#allocation77_spill] sm:$0xff]  ;;  %v8062_v15 = vld [vmem:[#allocation62_spill] sm:$0xff] }
 0x245   :  { %v2307_v59 = vadd.f32 %v2306_v3, %v6017_v0  ;;  %v2394_v23 = vsel %vm2393_vm6, %v2392_v26, %v8047_v6  ;;  %v2353_v38 = vadd.f32 %v2352_v10, %v2326_v43  ;;  %v8052_v0 = vld [vmem:[#allocation61_spill] sm:$0xff]  ;;  %v2337_v16 = vmul.f32 %v5636_v52, %v8054_v46  ;;  %v8055_v43 = vld [vmem:[#allocation16_spill] sm:$0xff]  ;;  %v8059_v52 = vld [vmem:[#allocation18_spill] sm:$0xff] }
 0x246   :  { %v2395_v22 = vsel %vm210_vm0, %v2394_v23, %v8051_v60  ;;  %v2293_v25 = vadd.f32 %v2292_v7, %v6022_v39  ;;  %v2369_v29 = vadd.f32 %v2368_v2, %v2329_v57  ;;  %v2399_v21 = vsel %vm2389_vm4, %v2398_v48, %v8055_v43  ;;  %v8060_v57 = vld [vmem:[#allocation17_spill] sm:$0xff]  ;;  %v8064_v9 = vld [vmem:[#allocation66_spill] sm:$0xff]  ;;  %v8067_v23 = vld [vmem:[#allocation183_spill] sm:$0xff] }
 0x247   :  { %v2308_v32 = vadd.f32 %v2307_v59, %v6026_v27  ;;  %v2396_v51 = vsel %vm323_vm1, %v2395_v22, %v8052_v0  ;;  %v2354_v8 = vadd.f32 %v2353_v38, %v2328_v44  ;;  %v8056_v27 = vld [vmem:[#allocation43_spill] sm:$0xff]  ;;  %v2404_v62 = vsel %vm468_vm2, %v8058_v12, %v8057_v35  ;;  %v8070_v38 = vld [vmem:[#allocation184_spill] sm:$0xff]  ;;  %v8074_v0 = vld [vmem:[#allocation206_spill] sm:$0xff] }
 0x248   :  { %2414 = vst [vmem:[#allocation7] sm:$0xff] %v2396_v51  ;;  %v2294_v28 = vadd.f32 %v2293_v25, %v6030_v30  ;;  %v2400_v49 = vsel %vm2391_vm5, %v2399_v21, %v8056_v27  ;;  %v2370_v13 = vadd.f32 %v2369_v29, %v2331_v34  ;;  %v2405_v55 = vsel %vm581_vm3, %v2404_v62, %v8060_v57  ;;  %v8065_v59 = vld [vmem:[#allocation199_spill] sm:$0xff]  ;;  %v8078_v29 = vld [vmem:[#allocation209_spill] sm:$0xff]  ;;  %v8085_v57 = vld [vmem:[#allocation188_spill] sm:$0xff] }
 0x249   :  { %v2309_v39 = vadd.f32 %v2308_v32, %v6035_v56  ;;  %v2355_v18 = vadd.f32 %v2354_v8, %v2330_v37  ;;  %v2401_v44 = vsel %vm2393_vm6, %v2400_v49, %v8059_v52  ;;  %v8061_v56 = vld [vmem:[#allocation33_spill] sm:$0xff]  ;;  %v2406_v3 = vsel %vm2389_vm4, %v2405_v55, %v8062_v15  ;;  %v8063_v37 = vld [vmem:[#allocation52_spill] sm:$0xff]  ;;  %v8076_v46 = vld [vmem:[#allocation207_spill] sm:$0xff] }
 0x24a   :  { %v2295_v24 = vadd.f32 %v2294_v28, %v6039_v11  ;;  %v2402_v20 = vsel %vm210_vm0, %v2401_v44, %v8061_v56  ;;  %v2371_v10 = vadd.f32 %v2370_v13, %v2333_v4  ;;  %v2407_v40 = vsel %vm2391_vm5, %v2406_v3, %v8064_v9  ;;  %v8073_v32 = vld [vmem:[#allocation185_spill] sm:$0xff]  ;;  %v8079_v28 = vld [vmem:[#allocation203_spill] sm:$0xff]  ;;  %v8083_v13 = vld [vmem:[#allocation204_spill] sm:$0xff] }
 0x24b   :  { %v2310_v30 = vadd.f32 %v2309_v39, %v6043_v33  ;;  %v2356_v53 = vadd.f32 %v2355_v18, %v2332_v14  ;;  %v2403_v34 = vsel %vm323_vm1, %v2402_v20, %v8063_v37  ;;  %v2242_v26 = vadd.f32 %v2241_v50, %v2226_v42  ;;  %v8066_v33 = vld [vmem:[#allocation93_spill] sm:$0xff]  ;;  %v8069_v42 = vld [vmem:[#allocation200_spill] sm:$0xff]  ;;  %v8080_v39 = vld [vmem:[#allocation51_spill] sm:$0xff] }
 0x24c   :  { %v2338_v11 = vmul.f32 %v5640_v45, %v8065_v59  ;;  %v2408_v6 = vsel %vm2393_vm6, %v2407_v40, %v8066_v33  ;;  %2415 = vst [vmem:[#allocation7 + $0x8] sm:$0xff] %v2403_v34  ;;  %v2339_v17 = vmul.f32 %v5646_v61, %v8067_v23  ;;  %v2372_v4 = vadd.f32 %v2371_v10, %v2335_v1  ;;  %v8071_v61 = vld [vmem:[#allocation201_spill] sm:$0xff]  ;;  %v8081_v49 = vld [vmem:[#allocation187_spill] sm:$0xff] }
 0x24d   :  { %v2311_v7 = vadd.f32 %v2310_v30, %v2295_v24  ;;  %v2357_v14 = vadd.f32 %v2356_v53, %v2334_v41  ;;  %v2409_v47 = vsel %vm210_vm0, %v2408_v6, %v8068_v36  ;;  %v2340_v50 = vmul.f32 %v7856_v31, %v8069_v42  ;;  %v8072_v41 = vld [vmem:[#allocation205_spill] sm:$0xff]  ;;  %v8077_v31 = vld [vmem:[#allocation186_spill] sm:$0xff]  ;;  %v8082_v35 = vld [vmem:[#allocation23_spill] sm:$0xff] }
 0x24e   :  { %v2410_v58 = vsel %vm323_vm1, %v2409_v47, %v6061_v5  ;;  %v2341_v45 = vmul.f32 %v5660_v54, %v8070_v38  ;;  %v2373_v60 = vadd.f32 %v2372_v4, %v2337_v16  ;;  %v2243_v22 = vrot.slane %v2242_v26, 4  ;;  %v8075_v5 = vld [vmem:[#allocation202_spill] sm:$0xff]  ;;  %v8084_v52 = vld [vmem:[#allocation53_spill] sm:$0xff]  ;;  %v8086_v55 = vld [vmem:[#allocation55_spill] sm:$0xff] }
 0x24f   :  { %v2358_v2 = vadd.f32 %v2357_v14, %v2336_v19  ;;  %2416 = vst [vmem:[#allocation7 + $0x10] sm:$0xff] %v2410_v58  ;;  %v2312_v25 = vrot.slane %v2311_v7, 4  ;;  %v2342_v1 = vmul.f32 %v8072_v41, %v8071_v61  ;;  %v2343_v51 = vmul.f32 %v8074_v0, %v8073_v32 }
 0x250   :  { %v2374_v48 = vadd.f32 %v2373_v60, %v2339_v17  ;;  %v2344_v8 = vmul.f32 %v8076_v46, %v8075_v5  ;;  %v2345_v43 = vmul.f32 %v8078_v29, %v8077_v31  ;;  %v2244_v16 = vadd.f32 %v2243_v22, %v2242_v26 }
 0x251   :  { %v2359_v63 = vadd.f32 %v2358_v2, %v2338_v11  ;;  %v2313_v21 = vadd.f32 %v2312_v25, %v2311_v7  ;;  %v2346_v27 = vmul.f32 %v8080_v39, %v8079_v28  ;;  %v2347_v12 = vmul.f32 %v8082_v35, %v8081_v49 }
 0x252   :  { %v2375_v19 = vadd.f32 %v2374_v48, %v2341_v45  ;;  %v2348_v44 = vmul.f32 %v8084_v52, %v8083_v13  ;;  %v2349_v24 = vmul.f32 %v8086_v55, %v8085_v57  ;;  %v2245_v20 = vrot.slane %v2244_v16, 2 }
 0x253   :  { %v2360_v54 = vadd.f32 %v2359_v63, %v2340_v50  ;;  %v2314_v15 = vrot.slane %v2313_v21, 2 }
 0x254   :  { %v2376_v18 = vadd.f32 %v2375_v19, %v2343_v51  ;;  %v2246_v34 = vadd.f32 %v2245_v20, %v2244_v16 }
 0x255   :  { %v2361_v62 = vadd.f32 %v2360_v54, %v2342_v1  ;;  %v2315_v9 = vadd.f32 %v2314_v15, %v2313_v21 }
 0x256   :  { %v2377_v56 = vadd.f32 %v2376_v18, %v2345_v43  ;;  %v2247_v7 = vrot.slane %v2246_v34, 1 }
 0x257   :  { %v2362_v30 = vadd.f32 %v2361_v62, %v2344_v8  ;;  %v2316_v59 = vrot.slane %v2315_v9, 1 }
 0x258   :  { %v2378_v53 = vadd.f32 %v2377_v56, %v2347_v12  ;;  %v2248_v6 = vadd.f32 %v2247_v7, %v2246_v34 }
 0x259   :  { %v2363_v3 = vadd.f32 %v2362_v30, %v2346_v27  ;;  %v2317_v23 = vadd.f32 %v2316_v59, %v2315_v9 }
 0x25a   :  { %v2379_v37 = vadd.f32 %v2378_v53, %v2349_v24 }
 0x25b   :  { %v2364_v10 = vadd.f32 %v2363_v3, %v2348_v44  ;;  %v2411_v4 = vsel %vm468_vm2, %v2248_v6, %v2317_v23 }
 0x25d   :  { %v2380_v40 = vadd.f32 %v2379_v37, %v2364_v10 }
 0x25f   :  { %v2381_v26 = vrot.slane %v2380_v40, 4 }
 0x261   :  { %v2382_v11 = vadd.f32 %v2381_v26, %v2380_v40 }
 0x263   :  { %v2383_v33 = vrot.slane %v2382_v11, 2 }
 0x265   :  { %v2384_v17 = vadd.f32 %v2383_v33, %v2382_v11 }
 0x267   :  { %v2385_v14 = vrot.slane %v2384_v17, 1 }
 0x269   :  { %v2386_v36 = vadd.f32 %v2385_v14, %v2384_v17 }
 0x26b   :  { %v2412_v47 = vsel %vm581_vm3, %v2411_v4, %v2386_v36 }
 0x26c   :  { %v2413_v58 = vsel %vm2389_vm4, %v2412_v47, 0.0 }
 0x26d   :  { %2417 = vst [vmem:[#allocation7 + $0x18] sm:$0xff] %v2413_v58 }
 0x26e   :  { %2656 = shalt.err (!%p2653_p6)
}
 0x26f   :  { %s2657_s10 = scalar_lea.hbm %s6189_s2, 512 }
 0x270   :  { %p2658_p7 = scmp.ne.s32.totalorder %s6189_s2, %s2657_s10  ;;  %p2661_p8 = scmp.lt.u32.totalorder %s2657_s10, %s6189_s2 }
 0x272   :  { %p2663_p9 = pnand %p2661_p8, %p2658_p7 }
 0x274   :  { %2666 = shalt.err (!%p2663_p9)
}
 0x275   :  { %2429 = dma.vmem_to_hbm [thread:$0]  %s2424_s6, 512, %s6189_s2, [#allocation4], %s2674_s19, %s2674_s19, %s2675_s20  }
 0x276   :  { %2671 = dma.done.wait [#allocation4], 512  }
 0x277   :  { %2672 = vsyncadd [#allocation4], 4294966784 }
 0x278   :  { %2433 = vsyncpa [#allocation3], 1 }
 0x279   :  { %2434 = vsyncpa [#allocation6], 1 }
 0x27a   :  { %2435 = vsyncpa [#allocation4], 1 }

</bundles_post_ra>
